<compile_context>
chip_gen: v7x
topology: tpu7x:2x2x1
jax: 0.10.0
libtpu: 0.0.40
codegen_flags: <defaults>
</compile_context>

<pallas_src>
import math

import jax
import jax.numpy as jnp
from jax.experimental import pallas as pl
from jax.experimental.pallas import tpu as pltpu

_NUM_FEATURES = 17
_LANE = 128
_MAX_GROUP = 32  # caps the unrolled in-kernel repack (17*G slice/concat pieces)


# ----------------------------------------------------------------------------
# Hardware / layout helpers
# ----------------------------------------------------------------------------
def _round_up(v, m):
    return -(-v // m) * m


def _device_kind():
    try:
        return jax.devices()[0].device_kind.lower()
    except Exception:
        return ""


def _num_tensorcores():
    # Only v7x has 2 TensorCores per chip; on v5e/v6e extra grid steps are a
    # serial loop (just per-step overhead), so don't force a split there.
    return 2 if "v7" in _device_kind() else 1


def _has_bf16_vector_units():
    k = _device_kind()
    return ("v6" in k) or ("v7" in k)


def _compute_dtype(in_dtype):
    # v6e/v7x have bf16 VPU/EUP: keep bf16 inputs in bf16 (half the vreg/VMEM
    # pressure, ~2x EUP throughput).  v5e / unknown chips upcast to f32.
    if in_dtype == jnp.bfloat16 and _has_bf16_vector_units():
        return jnp.bfloat16
    return jnp.float32


def _sublane_multiple(itemsize):
    # f32 -> 8, bf16 -> 16, int8/fp8 -> 32
    return max(8, 32 // int(itemsize))


def _vmem_budget_bytes():
    # Generation-aware budget for the live (double-buffered) blocks: v7x has
    # only 64 MiB VMEM per TensorCore, v5e/v6e have 128 MiB.  512-1024-row
    # tiles already reach ~85% of the HBM roofline, so stay conservative.
    try:
        cap = pltpu.get_tpu_info().vmem_capacity_bytes
    except Exception:
        cap = 64 * 1024 * 1024
    return min(cap // 4, 24 * 1024 * 1024)


def _pick_group(n_rows, d_in):
    """Original rows packed per kernel row so the packed lane width is 128*k."""
    g = _LANE // math.gcd(d_in, _LANE)
    if g <= 1:
        return 1  # already lane-dense (D a multiple of 128)
    if g > _MAX_GROUP:
        # TODO(synk): D in {1,2,3,...} with gcd(D,128) small would need G>32;
        # the unrolled repack gets too large, so fall back to the sparse path.
        return 1
    if n_rows % g != 0:
        return 1  # reshape would not be a free view
    return g


def _pick_tile(rows, in_w, out_w, itemsize, tile_rows):
    """Row tile for the grid + explicit VMEM limit, with padded accounting."""
    sub = _sublane_multiple(itemsize)
    in_w_pad = _round_up(in_w, _LANE)
    out_w_pad = _round_up(out_w, _LANE)
    # Double-buffered input+output blocks plus the live in-kernel temporaries
    # (17 feature arrays + trig bases, <= f32), all padded to full 128-lane
    # vregs (the logical widths under-count by up to ~7x for small D).
    per_row = (2 * (in_w_pad + out_w_pad) * itemsize
               + (_NUM_FEATURES + 8) * in_w_pad * 4)
    budget = _vmem_budget_bytes()
    cap = max(sub, budget // per_row)

    if tile_rows is not None:
        tr = max(1, min(int(tile_rows), rows))
    else:
        tr = min(rows, cap)
        # Force >=2 grid steps only where a second TensorCore exists (v7x).
        if _num_tensorcores() > 1 and tr >= rows and rows >= 2 * sub:
            tr = (rows + 1) // 2
    if tr < rows:
        tr = min(rows, max(sub, _round_up(tr, sub)))

    footprint = per_row * tr + (2 << 20)  # + pipeline/compiler slack
    vmem_limit = int(min(max(footprint * 5 // 4, 16 << 20), 48 << 20))
    return tr, vmem_limit


# ----------------------------------------------------------------------------
# Kernel
# ----------------------------------------------------------------------------
def _features(x):
    """The 17 default MultiFeatureEncoding functions.

    Only 7 transcendentals per element hit the EUP: sin/cos(pi*x/4),
    sin/cos(x) and 3 tanh; sin/cos(pi*x/2) and sin/cos(pi*x) are derived with
    double-angle identities (VPU), sigmoid(z) = 0.5 + 0.5*tanh(0.5*z).
    """
    xs15 = x - 1.5
    xs45 = x - 4.5

    x4 = x * (math.pi / 4.0)
    s4 = jnp.sin(x4)                     # sin(pi*x/4)
    c4 = jnp.cos(x4)                     # cos(pi*x/4)
    s2 = 2.0 * s4 * c4                   # sin(pi*x/2)
    c2 = 1.0 - 2.0 * s4 * s4             # cos(pi*x/2)
    s1 = 2.0 * s2 * c2                   # sin(pi*x)
    c1 = 1.0 - 2.0 * s2 * s2             # cos(pi*x)

    b = math.pi * (1.0 / math.pi)        # folded at trace time (== 1 to 1 ulp)
    sx = jnp.sin(x * b)                  # ScaledTrig(sin, 1/pi)
    cx = jnp.cos(x * b)                  # ScaledTrig(cos, 1/pi)

    def sig(z):                          # sigmoid via one tanh on the EUP
        return 0.5 + 0.5 * jnp.tanh(0.5 * z)

    return [
        x,                               # Identity
        x * x,                           # SquareShift(0)
        xs15 * xs15,                     # SquareShift(1.5)
        xs45 * xs45,                     # SquareShift(4.5)
        sig(x),                          # SigmoidShift(0)
        sig(xs15),                       # SigmoidShift(1.5)
        sig(xs45),                       # SigmoidShift(4.5)
        xs15,                            # Shift(1.5)
        xs45,                            # Shift(4.5)
        sx, cx,                          # ScaledTrig(sin/cos, 1/pi)
        s1, c1,                          # ScaledTrig(sin/cos, 1)
        s4, c4,                          # ScaledTrig(sin/cos, 1/4)
        s2, c2,                          # ScaledTrig(sin/cos, 1/2)
    ]


def _make_kernel(d_in, group, compute_dtype):
    row_out = _NUM_FEATURES * d_in       # hstacked output width of one row

    def kernel(x_ref, o_ref):
        # x_ref: (tr, group*d_in) lane-dense; o_ref: (tr, group*17*d_in).
        # Final partial grid block computes on unspecified padding rows;
        # writeback masking discards them (harmless).
        x = x_ref[...].astype(compute_dtype)
        feats = [f.astype(o_ref.dtype) for f in _features(x)]

        if group == 1:
            # Static per-feature ref-slice stores: zero-cost views, no full
            # (tr, 17*D) concat temporary.
            for k, f in enumerate(feats):
                o_ref[:, k * d_in:(k + 1) * d_in] = f
        else:
            # Repack (g, d)-ordered dense lanes into the (g, k, d)-ordered
            # hstacked row slab: one 17*D-wide slab + one store per packed
            # row group (static offsets).
            for g in range(group):
                slab = jnp.concatenate(
                    [f[:, g * d_in:(g + 1) * d_in] for f in feats], axis=-1)
                o_ref[:, g * row_out:(g + 1) * row_out] = slab

    return kernel


# ----------------------------------------------------------------------------
# Wrapper
# ----------------------------------------------------------------------------
def multi_feature_encoding(x, *, tile_rows=None):
    """Fused MultiFeatureEncoding forward: (N, D) -> (N, 17*D)."""
    if x.ndim != 2:
        # TODO(synk): torch.hstack concatenates 1-D inputs along axis 0 and
        # >2-D inputs along axis 1; only the 2-D (batch, coords) PINN layout
        # is implemented here.
        raise ValueError("multi_feature_encoding expects a 2-D (N, D) input")
    n_rows, d_in = x.shape
    d_out = _NUM_FEATURES * d_in

    group = _pick_group(n_rows, d_in)
    rows = n_rows // group
    in_w = group * d_in                   # multiple of 128 when group > 1
    out_w = group * d_out                 # multiple of 128 when group > 1
    cdt = _compute_dtype(x.dtype)
    tr, vmem_limit = _pick_tile(rows, in_w, out_w, x.dtype.itemsize, tile_rows)

    x_packed = x.reshape(rows, in_w)      # free, contiguous view

    out_packed = pl.pallas_call(
        _make_kernel(d_in, group, cdt),
        out_shape=jax.ShapeDtypeStruct((rows, out_w), x.dtype),
        grid_spec=pltpu.PrefetchScalarGridSpec(
            num_scalar_prefetch=0,
            grid=(pl.cdiv(rows, tr),),
            in_specs=[pl.BlockSpec((tr, in_w), lambda i: (i, 0))],
            out_specs=pl.BlockSpec((tr, out_w), lambda i: (i, 0)),
        ),
        compiler_params=pltpu.CompilerParams(
            dimension_semantics=("parallel",),
            vmem_limit_bytes=vmem_limit,
        ),
    )(x_packed)

    # TODO(synk): for even lower HBM cost, fuse this encoding into the first
    # Linear layer's matmul kernel (generate the 17*D K-tile in VMEM) so the
    # (N, 17*D) activation never touches HBM.
    return out_packed.reshape(n_rows, d_out)  # free view back to (N, 17*D)


# ----------------------------------------------------------------------------
# Reference + self-test
# ----------------------------------------------------------------------------
def _reference(x):
    """Plain-JAX reference with torch-style (unfolded) constant application."""
    x = x.astype(jnp.float32)
    pi = jnp.float32(math.pi)

    def trig(fn, scale):
        return fn(pi * x * jnp.float32(scale))

    sig = jax.nn.sigmoid
    feats = [
        x,
        (x - 0.0) ** 2, (x - 1.5) ** 2, (x - 4.5) ** 2,
        sig(x - 0.0), sig(x - 1.5), sig(x - 4.5),
        x - 1.5, x - 4.5,
        trig(jnp.sin, 1.0 / math.pi), trig(jnp.cos, 1.0 / math.pi),
        trig(jnp.sin, 1.0), trig(jnp.cos, 1.0),
        trig(jnp.sin, 0.25), trig(jnp.cos, 0.25),
        trig(jnp.sin, 0.5), trig(jnp.cos, 0.5),
    ]
    return jnp.concatenate(feats, axis=1)


if __name__ == "__main__":
    key = jax.random.PRNGKey(0)

    def _check(shape, **kw):
        k = jax.random.fold_in(key, shape[0] * 131 + shape[1])
        x = jax.random.normal(k, shape, dtype=jnp.float32)
        out = jax.block_until_ready(multi_feature_encoding(x, **kw))
        assert out.shape == (shape[0], _NUM_FEATURES * shape[1]), out.shape
        assert out.dtype == x.dtype, out.dtype
        ref = _reference(x)
        err = float(jnp.max(jnp.abs(out - ref)))
        assert jnp.allclose(out, ref, atol=1e-5, rtol=1e-5), err
        return out

    _check((64, 8))                  # lane-packed path (group=16, single block)
    _check((560, 8), tile_rows=8)    # lane-packed, multi-step grid + partial block
    _check((37, 5))                  # fallback path (group=1, odd D / N)

    print("KERNEL_OK")
</pallas_src>

<mosaic_0001>
module attributes {stable_mosaic.version = 11 : i64} {
  func.func @kernel(%arg0: i32, %arg1: memref<4x128xf32, #tpu.memory_space<vmem>>, %arg2: memref<4x2176xf32, #tpu.memory_space<vmem>>) attributes {dimension_semantics = [#tpu.dimension_semantics<parallel>], iteration_bounds = array<i64: 1>, scalar_prefetch = 0 : i64, scratch_operands = 0 : i64, tpu.core_type = #tpu.core_type<tc>, window_params = [{transform_indices = @transform_0, window_bounds = array<i64: 4, 128>}, {transform_indices = @transform_1, window_bounds = array<i64: 4, 2176>}]} {
    %c0 = arith.constant 0 : index
    %c0_0 = arith.constant 0 : index
    %0 = vector.load %arg1[%c0, %c0_0] : memref<4x128xf32, #tpu.memory_space<vmem>>, vector<4x128xf32>
    %cst = arith.constant 1.500000e+00 : f32
    %1 = vector.broadcast %cst : f32 to vector<4x128xf32>
    %2 = arith.subf %0, %1 : vector<4x128xf32>
    %cst_1 = arith.constant 4.500000e+00 : f32
    %3 = vector.broadcast %cst_1 : f32 to vector<4x128xf32>
    %4 = arith.subf %0, %3 : vector<4x128xf32>
    %cst_2 = arith.constant 0.785398185 : f32
    %5 = vector.broadcast %cst_2 : f32 to vector<4x128xf32>
    %6 = arith.mulf %0, %5 : vector<4x128xf32>
    %7 = math.sin %6 : vector<4x128xf32>
    %8 = math.cos %6 : vector<4x128xf32>
    %cst_3 = arith.constant 2.000000e+00 : f32
    %9 = vector.broadcast %cst_3 : f32 to vector<4x128xf32>
    %10 = arith.mulf %9, %7 : vector<4x128xf32>
    %11 = arith.mulf %10, %8 : vector<4x128xf32>
    %cst_4 = arith.constant 2.000000e+00 : f32
    %12 = vector.broadcast %cst_4 : f32 to vector<4x128xf32>
    %13 = arith.mulf %12, %7 : vector<4x128xf32>
    %14 = arith.mulf %13, %7 : vector<4x128xf32>
    %cst_5 = arith.constant 1.000000e+00 : f32
    %15 = vector.broadcast %cst_5 : f32 to vector<4x128xf32>
    %16 = arith.subf %15, %14 : vector<4x128xf32>
    %cst_6 = arith.constant 2.000000e+00 : f32
    %17 = vector.broadcast %cst_6 : f32 to vector<4x128xf32>
    %18 = arith.mulf %17, %11 : vector<4x128xf32>
    %19 = arith.mulf %18, %16 : vector<4x128xf32>
    %cst_7 = arith.constant 2.000000e+00 : f32
    %20 = vector.broadcast %cst_7 : f32 to vector<4x128xf32>
    %21 = arith.mulf %20, %11 : vector<4x128xf32>
    %22 = arith.mulf %21, %11 : vector<4x128xf32>
    %cst_8 = arith.constant 1.000000e+00 : f32
    %23 = vector.broadcast %cst_8 : f32 to vector<4x128xf32>
    %24 = arith.subf %23, %22 : vector<4x128xf32>
    %cst_9 = arith.constant 1.000000e+00 : f32
    %25 = vector.broadcast %cst_9 : f32 to vector<4x128xf32>
    %26 = arith.mulf %0, %25 : vector<4x128xf32>
    %27 = math.sin %26 : vector<4x128xf32>
    %cst_10 = arith.constant 1.000000e+00 : f32
    %28 = vector.broadcast %cst_10 : f32 to vector<4x128xf32>
    %29 = arith.mulf %0, %28 : vector<4x128xf32>
    %30 = math.cos %29 : vector<4x128xf32>
    %31 = arith.mulf %0, %0 : vector<4x128xf32>
    %32 = arith.mulf %2, %2 : vector<4x128xf32>
    %33 = arith.mulf %4, %4 : vector<4x128xf32>
    %cst_11 = arith.constant 5.000000e-01 : f32
    %34 = vector.broadcast %cst_11 : f32 to vector<4x128xf32>
    %35 = arith.mulf %34, %0 : vector<4x128xf32>
    %36 = math.tanh %35 : vector<4x128xf32>
    %cst_12 = arith.constant 5.000000e-01 : f32
    %37 = vector.broadcast %cst_12 : f32 to vector<4x128xf32>
    %38 = arith.mulf %37, %36 : vector<4x128xf32>
    %cst_13 = arith.constant 5.000000e-01 : f32
    %39 = vector.broadcast %cst_13 : f32 to vector<4x128xf32>
    %40 = arith.addf %39, %38 : vector<4x128xf32>
    %cst_14 = arith.constant 5.000000e-01 : f32
    %41 = vector.broadcast %cst_14 : f32 to vector<4x128xf32>
    %42 = arith.mulf %41, %2 : vector<4x128xf32>
    %43 = math.tanh %42 : vector<4x128xf32>
    %cst_15 = arith.constant 5.000000e-01 : f32
    %44 = vector.broadcast %cst_15 : f32 to vector<4x128xf32>
    %45 = arith.mulf %44, %43 : vector<4x128xf32>
    %cst_16 = arith.constant 5.000000e-01 : f32
    %46 = vector.broadcast %cst_16 : f32 to vector<4x128xf32>
    %47 = arith.addf %46, %45 : vector<4x128xf32>
    %cst_17 = arith.constant 5.000000e-01 : f32
    %48 = vector.broadcast %cst_17 : f32 to vector<4x128xf32>
    %49 = arith.mulf %48, %4 : vector<4x128xf32>
    %50 = math.tanh %49 : vector<4x128xf32>
    %cst_18 = arith.constant 5.000000e-01 : f32
    %51 = vector.broadcast %cst_18 : f32 to vector<4x128xf32>
    %52 = arith.mulf %51, %50 : vector<4x128xf32>
    %cst_19 = arith.constant 5.000000e-01 : f32
    %53 = vector.broadcast %cst_19 : f32 to vector<4x128xf32>
    %54 = arith.addf %53, %52 : vector<4x128xf32>
    %55 = vector.extract_strided_slice %0 {offsets = [0, 0], sizes = [4, 8], strides = [1, 1]} : vector<4x128xf32> to vector<4x8xf32>
    %56 = vector.extract_strided_slice %31 {offsets = [0, 0], sizes = [4, 8], strides = [1, 1]} : vector<4x128xf32> to vector<4x8xf32>
    %57 = vector.extract_strided_slice %32 {offsets = [0, 0], sizes = [4, 8], strides = [1, 1]} : vector<4x128xf32> to vector<4x8xf32>
    %58 = vector.extract_strided_slice %33 {offsets = [0, 0], sizes = [4, 8], strides = [1, 1]} : vector<4x128xf32> to vector<4x8xf32>
    %59 = vector.extract_strided_slice %40 {offsets = [0, 0], sizes = [4, 8], strides = [1, 1]} : vector<4x128xf32> to vector<4x8xf32>
    %60 = vector.extract_strided_slice %47 {offsets = [0, 0], sizes = [4, 8], strides = [1, 1]} : vector<4x128xf32> to vector<4x8xf32>
    %61 = vector.extract_strided_slice %54 {offsets = [0, 0], sizes = [4, 8], strides = [1, 1]} : vector<4x128xf32> to vector<4x8xf32>
    %62 = vector.extract_strided_slice %2 {offsets = [0, 0], sizes = [4, 8], strides = [1, 1]} : vector<4x128xf32> to vector<4x8xf32>
    %63 = vector.extract_strided_slice %4 {offsets = [0, 0], sizes = [4, 8], strides = [1, 1]} : vector<4x128xf32> to vector<4x8xf32>
    %64 = vector.extract_strided_slice %27 {offsets = [0, 0], sizes = [4, 8], strides = [1, 1]} : vector<4x128xf32> to vector<4x8xf32>
    %65 = vector.extract_strided_slice %30 {offsets = [0, 0], sizes = [4, 8], strides = [1, 1]} : vector<4x128xf32> to vector<4x8xf32>
    %66 = vector.extract_strided_slice %19 {offsets = [0, 0], sizes = [4, 8], strides = [1, 1]} : vector<4x128xf32> to vector<4x8xf32>
    %67 = vector.extract_strided_slice %24 {offsets = [0, 0], sizes = [4, 8], strides = [1, 1]} : vector<4x128xf32> to vector<4x8xf32>
    %68 = vector.extract_strided_slice %7 {offsets = [0, 0], sizes = [4, 8], strides = [1, 1]} : vector<4x128xf32> to vector<4x8xf32>
    %69 = vector.extract_strided_slice %8 {offsets = [0, 0], sizes = [4, 8], strides = [1, 1]} : vector<4x128xf32> to vector<4x8xf32>
    %70 = vector.extract_strided_slice %11 {offsets = [0, 0], sizes = [4, 8], strides = [1, 1]} : vector<4x128xf32> to vector<4x8xf32>
    %71 = vector.extract_strided_slice %16 {offsets = [0, 0], sizes = [4, 8], strides = [1, 1]} : vector<4x128xf32> to vector<4x8xf32>
    %72 = tpu.concatenate %55, %56, %57, %58, %59, %60, %61, %62, %63, %64, %65, %66, %67, %68, %69, %70 in 1 : vector<4x8xf32>, vector<4x8xf32>, vector<4x8xf32>, vector<4x8xf32>, vector<4x8xf32>, vector<4x8xf32>, vector<4x8xf32>, vector<4x8xf32>, vector<4x8xf32>, vector<4x8xf32>, vector<4x8xf32>, vector<4x8xf32>, vector<4x8xf32>, vector<4x8xf32>, vector<4x8xf32>, vector<4x8xf32> -> vector<4x128xf32>
    %73 = tpu.concatenate %72, %71 in 1 : vector<4x128xf32>, vector<4x8xf32> -> vector<4x136xf32>
    %c0_20 = arith.constant 0 : index
    %c0_21 = arith.constant 0 : index
    %74 = vector.load %arg2[%c0_20, %c0_21] : memref<4x2176xf32, #tpu.memory_space<vmem>>, vector<4x136xf32>
    tpu.vector_store %arg2[%c0_20, %c0_21], %73 {strides = array<i32>} : memref<4x2176xf32, #tpu.memory_space<vmem>>, vector<4x136xf32>,
    %75 = vector.extract_strided_slice %0 {offsets = [0, 8], sizes = [4, 8], strides = [1, 1]} : vector<4x128xf32> to vector<4x8xf32>
    %76 = vector.extract_strided_slice %31 {offsets = [0, 8], sizes = [4, 8], strides = [1, 1]} : vector<4x128xf32> to vector<4x8xf32>
    %77 = vector.extract_strided_slice %32 {offsets = [0, 8], sizes = [4, 8], strides = [1, 1]} : vector<4x128xf32> to vector<4x8xf32>
    %78 = vector.extract_strided_slice %33 {offsets = [0, 8], sizes = [4, 8], strides = [1, 1]} : vector<4x128xf32> to vector<4x8xf32>
    %79 = vector.extract_strided_slice %40 {offsets = [0, 8], sizes = [4, 8], strides = [1, 1]} : vector<4x128xf32> to vector<4x8xf32>
    %80 = vector.extract_strided_slice %47 {offsets = [0, 8], sizes = [4, 8], strides = [1, 1]} : vector<4x128xf32> to vector<4x8xf32>
    %81 = vector.extract_strided_slice %54 {offsets = [0, 8], sizes = [4, 8], strides = [1, 1]} : vector<4x128xf32> to vector<4x8xf32>
    %82 = vector.extract_strided_slice %2 {offsets = [0, 8], sizes = [4, 8], strides = [1, 1]} : vector<4x128xf32> to vector<4x8xf32>
    %83 = vector.extract_strided_slice %4 {offsets = [0, 8], sizes = [4, 8], strides = [1, 1]} : vector<4x128xf32> to vector<4x8xf32>
    %84 = vector.extract_strided_slice %27 {offsets = [0, 8], sizes = [4, 8], strides = [1, 1]} : vector<4x128xf32> to vector<4x8xf32>
    %85 = vector.extract_strided_slice %30 {offsets = [0, 8], sizes = [4, 8], strides = [1, 1]} : vector<4x128xf32> to vector<4x8xf32>
    %86 = vector.extract_strided_slice %19 {offsets = [0, 8], sizes = [4, 8], strides = [1, 1]} : vector<4x128xf32> to vector<4x8xf32>
    %87 = vector.extract_strided_slice %24 {offsets = [0, 8], sizes = [4, 8], strides = [1, 1]} : vector<4x128xf32> to vector<4x8xf32>
    %88 = vector.extract_strided_slice %7 {offsets = [0, 8], sizes = [4, 8], strides = [1, 1]} : vector<4x128xf32> to vector<4x8xf32>
    %89 = vector.extract_strided_slice %8 {offsets = [0, 8], sizes = [4, 8], strides = [1, 1]} : vector<4x128xf32> to vector<4x8xf32>
    %90 = vector.extract_strided_slice %11 {offsets = [0, 8], sizes = [4, 8], strides = [1, 1]} : vector<4x128xf32> to vector<4x8xf32>
    %91 = vector.extract_strided_slice %16 {offsets = [0, 8], sizes = [4, 8], strides = [1, 1]} : vector<4x128xf32> to vector<4x8xf32>
    %92 = tpu.concatenate %75, %76, %77, %78, %79, %80, %81, %82, %83, %84, %85, %86, %87, %88, %89, %90 in 1 : vector<4x8xf32>, vector<4x8xf32>, vector<4x8xf32>, vector<4x8xf32>, vector<4x8xf32>, vector<4x8xf32>, vector<4x8xf32>, vector<4x8xf32>, vector<4x8xf32>, vector<4x8xf32>, vector<4x8xf32>, vector<4x8xf32>, vector<4x8xf32>, vector<4x8xf32>, vector<4x8xf32>, vector<4x8xf32> -> vector<4x128xf32>
    %93 = tpu.concatenate %92, %91 in 1 : vector<4x128xf32>, vector<4x8xf32> -> vector<4x136xf32>
    %c0_22 = arith.constant 0 : index
    %c136 = arith.constant 136 : index
    %94 = vector.load %arg2[%c0_22, %c136] : memref<4x2176xf32, #tpu.memory_space<vmem>>, vector<4x136xf32>
    tpu.vector_store %arg2[%c0_22, %c136], %93 {strides = array<i32>} : memref<4x2176xf32, #tpu.memory_space<vmem>>, vector<4x136xf32>,
    %95 = vector.extract_strided_slice %0 {offsets = [0, 16], sizes = [4, 8], strides = [1, 1]} : vector<4x128xf32> to vector<4x8xf32>
    %96 = vector.extract_strided_slice %31 {offsets = [0, 16], sizes = [4, 8], strides = [1, 1]} : vector<4x128xf32> to vector<4x8xf32>
    %97 = vector.extract_strided_slice %32 {offsets = [0, 16], sizes = [4, 8], strides = [1, 1]} : vector<4x128xf32> to vector<4x8xf32>
    %98 = vector.extract_strided_slice %33 {offsets = [0, 16], sizes = [4, 8], strides = [1, 1]} : vector<4x128xf32> to vector<4x8xf32>
    %99 = vector.extract_strided_slice %40 {offsets = [0, 16], sizes = [4, 8], strides = [1, 1]} : vector<4x128xf32> to vector<4x8xf32>
    %100 = vector.extract_strided_slice %47 {offsets = [0, 16], sizes = [4, 8], strides = [1, 1]} : vector<4x128xf32> to vector<4x8xf32>
    %101 = vector.extract_strided_slice %54 {offsets = [0, 16], sizes = [4, 8], strides = [1, 1]} : vector<4x128xf32> to vector<4x8xf32>
    %102 = vector.extract_strided_slice %2 {offsets = [0, 16], sizes = [4, 8], strides = [1, 1]} : vector<4x128xf32> to vector<4x8xf32>
    %103 = vector.extract_strided_slice %4 {offsets = [0, 16], sizes = [4, 8], strides = [1, 1]} : vector<4x128xf32> to vector<4x8xf32>
    %104 = vector.extract_strided_slice %27 {offsets = [0, 16], sizes = [4, 8], strides = [1, 1]} : vector<4x128xf32> to vector<4x8xf32>
    %105 = vector.extract_strided_slice %30 {offsets = [0, 16], sizes = [4, 8], strides = [1, 1]} : vector<4x128xf32> to vector<4x8xf32>
    %106 = vector.extract_strided_slice %19 {offsets = [0, 16], sizes = [4, 8], strides = [1, 1]} : vector<4x128xf32> to vector<4x8xf32>
    %107 = vector.extract_strided_slice %24 {offsets = [0, 16], sizes = [4, 8], strides = [1, 1]} : vector<4x128xf32> to vector<4x8xf32>
    %108 = vector.extract_strided_slice %7 {offsets = [0, 16], sizes = [4, 8], strides = [1, 1]} : vector<4x128xf32> to vector<4x8xf32>
    %109 = vector.extract_strided_slice %8 {offsets = [0, 16], sizes = [4, 8], strides = [1, 1]} : vector<4x128xf32> to vector<4x8xf32>
    %110 = vector.extract_strided_slice %11 {offsets = [0, 16], sizes = [4, 8], strides = [1, 1]} : vector<4x128xf32> to vector<4x8xf32>
    %111 = vector.extract_strided_slice %16 {offsets = [0, 16], sizes = [4, 8], strides = [1, 1]} : vector<4x128xf32> to vector<4x8xf32>
    %112 = tpu.concatenate %95, %96, %97, %98, %99, %100, %101, %102, %103, %104, %105, %106, %107, %108, %109, %110 in 1 : vector<4x8xf32>, vector<4x8xf32>, vector<4x8xf32>, vector<4x8xf32>, vector<4x8xf32>, vector<4x8xf32>, vector<4x8xf32>, vector<4x8xf32>, vector<4x8xf32>, vector<4x8xf32>, vector<4x8xf32>, vector<4x8xf32>, vector<4x8xf32>, vector<4x8xf32>, vector<4x8xf32>, vector<4x8xf32> -> vector<4x128xf32>
    %113 = tpu.concatenate %112, %111 in 1 : vector<4x128xf32>, vector<4x8xf32> -> vector<4x136xf32>
    %c0_23 = arith.constant 0 : index
    %c272 = arith.constant 272 : index
    %114 = vector.load %arg2[%c0_23, %c272] : memref<4x2176xf32, #tpu.memory_space<vmem>>, vector<4x136xf32>
    tpu.vector_store %arg2[%c0_23, %c272], %113 {strides = array<i32>} : memref<4x2176xf32, #tpu.memory_space<vmem>>, vector<4x136xf32>,
    %115 = vector.extract_strided_slice %0 {offsets = [0, 24], sizes = [4, 8], strides = [1, 1]} : vector<4x128xf32> to vector<4x8xf32>
    %116 = vector.extract_strided_slice %31 {offsets = [0, 24], sizes = [4, 8], strides = [1, 1]} : vector<4x128xf32> to vector<4x8xf32>
    %117 = vector.extract_strided_slice %32 {offsets = [0, 24], sizes = [4, 8], strides = [1, 1]} : vector<4x128xf32> to vector<4x8xf32>
    %118 = vector.extract_strided_slice %33 {offsets = [0, 24], sizes = [4, 8], strides = [1, 1]} : vector<4x128xf32> to vector<4x8xf32>
    %119 = vector.extract_strided_slice %40 {offsets = [0, 24], sizes = [4, 8], strides = [1, 1]} : vector<4x128xf32> to vector<4x8xf32>
    %120 = vector.extract_strided_slice %47 {offsets = [0, 24], sizes = [4, 8], strides = [1, 1]} : vector<4x128xf32> to vector<4x8xf32>
    %121 = vector.extract_strided_slice %54 {offsets = [0, 24], sizes = [4, 8], strides = [1, 1]} : vector<4x128xf32> to vector<4x8xf32>
    %122 = vector.extract_strided_slice %2 {offsets = [0, 24], sizes = [4, 8], strides = [1, 1]} : vector<4x128xf32> to vector<4x8xf32>
    %123 = vector.extract_strided_slice %4 {offsets = [0, 24], sizes = [4, 8], strides = [1, 1]} : vector<4x128xf32> to vector<4x8xf32>
    %124 = vector.extract_strided_slice %27 {offsets = [0, 24], sizes = [4, 8], strides = [1, 1]} : vector<4x128xf32> to vector<4x8xf32>
    %125 = vector.extract_strided_slice %30 {offsets = [0, 24], sizes = [4, 8], strides = [1, 1]} : vector<4x128xf32> to vector<4x8xf32>
    %126 = vector.extract_strided_slice %19 {offsets = [0, 24], sizes = [4, 8], strides = [1, 1]} : vector<4x128xf32> to vector<4x8xf32>
    %127 = vector.extract_strided_slice %24 {offsets = [0, 24], sizes = [4, 8], strides = [1, 1]} : vector<4x128xf32> to vector<4x8xf32>
    %128 = vector.extract_strided_slice %7 {offsets = [0, 24], sizes = [4, 8], strides = [1, 1]} : vector<4x128xf32> to vector<4x8xf32>
    %129 = vector.extract_strided_slice %8 {offsets = [0, 24], sizes = [4, 8], strides = [1, 1]} : vector<4x128xf32> to vector<4x8xf32>
    %130 = vector.extract_strided_slice %11 {offsets = [0, 24], sizes = [4, 8], strides = [1, 1]} : vector<4x128xf32> to vector<4x8xf32>
    %131 = vector.extract_strided_slice %16 {offsets = [0, 24], sizes = [4, 8], strides = [1, 1]} : vector<4x128xf32> to vector<4x8xf32>
    %132 = tpu.concatenate %115, %116, %117, %118, %119, %120, %121, %122, %123, %124, %125, %126, %127, %128, %129, %130 in 1 : vector<4x8xf32>, vector<4x8xf32>, vector<4x8xf32>, vector<4x8xf32>, vector<4x8xf32>, vector<4x8xf32>, vector<4x8xf32>, vector<4x8xf32>, vector<4x8xf32>, vector<4x8xf32>, vector<4x8xf32>, vector<4x8xf32>, vector<4x8xf32>, vector<4x8xf32>, vector<4x8xf32>, vector<4x8xf32> -> vector<4x128xf32>
    %133 = tpu.concatenate %132, %131 in 1 : vector<4x128xf32>, vector<4x8xf32> -> vector<4x136xf32>
    %c0_24 = arith.constant 0 : index
    %c408 = arith.constant 408 : index
    %134 = vector.load %arg2[%c0_24, %c408] : memref<4x2176xf32, #tpu.memory_space<vmem>>, vector<4x136xf32>
    tpu.vector_store %arg2[%c0_24, %c408], %133 {strides = array<i32>} : memref<4x2176xf32, #tpu.memory_space<vmem>>, vector<4x136xf32>,
    %135 = vector.extract_strided_slice %0 {offsets = [0, 32], sizes = [4, 8], strides = [1, 1]} : vector<4x128xf32> to vector<4x8xf32>
    %136 = vector.extract_strided_slice %31 {offsets = [0, 32], sizes = [4, 8], strides = [1, 1]} : vector<4x128xf32> to vector<4x8xf32>
    %137 = vector.extract_strided_slice %32 {offsets = [0, 32], sizes = [4, 8], strides = [1, 1]} : vector<4x128xf32> to vector<4x8xf32>
    %138 = vector.extract_strided_slice %33 {offsets = [0, 32], sizes = [4, 8], strides = [1, 1]} : vector<4x128xf32> to vector<4x8xf32>
    %139 = vector.extract_strided_slice %40 {offsets = [0, 32], sizes = [4, 8], strides = [1, 1]} : vector<4x128xf32> to vector<4x8xf32>
    %140 = vector.extract_strided_slice %47 {offsets = [0, 32], sizes = [4, 8], strides = [1, 1]} : vector<4x128xf32> to vector<4x8xf32>
    %141 = vector.extract_strided_slice %54 {offsets = [0, 32], sizes = [4, 8], strides = [1, 1]} : vector<4x128xf32> to vector<4x8xf32>
    %142 = vector.extract_strided_slice %2 {offsets = [0, 32], sizes = [4, 8], strides = [1, 1]} : vector<4x128xf32> to vector<4x8xf32>
    %143 = vector.extract_strided_slice %4 {offsets = [0, 32], sizes = [4, 8], strides = [1, 1]} : vector<4x128xf32> to vector<4x8xf32>
    %144 = vector.extract_strided_slice %27 {offsets = [0, 32], sizes = [4, 8], strides = [1, 1]} : vector<4x128xf32> to vector<4x8xf32>
    %145 = vector.extract_strided_slice %30 {offsets = [0, 32], sizes = [4, 8], strides = [1, 1]} : vector<4x128xf32> to vector<4x8xf32>
    %146 = vector.extract_strided_slice %19 {offsets = [0, 32], sizes = [4, 8], strides = [1, 1]} : vector<4x128xf32> to vector<4x8xf32>
    %147 = vector.extract_strided_slice %24 {offsets = [0, 32], sizes = [4, 8], strides = [1, 1]} : vector<4x128xf32> to vector<4x8xf32>
    %148 = vector.extract_strided_slice %7 {offsets = [0, 32], sizes = [4, 8], strides = [1, 1]} : vector<4x128xf32> to vector<4x8xf32>
    %149 = vector.extract_strided_slice %8 {offsets = [0, 32], sizes = [4, 8], strides = [1, 1]} : vector<4x128xf32> to vector<4x8xf32>
    %150 = vector.extract_strided_slice %11 {offsets = [0, 32], sizes = [4, 8], strides = [1, 1]} : vector<4x128xf32> to vector<4x8xf32>
    %151 = vector.extract_strided_slice %16 {offsets = [0, 32], sizes = [4, 8], strides = [1, 1]} : vector<4x128xf32> to vector<4x8xf32>
    %152 = tpu.concatenate %135, %136, %137, %138, %139, %140, %141, %142, %143, %144, %145, %146, %147, %148, %149, %150 in 1 : vector<4x8xf32>, vector<4x8xf32>, vector<4x8xf32>, vector<4x8xf32>, vector<4x8xf32>, vector<4x8xf32>, vector<4x8xf32>, vector<4x8xf32>, vector<4x8xf32>, vector<4x8xf32>, vector<4x8xf32>, vector<4x8xf32>, vector<4x8xf32>, vector<4x8xf32>, vector<4x8xf32>, vector<4x8xf32> -> vector<4x128xf32>
    %153 = tpu.concatenate %152, %151 in 1 : vector<4x128xf32>, vector<4x8xf32> -> vector<4x136xf32>
    %c0_25 = arith.constant 0 : index
    %c544 = arith.constant 544 : index
    %154 = vector.load %arg2[%c0_25, %c544] : memref<4x2176xf32, #tpu.memory_space<vmem>>, vector<4x136xf32>
    tpu.vector_store %arg2[%c0_25, %c544], %153 {strides = array<i32>} : memref<4x2176xf32, #tpu.memory_space<vmem>>, vector<4x136xf32>,
    %155 = vector.extract_strided_slice %0 {offsets = [0, 40], sizes = [4, 8], strides = [1, 1]} : vector<4x128xf32> to vector<4x8xf32>
    %156 = vector.extract_strided_slice %31 {offsets = [0, 40], sizes = [4, 8], strides = [1, 1]} : vector<4x128xf32> to vector<4x8xf32>
    %157 = vector.extract_strided_slice %32 {offsets = [0, 40], sizes = [4, 8], strides = [1, 1]} : vector<4x128xf32> to vector<4x8xf32>
    %158 = vector.extract_strided_slice %33 {offsets = [0, 40], sizes = [4, 8], strides = [1, 1]} : vector<4x128xf32> to vector<4x8xf32>
    %159 = vector.extract_strided_slice %40 {offsets = [0, 40], sizes = [4, 8], strides = [1, 1]} : vector<4x128xf32> to vector<4x8xf32>
    %160 = vector.extract_strided_slice %47 {offsets = [0, 40], sizes = [4, 8], strides = [1, 1]} : vector<4x128xf32> to vector<4x8xf32>
    %161 = vector.extract_strided_slice %54 {offsets = [0, 40], sizes = [4, 8], strides = [1, 1]} : vector<4x128xf32> to vector<4x8xf32>
    %162 = vector.extract_strided_slice %2 {offsets = [0, 40], sizes = [4, 8], strides = [1, 1]} : vector<4x128xf32> to vector<4x8xf32>
    %163 = vector.extract_strided_slice %4 {offsets = [0, 40], sizes = [4, 8], strides = [1, 1]} : vector<4x128xf32> to vector<4x8xf32>
    %164 = vector.extract_strided_slice %27 {offsets = [0, 40], sizes = [4, 8], strides = [1, 1]} : vector<4x128xf32> to vector<4x8xf32>
    %165 = vector.extract_strided_slice %30 {offsets = [0, 40], sizes = [4, 8], strides = [1, 1]} : vector<4x128xf32> to vector<4x8xf32>
    %166 = vector.extract_strided_slice %19 {offsets = [0, 40], sizes = [4, 8], strides = [1, 1]} : vector<4x128xf32> to vector<4x8xf32>
    %167 = vector.extract_strided_slice %24 {offsets = [0, 40], sizes = [4, 8], strides = [1, 1]} : vector<4x128xf32> to vector<4x8xf32>
    %168 = vector.extract_strided_slice %7 {offsets = [0, 40], sizes = [4, 8], strides = [1, 1]} : vector<4x128xf32> to vector<4x8xf32>
    %169 = vector.extract_strided_slice %8 {offsets = [0, 40], sizes = [4, 8], strides = [1, 1]} : vector<4x128xf32> to vector<4x8xf32>
    %170 = vector.extract_strided_slice %11 {offsets = [0, 40], sizes = [4, 8], strides = [1, 1]} : vector<4x128xf32> to vector<4x8xf32>
    %171 = vector.extract_strided_slice %16 {offsets = [0, 40], sizes = [4, 8], strides = [1, 1]} : vector<4x128xf32> to vector<4x8xf32>
    %172 = tpu.concatenate %155, %156, %157, %158, %159, %160, %161, %162, %163, %164, %165, %166, %167, %168, %169, %170 in 1 : vector<4x8xf32>, vector<4x8xf32>, vector<4x8xf32>, vector<4x8xf32>, vector<4x8xf32>, vector<4x8xf32>, vector<4x8xf32>, vector<4x8xf32>, vector<4x8xf32>, vector<4x8xf32>, vector<4x8xf32>, vector<4x8xf32>, vector<4x8xf32>, vector<4x8xf32>, vector<4x8xf32>, vector<4x8xf32> -> vector<4x128xf32>
    %173 = tpu.concatenate %172, %171 in 1 : vector<4x128xf32>, vector<4x8xf32> -> vector<4x136xf32>
    %c0_26 = arith.constant 0 : index
    %c680 = arith.constant 680 : index
    %174 = vector.load %arg2[%c0_26, %c680] : memref<4x2176xf32, #tpu.memory_space<vmem>>, vector<4x136xf32>
    tpu.vector_store %arg2[%c0_26, %c680], %173 {strides = array<i32>} : memref<4x2176xf32, #tpu.memory_space<vmem>>, vector<4x136xf32>,
    %175 = vector.extract_strided_slice %0 {offsets = [0, 48], sizes = [4, 8], strides = [1, 1]} : vector<4x128xf32> to vector<4x8xf32>
    %176 = vector.extract_strided_slice %31 {offsets = [0, 48], sizes = [4, 8], strides = [1, 1]} : vector<4x128xf32> to vector<4x8xf32>
    %177 = vector.extract_strided_slice %32 {offsets = [0, 48], sizes = [4, 8], strides = [1, 1]} : vector<4x128xf32> to vector<4x8xf32>
    %178 = vector.extract_strided_slice %33 {offsets = [0, 48], sizes = [4, 8], strides = [1, 1]} : vector<4x128xf32> to vector<4x8xf32>
    %179 = vector.extract_strided_slice %40 {offsets = [0, 48], sizes = [4, 8], strides = [1, 1]} : vector<4x128xf32> to vector<4x8xf32>
    %180 = vector.extract_strided_slice %47 {offsets = [0, 48], sizes = [4, 8], strides = [1, 1]} : vector<4x128xf32> to vector<4x8xf32>
    %181 = vector.extract_strided_slice %54 {offsets = [0, 48], sizes = [4, 8], strides = [1, 1]} : vector<4x128xf32> to vector<4x8xf32>
    %182 = vector.extract_strided_slice %2 {offsets = [0, 48], sizes = [4, 8], strides = [1, 1]} : vector<4x128xf32> to vector<4x8xf32>
    %183 = vector.extract_strided_slice %4 {offsets = [0, 48], sizes = [4, 8], strides = [1, 1]} : vector<4x128xf32> to vector<4x8xf32>
    %184 = vector.extract_strided_slice %27 {offsets = [0, 48], sizes = [4, 8], strides = [1, 1]} : vector<4x128xf32> to vector<4x8xf32>
    %185 = vector.extract_strided_slice %30 {offsets = [0, 48], sizes = [4, 8], strides = [1, 1]} : vector<4x128xf32> to vector<4x8xf32>
    %186 = vector.extract_strided_slice %19 {offsets = [0, 48], sizes = [4, 8], strides = [1, 1]} : vector<4x128xf32> to vector<4x8xf32>
    %187 = vector.extract_strided_slice %24 {offsets = [0, 48], sizes = [4, 8], strides = [1, 1]} : vector<4x128xf32> to vector<4x8xf32>
    %188 = vector.extract_strided_slice %7 {offsets = [0, 48], sizes = [4, 8], strides = [1, 1]} : vector<4x128xf32> to vector<4x8xf32>
    %189 = vector.extract_strided_slice %8 {offsets = [0, 48], sizes = [4, 8], strides = [1, 1]} : vector<4x128xf32> to vector<4x8xf32>
    %190 = vector.extract_strided_slice %11 {offsets = [0, 48], sizes = [4, 8], strides = [1, 1]} : vector<4x128xf32> to vector<4x8xf32>
    %191 = vector.extract_strided_slice %16 {offsets = [0, 48], sizes = [4, 8], strides = [1, 1]} : vector<4x128xf32> to vector<4x8xf32>
    %192 = tpu.concatenate %175, %176, %177, %178, %179, %180, %181, %182, %183, %184, %185, %186, %187, %188, %189, %190 in 1 : vector<4x8xf32>, vector<4x8xf32>, vector<4x8xf32>, vector<4x8xf32>, vector<4x8xf32>, vector<4x8xf32>, vector<4x8xf32>, vector<4x8xf32>, vector<4x8xf32>, vector<4x8xf32>, vector<4x8xf32>, vector<4x8xf32>, vector<4x8xf32>, vector<4x8xf32>, vector<4x8xf32>, vector<4x8xf32> -> vector<4x128xf32>
    %193 = tpu.concatenate %192, %191 in 1 : vector<4x128xf32>, vector<4x8xf32> -> vector<4x136xf32>
    %c0_27 = arith.constant 0 : index
    %c816 = arith.constant 816 : index
    %194 = vector.load %arg2[%c0_27, %c816] : memref<4x2176xf32, #tpu.memory_space<vmem>>, vector<4x136xf32>
    tpu.vector_store %arg2[%c0_27, %c816], %193 {strides = array<i32>} : memref<4x2176xf32, #tpu.memory_space<vmem>>, vector<4x136xf32>,
    %195 = vector.extract_strided_slice %0 {offsets = [0, 56], sizes = [4, 8], strides = [1, 1]} : vector<4x128xf32> to vector<4x8xf32>
    %196 = vector.extract_strided_slice %31 {offsets = [0, 56], sizes = [4, 8], strides = [1, 1]} : vector<4x128xf32> to vector<4x8xf32>
    %197 = vector.extract_strided_slice %32 {offsets = [0, 56], sizes = [4, 8], strides = [1, 1]} : vector<4x128xf32> to vector<4x8xf32>
    %198 = vector.extract_strided_slice %33 {offsets = [0, 56], sizes = [4, 8], strides = [1, 1]} : vector<4x128xf32> to vector<4x8xf32>
    %199 = vector.extract_strided_slice %40 {offsets = [0, 56], sizes = [4, 8], strides = [1, 1]} : vector<4x128xf32> to vector<4x8xf32>
    %200 = vector.extract_strided_slice %47 {offsets = [0, 56], sizes = [4, 8], strides = [1, 1]} : vector<4x128xf32> to vector<4x8xf32>
    %201 = vector.extract_strided_slice %54 {offsets = [0, 56], sizes = [4, 8], strides = [1, 1]} : vector<4x128xf32> to vector<4x8xf32>
    %202 = vector.extract_strided_slice %2 {offsets = [0, 56], sizes = [4, 8], strides = [1, 1]} : vector<4x128xf32> to vector<4x8xf32>
    %203 = vector.extract_strided_slice %4 {offsets = [0, 56], sizes = [4, 8], strides = [1, 1]} : vector<4x128xf32> to vector<4x8xf32>
    %204 = vector.extract_strided_slice %27 {offsets = [0, 56], sizes = [4, 8], strides = [1, 1]} : vector<4x128xf32> to vector<4x8xf32>
    %205 = vector.extract_strided_slice %30 {offsets = [0, 56], sizes = [4, 8], strides = [1, 1]} : vector<4x128xf32> to vector<4x8xf32>
    %206 = vector.extract_strided_slice %19 {offsets = [0, 56], sizes = [4, 8], strides = [1, 1]} : vector<4x128xf32> to vector<4x8xf32>
    %207 = vector.extract_strided_slice %24 {offsets = [0, 56], sizes = [4, 8], strides = [1, 1]} : vector<4x128xf32> to vector<4x8xf32>
    %208 = vector.extract_strided_slice %7 {offsets = [0, 56], sizes = [4, 8], strides = [1, 1]} : vector<4x128xf32> to vector<4x8xf32>
    %209 = vector.extract_strided_slice %8 {offsets = [0, 56], sizes = [4, 8], strides = [1, 1]} : vector<4x128xf32> to vector<4x8xf32>
    %210 = vector.extract_strided_slice %11 {offsets = [0, 56], sizes = [4, 8], strides = [1, 1]} : vector<4x128xf32> to vector<4x8xf32>
    %211 = vector.extract_strided_slice %16 {offsets = [0, 56], sizes = [4, 8], strides = [1, 1]} : vector<4x128xf32> to vector<4x8xf32>
    %212 = tpu.concatenate %195, %196, %197, %198, %199, %200, %201, %202, %203, %204, %205, %206, %207, %208, %209, %210 in 1 : vector<4x8xf32>, vector<4x8xf32>, vector<4x8xf32>, vector<4x8xf32>, vector<4x8xf32>, vector<4x8xf32>, vector<4x8xf32>, vector<4x8xf32>, vector<4x8xf32>, vector<4x8xf32>, vector<4x8xf32>, vector<4x8xf32>, vector<4x8xf32>, vector<4x8xf32>, vector<4x8xf32>, vector<4x8xf32> -> vector<4x128xf32>
    %213 = tpu.concatenate %212, %211 in 1 : vector<4x128xf32>, vector<4x8xf32> -> vector<4x136xf32>
    %c0_28 = arith.constant 0 : index
    %c952 = arith.constant 952 : index
    %214 = vector.load %arg2[%c0_28, %c952] : memref<4x2176xf32, #tpu.memory_space<vmem>>, vector<4x136xf32>
    tpu.vector_store %arg2[%c0_28, %c952], %213 {strides = array<i32>} : memref<4x2176xf32, #tpu.memory_space<vmem>>, vector<4x136xf32>,
    %215 = vector.extract_strided_slice %0 {offsets = [0, 64], sizes = [4, 8], strides = [1, 1]} : vector<4x128xf32> to vector<4x8xf32>
    %216 = vector.extract_strided_slice %31 {offsets = [0, 64], sizes = [4, 8], strides = [1, 1]} : vector<4x128xf32> to vector<4x8xf32>
    %217 = vector.extract_strided_slice %32 {offsets = [0, 64], sizes = [4, 8], strides = [1, 1]} : vector<4x128xf32> to vector<4x8xf32>
    %218 = vector.extract_strided_slice %33 {offsets = [0, 64], sizes = [4, 8], strides = [1, 1]} : vector<4x128xf32> to vector<4x8xf32>
    %219 = vector.extract_strided_slice %40 {offsets = [0, 64], sizes = [4, 8], strides = [1, 1]} : vector<4x128xf32> to vector<4x8xf32>
    %220 = vector.extract_strided_slice %47 {offsets = [0, 64], sizes = [4, 8], strides = [1, 1]} : vector<4x128xf32> to vector<4x8xf32>
    %221 = vector.extract_strided_slice %54 {offsets = [0, 64], sizes = [4, 8], strides = [1, 1]} : vector<4x128xf32> to vector<4x8xf32>
    %222 = vector.extract_strided_slice %2 {offsets = [0, 64], sizes = [4, 8], strides = [1, 1]} : vector<4x128xf32> to vector<4x8xf32>
    %223 = vector.extract_strided_slice %4 {offsets = [0, 64], sizes = [4, 8], strides = [1, 1]} : vector<4x128xf32> to vector<4x8xf32>
    %224 = vector.extract_strided_slice %27 {offsets = [0, 64], sizes = [4, 8], strides = [1, 1]} : vector<4x128xf32> to vector<4x8xf32>
    %225 = vector.extract_strided_slice %30 {offsets = [0, 64], sizes = [4, 8], strides = [1, 1]} : vector<4x128xf32> to vector<4x8xf32>
    %226 = vector.extract_strided_slice %19 {offsets = [0, 64], sizes = [4, 8], strides = [1, 1]} : vector<4x128xf32> to vector<4x8xf32>
    %227 = vector.extract_strided_slice %24 {offsets = [0, 64], sizes = [4, 8], strides = [1, 1]} : vector<4x128xf32> to vector<4x8xf32>
    %228 = vector.extract_strided_slice %7 {offsets = [0, 64], sizes = [4, 8], strides = [1, 1]} : vector<4x128xf32> to vector<4x8xf32>
    %229 = vector.extract_strided_slice %8 {offsets = [0, 64], sizes = [4, 8], strides = [1, 1]} : vector<4x128xf32> to vector<4x8xf32>
    %230 = vector.extract_strided_slice %11 {offsets = [0, 64], sizes = [4, 8], strides = [1, 1]} : vector<4x128xf32> to vector<4x8xf32>
    %231 = vector.extract_strided_slice %16 {offsets = [0, 64], sizes = [4, 8], strides = [1, 1]} : vector<4x128xf32> to vector<4x8xf32>
    %232 = tpu.concatenate %215, %216, %217, %218, %219, %220, %221, %222, %223, %224, %225, %226, %227, %228, %229, %230 in 1 : vector<4x8xf32>, vector<4x8xf32>, vector<4x8xf32>, vector<4x8xf32>, vector<4x8xf32>, vector<4x8xf32>, vector<4x8xf32>, vector<4x8xf32>, vector<4x8xf32>, vector<4x8xf32>, vector<4x8xf32>, vector<4x8xf32>, vector<4x8xf32>, vector<4x8xf32>, vector<4x8xf32>, vector<4x8xf32> -> vector<4x128xf32>
    %233 = tpu.concatenate %232, %231 in 1 : vector<4x128xf32>, vector<4x8xf32> -> vector<4x136xf32>
    %c0_29 = arith.constant 0 : index
    %c1088 = arith.constant 1088 : index
    %234 = vector.load %arg2[%c0_29, %c1088] : memref<4x2176xf32, #tpu.memory_space<vmem>>, vector<4x136xf32>
    tpu.vector_store %arg2[%c0_29, %c1088], %233 {strides = array<i32>} : memref<4x2176xf32, #tpu.memory_space<vmem>>, vector<4x136xf32>,
    %235 = vector.extract_strided_slice %0 {offsets = [0, 72], sizes = [4, 8], strides = [1, 1]} : vector<4x128xf32> to vector<4x8xf32>
    %236 = vector.extract_strided_slice %31 {offsets = [0, 72], sizes = [4, 8], strides = [1, 1]} : vector<4x128xf32> to vector<4x8xf32>
    %237 = vector.extract_strided_slice %32 {offsets = [0, 72], sizes = [4, 8], strides = [1, 1]} : vector<4x128xf32> to vector<4x8xf32>
    %238 = vector.extract_strided_slice %33 {offsets = [0, 72], sizes = [4, 8], strides = [1, 1]} : vector<4x128xf32> to vector<4x8xf32>
    %239 = vector.extract_strided_slice %40 {offsets = [0, 72], sizes = [4, 8], strides = [1, 1]} : vector<4x128xf32> to vector<4x8xf32>
    %240 = vector.extract_strided_slice %47 {offsets = [0, 72], sizes = [4, 8], strides = [1, 1]} : vector<4x128xf32> to vector<4x8xf32>
    %241 = vector.extract_strided_slice %54 {offsets = [0, 72], sizes = [4, 8], strides = [1, 1]} : vector<4x128xf32> to vector<4x8xf32>
    %242 = vector.extract_strided_slice %2 {offsets = [0, 72], sizes = [4, 8], strides = [1, 1]} : vector<4x128xf32> to vector<4x8xf32>
    %243 = vector.extract_strided_slice %4 {offsets = [0, 72], sizes = [4, 8], strides = [1, 1]} : vector<4x128xf32> to vector<4x8xf32>
    %244 = vector.extract_strided_slice %27 {offsets = [0, 72], sizes = [4, 8], strides = [1, 1]} : vector<4x128xf32> to vector<4x8xf32>
    %245 = vector.extract_strided_slice %30 {offsets = [0, 72], sizes = [4, 8], strides = [1, 1]} : vector<4x128xf32> to vector<4x8xf32>
    %246 = vector.extract_strided_slice %19 {offsets = [0, 72], sizes = [4, 8], strides = [1, 1]} : vector<4x128xf32> to vector<4x8xf32>
    %247 = vector.extract_strided_slice %24 {offsets = [0, 72], sizes = [4, 8], strides = [1, 1]} : vector<4x128xf32> to vector<4x8xf32>
    %248 = vector.extract_strided_slice %7 {offsets = [0, 72], sizes = [4, 8], strides = [1, 1]} : vector<4x128xf32> to vector<4x8xf32>
    %249 = vector.extract_strided_slice %8 {offsets = [0, 72], sizes = [4, 8], strides = [1, 1]} : vector<4x128xf32> to vector<4x8xf32>
    %250 = vector.extract_strided_slice %11 {offsets = [0, 72], sizes = [4, 8], strides = [1, 1]} : vector<4x128xf32> to vector<4x8xf32>
    %251 = vector.extract_strided_slice %16 {offsets = [0, 72], sizes = [4, 8], strides = [1, 1]} : vector<4x128xf32> to vector<4x8xf32>
    %252 = tpu.concatenate %235, %236, %237, %238, %239, %240, %241, %242, %243, %244, %245, %246, %247, %248, %249, %250 in 1 : vector<4x8xf32>, vector<4x8xf32>, vector<4x8xf32>, vector<4x8xf32>, vector<4x8xf32>, vector<4x8xf32>, vector<4x8xf32>, vector<4x8xf32>, vector<4x8xf32>, vector<4x8xf32>, vector<4x8xf32>, vector<4x8xf32>, vector<4x8xf32>, vector<4x8xf32>, vector<4x8xf32>, vector<4x8xf32> -> vector<4x128xf32>
    %253 = tpu.concatenate %252, %251 in 1 : vector<4x128xf32>, vector<4x8xf32> -> vector<4x136xf32>
    %c0_30 = arith.constant 0 : index
    %c1224 = arith.constant 1224 : index
    %254 = vector.load %arg2[%c0_30, %c1224] : memref<4x2176xf32, #tpu.memory_space<vmem>>, vector<4x136xf32>
    tpu.vector_store %arg2[%c0_30, %c1224], %253 {strides = array<i32>} : memref<4x2176xf32, #tpu.memory_space<vmem>>, vector<4x136xf32>,
    %255 = vector.extract_strided_slice %0 {offsets = [0, 80], sizes = [4, 8], strides = [1, 1]} : vector<4x128xf32> to vector<4x8xf32>
    %256 = vector.extract_strided_slice %31 {offsets = [0, 80], sizes = [4, 8], strides = [1, 1]} : vector<4x128xf32> to vector<4x8xf32>
    %257 = vector.extract_strided_slice %32 {offsets = [0, 80], sizes = [4, 8], strides = [1, 1]} : vector<4x128xf32> to vector<4x8xf32>
    %258 = vector.extract_strided_slice %33 {offsets = [0, 80], sizes = [4, 8], strides = [1, 1]} : vector<4x128xf32> to vector<4x8xf32>
    %259 = vector.extract_strided_slice %40 {offsets = [0, 80], sizes = [4, 8], strides = [1, 1]} : vector<4x128xf32> to vector<4x8xf32>
    %260 = vector.extract_strided_slice %47 {offsets = [0, 80], sizes = [4, 8], strides = [1, 1]} : vector<4x128xf32> to vector<4x8xf32>
    %261 = vector.extract_strided_slice %54 {offsets = [0, 80], sizes = [4, 8], strides = [1, 1]} : vector<4x128xf32> to vector<4x8xf32>
    %262 = vector.extract_strided_slice %2 {offsets = [0, 80], sizes = [4, 8], strides = [1, 1]} : vector<4x128xf32> to vector<4x8xf32>
    %263 = vector.extract_strided_slice %4 {offsets = [0, 80], sizes = [4, 8], strides = [1, 1]} : vector<4x128xf32> to vector<4x8xf32>
    %264 = vector.extract_strided_slice %27 {offsets = [0, 80], sizes = [4, 8], strides = [1, 1]} : vector<4x128xf32> to vector<4x8xf32>
    %265 = vector.extract_strided_slice %30 {offsets = [0, 80], sizes = [4, 8], strides = [1, 1]} : vector<4x128xf32> to vector<4x8xf32>
    %266 = vector.extract_strided_slice %19 {offsets = [0, 80], sizes = [4, 8], strides = [1, 1]} : vector<4x128xf32> to vector<4x8xf32>
    %267 = vector.extract_strided_slice %24 {offsets = [0, 80], sizes = [4, 8], strides = [1, 1]} : vector<4x128xf32> to vector<4x8xf32>
    %268 = vector.extract_strided_slice %7 {offsets = [0, 80], sizes = [4, 8], strides = [1, 1]} : vector<4x128xf32> to vector<4x8xf32>
    %269 = vector.extract_strided_slice %8 {offsets = [0, 80], sizes = [4, 8], strides = [1, 1]} : vector<4x128xf32> to vector<4x8xf32>
    %270 = vector.extract_strided_slice %11 {offsets = [0, 80], sizes = [4, 8], strides = [1, 1]} : vector<4x128xf32> to vector<4x8xf32>
    %271 = vector.extract_strided_slice %16 {offsets = [0, 80], sizes = [4, 8], strides = [1, 1]} : vector<4x128xf32> to vector<4x8xf32>
    %272 = tpu.concatenate %255, %256, %257, %258, %259, %260, %261, %262, %263, %264, %265, %266, %267, %268, %269, %270 in 1 : vector<4x8xf32>, vector<4x8xf32>, vector<4x8xf32>, vector<4x8xf32>, vector<4x8xf32>, vector<4x8xf32>, vector<4x8xf32>, vector<4x8xf32>, vector<4x8xf32>, vector<4x8xf32>, vector<4x8xf32>, vector<4x8xf32>, vector<4x8xf32>, vector<4x8xf32>, vector<4x8xf32>, vector<4x8xf32> -> vector<4x128xf32>
    %273 = tpu.concatenate %272, %271 in 1 : vector<4x128xf32>, vector<4x8xf32> -> vector<4x136xf32>
    %c0_31 = arith.constant 0 : index
    %c1360 = arith.constant 1360 : index
    %274 = vector.load %arg2[%c0_31, %c1360] : memref<4x2176xf32, #tpu.memory_space<vmem>>, vector<4x136xf32>
    tpu.vector_store %arg2[%c0_31, %c1360], %273 {strides = array<i32>} : memref<4x2176xf32, #tpu.memory_space<vmem>>, vector<4x136xf32>,
    %275 = vector.extract_strided_slice %0 {offsets = [0, 88], sizes = [4, 8], strides = [1, 1]} : vector<4x128xf32> to vector<4x8xf32>
    %276 = vector.extract_strided_slice %31 {offsets = [0, 88], sizes = [4, 8], strides = [1, 1]} : vector<4x128xf32> to vector<4x8xf32>
    %277 = vector.extract_strided_slice %32 {offsets = [0, 88], sizes = [4, 8], strides = [1, 1]} : vector<4x128xf32> to vector<4x8xf32>
    %278 = vector.extract_strided_slice %33 {offsets = [0, 88], sizes = [4, 8], strides = [1, 1]} : vector<4x128xf32> to vector<4x8xf32>
    %279 = vector.extract_strided_slice %40 {offsets = [0, 88], sizes = [4, 8], strides = [1, 1]} : vector<4x128xf32> to vector<4x8xf32>
    %280 = vector.extract_strided_slice %47 {offsets = [0, 88], sizes = [4, 8], strides = [1, 1]} : vector<4x128xf32> to vector<4x8xf32>
    %281 = vector.extract_strided_slice %54 {offsets = [0, 88], sizes = [4, 8], strides = [1, 1]} : vector<4x128xf32> to vector<4x8xf32>
    %282 = vector.extract_strided_slice %2 {offsets = [0, 88], sizes = [4, 8], strides = [1, 1]} : vector<4x128xf32> to vector<4x8xf32>
    %283 = vector.extract_strided_slice %4 {offsets = [0, 88], sizes = [4, 8], strides = [1, 1]} : vector<4x128xf32> to vector<4x8xf32>
    %284 = vector.extract_strided_slice %27 {offsets = [0, 88], sizes = [4, 8], strides = [1, 1]} : vector<4x128xf32> to vector<4x8xf32>
    %285 = vector.extract_strided_slice %30 {offsets = [0, 88], sizes = [4, 8], strides = [1, 1]} : vector<4x128xf32> to vector<4x8xf32>
    %286 = vector.extract_strided_slice %19 {offsets = [0, 88], sizes = [4, 8], strides = [1, 1]} : vector<4x128xf32> to vector<4x8xf32>
    %287 = vector.extract_strided_slice %24 {offsets = [0, 88], sizes = [4, 8], strides = [1, 1]} : vector<4x128xf32> to vector<4x8xf32>
    %288 = vector.extract_strided_slice %7 {offsets = [0, 88], sizes = [4, 8], strides = [1, 1]} : vector<4x128xf32> to vector<4x8xf32>
    %289 = vector.extract_strided_slice %8 {offsets = [0, 88], sizes = [4, 8], strides = [1, 1]} : vector<4x128xf32> to vector<4x8xf32>
    %290 = vector.extract_strided_slice %11 {offsets = [0, 88], sizes = [4, 8], strides = [1, 1]} : vector<4x128xf32> to vector<4x8xf32>
    %291 = vector.extract_strided_slice %16 {offsets = [0, 88], sizes = [4, 8], strides = [1, 1]} : vector<4x128xf32> to vector<4x8xf32>
    %292 = tpu.concatenate %275, %276, %277, %278, %279, %280, %281, %282, %283, %284, %285, %286, %287, %288, %289, %290 in 1 : vector<4x8xf32>, vector<4x8xf32>, vector<4x8xf32>, vector<4x8xf32>, vector<4x8xf32>, vector<4x8xf32>, vector<4x8xf32>, vector<4x8xf32>, vector<4x8xf32>, vector<4x8xf32>, vector<4x8xf32>, vector<4x8xf32>, vector<4x8xf32>, vector<4x8xf32>, vector<4x8xf32>, vector<4x8xf32> -> vector<4x128xf32>
    %293 = tpu.concatenate %292, %291 in 1 : vector<4x128xf32>, vector<4x8xf32> -> vector<4x136xf32>
    %c0_32 = arith.constant 0 : index
    %c1496 = arith.constant 1496 : index
    %294 = vector.load %arg2[%c0_32, %c1496] : memref<4x2176xf32, #tpu.memory_space<vmem>>, vector<4x136xf32>
    tpu.vector_store %arg2[%c0_32, %c1496], %293 {strides = array<i32>} : memref<4x2176xf32, #tpu.memory_space<vmem>>, vector<4x136xf32>,
    %295 = vector.extract_strided_slice %0 {offsets = [0, 96], sizes = [4, 8], strides = [1, 1]} : vector<4x128xf32> to vector<4x8xf32>
    %296 = vector.extract_strided_slice %31 {offsets = [0, 96], sizes = [4, 8], strides = [1, 1]} : vector<4x128xf32> to vector<4x8xf32>
    %297 = vector.extract_strided_slice %32 {offsets = [0, 96], sizes = [4, 8], strides = [1, 1]} : vector<4x128xf32> to vector<4x8xf32>
    %298 = vector.extract_strided_slice %33 {offsets = [0, 96], sizes = [4, 8], strides = [1, 1]} : vector<4x128xf32> to vector<4x8xf32>
    %299 = vector.extract_strided_slice %40 {offsets = [0, 96], sizes = [4, 8], strides = [1, 1]} : vector<4x128xf32> to vector<4x8xf32>
    %300 = vector.extract_strided_slice %47 {offsets = [0, 96], sizes = [4, 8], strides = [1, 1]} : vector<4x128xf32> to vector<4x8xf32>
    %301 = vector.extract_strided_slice %54 {offsets = [0, 96], sizes = [4, 8], strides = [1, 1]} : vector<4x128xf32> to vector<4x8xf32>
    %302 = vector.extract_strided_slice %2 {offsets = [0, 96], sizes = [4, 8], strides = [1, 1]} : vector<4x128xf32> to vector<4x8xf32>
    %303 = vector.extract_strided_slice %4 {offsets = [0, 96], sizes = [4, 8], strides = [1, 1]} : vector<4x128xf32> to vector<4x8xf32>
    %304 = vector.extract_strided_slice %27 {offsets = [0, 96], sizes = [4, 8], strides = [1, 1]} : vector<4x128xf32> to vector<4x8xf32>
    %305 = vector.extract_strided_slice %30 {offsets = [0, 96], sizes = [4, 8], strides = [1, 1]} : vector<4x128xf32> to vector<4x8xf32>
    %306 = vector.extract_strided_slice %19 {offsets = [0, 96], sizes = [4, 8], strides = [1, 1]} : vector<4x128xf32> to vector<4x8xf32>
    %307 = vector.extract_strided_slice %24 {offsets = [0, 96], sizes = [4, 8], strides = [1, 1]} : vector<4x128xf32> to vector<4x8xf32>
    %308 = vector.extract_strided_slice %7 {offsets = [0, 96], sizes = [4, 8], strides = [1, 1]} : vector<4x128xf32> to vector<4x8xf32>
    %309 = vector.extract_strided_slice %8 {offsets = [0, 96], sizes = [4, 8], strides = [1, 1]} : vector<4x128xf32> to vector<4x8xf32>
    %310 = vector.extract_strided_slice %11 {offsets = [0, 96], sizes = [4, 8], strides = [1, 1]} : vector<4x128xf32> to vector<4x8xf32>
    %311 = vector.extract_strided_slice %16 {offsets = [0, 96], sizes = [4, 8], strides = [1, 1]} : vector<4x128xf32> to vector<4x8xf32>
    %312 = tpu.concatenate %295, %296, %297, %298, %299, %300, %301, %302, %303, %304, %305, %306, %307, %308, %309, %310 in 1 : vector<4x8xf32>, vector<4x8xf32>, vector<4x8xf32>, vector<4x8xf32>, vector<4x8xf32>, vector<4x8xf32>, vector<4x8xf32>, vector<4x8xf32>, vector<4x8xf32>, vector<4x8xf32>, vector<4x8xf32>, vector<4x8xf32>, vector<4x8xf32>, vector<4x8xf32>, vector<4x8xf32>, vector<4x8xf32> -> vector<4x128xf32>
    %313 = tpu.concatenate %312, %311 in 1 : vector<4x128xf32>, vector<4x8xf32> -> vector<4x136xf32>
    %c0_33 = arith.constant 0 : index
    %c1632 = arith.constant 1632 : index
    %314 = vector.load %arg2[%c0_33, %c1632] : memref<4x2176xf32, #tpu.memory_space<vmem>>, vector<4x136xf32>
    tpu.vector_store %arg2[%c0_33, %c1632], %313 {strides = array<i32>} : memref<4x2176xf32, #tpu.memory_space<vmem>>, vector<4x136xf32>,
    %315 = vector.extract_strided_slice %0 {offsets = [0, 104], sizes = [4, 8], strides = [1, 1]} : vector<4x128xf32> to vector<4x8xf32>
    %316 = vector.extract_strided_slice %31 {offsets = [0, 104], sizes = [4, 8], strides = [1, 1]} : vector<4x128xf32> to vector<4x8xf32>
    %317 = vector.extract_strided_slice %32 {offsets = [0, 104], sizes = [4, 8], strides = [1, 1]} : vector<4x128xf32> to vector<4x8xf32>
    %318 = vector.extract_strided_slice %33 {offsets = [0, 104], sizes = [4, 8], strides = [1, 1]} : vector<4x128xf32> to vector<4x8xf32>
    %319 = vector.extract_strided_slice %40 {offsets = [0, 104], sizes = [4, 8], strides = [1, 1]} : vector<4x128xf32> to vector<4x8xf32>
    %320 = vector.extract_strided_slice %47 {offsets = [0, 104], sizes = [4, 8], strides = [1, 1]} : vector<4x128xf32> to vector<4x8xf32>
    %321 = vector.extract_strided_slice %54 {offsets = [0, 104], sizes = [4, 8], strides = [1, 1]} : vector<4x128xf32> to vector<4x8xf32>
    %322 = vector.extract_strided_slice %2 {offsets = [0, 104], sizes = [4, 8], strides = [1, 1]} : vector<4x128xf32> to vector<4x8xf32>
    %323 = vector.extract_strided_slice %4 {offsets = [0, 104], sizes = [4, 8], strides = [1, 1]} : vector<4x128xf32> to vector<4x8xf32>
    %324 = vector.extract_strided_slice %27 {offsets = [0, 104], sizes = [4, 8], strides = [1, 1]} : vector<4x128xf32> to vector<4x8xf32>
    %325 = vector.extract_strided_slice %30 {offsets = [0, 104], sizes = [4, 8], strides = [1, 1]} : vector<4x128xf32> to vector<4x8xf32>
    %326 = vector.extract_strided_slice %19 {offsets = [0, 104], sizes = [4, 8], strides = [1, 1]} : vector<4x128xf32> to vector<4x8xf32>
    %327 = vector.extract_strided_slice %24 {offsets = [0, 104], sizes = [4, 8], strides = [1, 1]} : vector<4x128xf32> to vector<4x8xf32>
    %328 = vector.extract_strided_slice %7 {offsets = [0, 104], sizes = [4, 8], strides = [1, 1]} : vector<4x128xf32> to vector<4x8xf32>
    %329 = vector.extract_strided_slice %8 {offsets = [0, 104], sizes = [4, 8], strides = [1, 1]} : vector<4x128xf32> to vector<4x8xf32>
    %330 = vector.extract_strided_slice %11 {offsets = [0, 104], sizes = [4, 8], strides = [1, 1]} : vector<4x128xf32> to vector<4x8xf32>
    %331 = vector.extract_strided_slice %16 {offsets = [0, 104], sizes = [4, 8], strides = [1, 1]} : vector<4x128xf32> to vector<4x8xf32>
    %332 = tpu.concatenate %315, %316, %317, %318, %319, %320, %321, %322, %323, %324, %325, %326, %327, %328, %329, %330 in 1 : vector<4x8xf32>, vector<4x8xf32>, vector<4x8xf32>, vector<4x8xf32>, vector<4x8xf32>, vector<4x8xf32>, vector<4x8xf32>, vector<4x8xf32>, vector<4x8xf32>, vector<4x8xf32>, vector<4x8xf32>, vector<4x8xf32>, vector<4x8xf32>, vector<4x8xf32>, vector<4x8xf32>, vector<4x8xf32> -> vector<4x128xf32>
    %333 = tpu.concatenate %332, %331 in 1 : vector<4x128xf32>, vector<4x8xf32> -> vector<4x136xf32>
    %c0_34 = arith.constant 0 : index
    %c1768 = arith.constant 1768 : index
    %334 = vector.load %arg2[%c0_34, %c1768] : memref<4x2176xf32, #tpu.memory_space<vmem>>, vector<4x136xf32>
    tpu.vector_store %arg2[%c0_34, %c1768], %333 {strides = array<i32>} : memref<4x2176xf32, #tpu.memory_space<vmem>>, vector<4x136xf32>,
    %335 = vector.extract_strided_slice %0 {offsets = [0, 112], sizes = [4, 8], strides = [1, 1]} : vector<4x128xf32> to vector<4x8xf32>
    %336 = vector.extract_strided_slice %31 {offsets = [0, 112], sizes = [4, 8], strides = [1, 1]} : vector<4x128xf32> to vector<4x8xf32>
    %337 = vector.extract_strided_slice %32 {offsets = [0, 112], sizes = [4, 8], strides = [1, 1]} : vector<4x128xf32> to vector<4x8xf32>
    %338 = vector.extract_strided_slice %33 {offsets = [0, 112], sizes = [4, 8], strides = [1, 1]} : vector<4x128xf32> to vector<4x8xf32>
    %339 = vector.extract_strided_slice %40 {offsets = [0, 112], sizes = [4, 8], strides = [1, 1]} : vector<4x128xf32> to vector<4x8xf32>
    %340 = vector.extract_strided_slice %47 {offsets = [0, 112], sizes = [4, 8], strides = [1, 1]} : vector<4x128xf32> to vector<4x8xf32>
    %341 = vector.extract_strided_slice %54 {offsets = [0, 112], sizes = [4, 8], strides = [1, 1]} : vector<4x128xf32> to vector<4x8xf32>
    %342 = vector.extract_strided_slice %2 {offsets = [0, 112], sizes = [4, 8], strides = [1, 1]} : vector<4x128xf32> to vector<4x8xf32>
    %343 = vector.extract_strided_slice %4 {offsets = [0, 112], sizes = [4, 8], strides = [1, 1]} : vector<4x128xf32> to vector<4x8xf32>
    %344 = vector.extract_strided_slice %27 {offsets = [0, 112], sizes = [4, 8], strides = [1, 1]} : vector<4x128xf32> to vector<4x8xf32>
    %345 = vector.extract_strided_slice %30 {offsets = [0, 112], sizes = [4, 8], strides = [1, 1]} : vector<4x128xf32> to vector<4x8xf32>
    %346 = vector.extract_strided_slice %19 {offsets = [0, 112], sizes = [4, 8], strides = [1, 1]} : vector<4x128xf32> to vector<4x8xf32>
    %347 = vector.extract_strided_slice %24 {offsets = [0, 112], sizes = [4, 8], strides = [1, 1]} : vector<4x128xf32> to vector<4x8xf32>
    %348 = vector.extract_strided_slice %7 {offsets = [0, 112], sizes = [4, 8], strides = [1, 1]} : vector<4x128xf32> to vector<4x8xf32>
    %349 = vector.extract_strided_slice %8 {offsets = [0, 112], sizes = [4, 8], strides = [1, 1]} : vector<4x128xf32> to vector<4x8xf32>
    %350 = vector.extract_strided_slice %11 {offsets = [0, 112], sizes = [4, 8], strides = [1, 1]} : vector<4x128xf32> to vector<4x8xf32>
    %351 = vector.extract_strided_slice %16 {offsets = [0, 112], sizes = [4, 8], strides = [1, 1]} : vector<4x128xf32> to vector<4x8xf32>
    %352 = tpu.concatenate %335, %336, %337, %338, %339, %340, %341, %342, %343, %344, %345, %346, %347, %348, %349, %350 in 1 : vector<4x8xf32>, vector<4x8xf32>, vector<4x8xf32>, vector<4x8xf32>, vector<4x8xf32>, vector<4x8xf32>, vector<4x8xf32>, vector<4x8xf32>, vector<4x8xf32>, vector<4x8xf32>, vector<4x8xf32>, vector<4x8xf32>, vector<4x8xf32>, vector<4x8xf32>, vector<4x8xf32>, vector<4x8xf32> -> vector<4x128xf32>
    %353 = tpu.concatenate %352, %351 in 1 : vector<4x128xf32>, vector<4x8xf32> -> vector<4x136xf32>
    %c0_35 = arith.constant 0 : index
    %c1904 = arith.constant 1904 : index
    %354 = vector.load %arg2[%c0_35, %c1904] : memref<4x2176xf32, #tpu.memory_space<vmem>>, vector<4x136xf32>
    tpu.vector_store %arg2[%c0_35, %c1904], %353 {strides = array<i32>} : memref<4x2176xf32, #tpu.memory_space<vmem>>, vector<4x136xf32>,
    %355 = vector.extract_strided_slice %0 {offsets = [0, 120], sizes = [4, 8], strides = [1, 1]} : vector<4x128xf32> to vector<4x8xf32>
    %356 = vector.extract_strided_slice %31 {offsets = [0, 120], sizes = [4, 8], strides = [1, 1]} : vector<4x128xf32> to vector<4x8xf32>
    %357 = vector.extract_strided_slice %32 {offsets = [0, 120], sizes = [4, 8], strides = [1, 1]} : vector<4x128xf32> to vector<4x8xf32>
    %358 = vector.extract_strided_slice %33 {offsets = [0, 120], sizes = [4, 8], strides = [1, 1]} : vector<4x128xf32> to vector<4x8xf32>
    %359 = vector.extract_strided_slice %40 {offsets = [0, 120], sizes = [4, 8], strides = [1, 1]} : vector<4x128xf32> to vector<4x8xf32>
    %360 = vector.extract_strided_slice %47 {offsets = [0, 120], sizes = [4, 8], strides = [1, 1]} : vector<4x128xf32> to vector<4x8xf32>
    %361 = vector.extract_strided_slice %54 {offsets = [0, 120], sizes = [4, 8], strides = [1, 1]} : vector<4x128xf32> to vector<4x8xf32>
    %362 = vector.extract_strided_slice %2 {offsets = [0, 120], sizes = [4, 8], strides = [1, 1]} : vector<4x128xf32> to vector<4x8xf32>
    %363 = vector.extract_strided_slice %4 {offsets = [0, 120], sizes = [4, 8], strides = [1, 1]} : vector<4x128xf32> to vector<4x8xf32>
    %364 = vector.extract_strided_slice %27 {offsets = [0, 120], sizes = [4, 8], strides = [1, 1]} : vector<4x128xf32> to vector<4x8xf32>
    %365 = vector.extract_strided_slice %30 {offsets = [0, 120], sizes = [4, 8], strides = [1, 1]} : vector<4x128xf32> to vector<4x8xf32>
    %366 = vector.extract_strided_slice %19 {offsets = [0, 120], sizes = [4, 8], strides = [1, 1]} : vector<4x128xf32> to vector<4x8xf32>
    %367 = vector.extract_strided_slice %24 {offsets = [0, 120], sizes = [4, 8], strides = [1, 1]} : vector<4x128xf32> to vector<4x8xf32>
    %368 = vector.extract_strided_slice %7 {offsets = [0, 120], sizes = [4, 8], strides = [1, 1]} : vector<4x128xf32> to vector<4x8xf32>
    %369 = vector.extract_strided_slice %8 {offsets = [0, 120], sizes = [4, 8], strides = [1, 1]} : vector<4x128xf32> to vector<4x8xf32>
    %370 = vector.extract_strided_slice %11 {offsets = [0, 120], sizes = [4, 8], strides = [1, 1]} : vector<4x128xf32> to vector<4x8xf32>
    %371 = vector.extract_strided_slice %16 {offsets = [0, 120], sizes = [4, 8], strides = [1, 1]} : vector<4x128xf32> to vector<4x8xf32>
    %372 = tpu.concatenate %355, %356, %357, %358, %359, %360, %361, %362, %363, %364, %365, %366, %367, %368, %369, %370 in 1 : vector<4x8xf32>, vector<4x8xf32>, vector<4x8xf32>, vector<4x8xf32>, vector<4x8xf32>, vector<4x8xf32>, vector<4x8xf32>, vector<4x8xf32>, vector<4x8xf32>, vector<4x8xf32>, vector<4x8xf32>, vector<4x8xf32>, vector<4x8xf32>, vector<4x8xf32>, vector<4x8xf32>, vector<4x8xf32> -> vector<4x128xf32>
    %373 = tpu.concatenate %372, %371 in 1 : vector<4x128xf32>, vector<4x8xf32> -> vector<4x136xf32>
    %c0_36 = arith.constant 0 : index
    %c2040 = arith.constant 2040 : index
    %374 = vector.load %arg2[%c0_36, %c2040] : memref<4x2176xf32, #tpu.memory_space<vmem>>, vector<4x136xf32>
    tpu.vector_store %arg2[%c0_36, %c2040], %373 {strides = array<i32>} : memref<4x2176xf32, #tpu.memory_space<vmem>>, vector<4x136xf32>,
    return
  }
  func.func @transform_0(%arg0: i32) -> (i32, i32) {
    %c0_i32 = arith.constant 0 : i32
    %c0_i32_0 = arith.constant 0 : i32
    return %arg0, %c0_i32 : i32, i32
  }
  func.func @transform_1(%arg0: i32) -> (i32, i32) {
    %c0_i32 = arith.constant 0 : i32
    %c0_i32_0 = arith.constant 0 : i32
    return %arg0, %c0_i32 : i32, i32
  }
}

</mosaic_0001>

<bundles_post_ra>
// kernel: tpu_custom_call.1
= control target key start
LH: loop header
LB: loop body
LE: loop exit
PB: predicated region body
PF: predicated region fallthrough
CT: control target
= control target key end

     0   :  { %6 = vsyncpa [#allocation3], 0  ;;  %s3000_s0 = inlined_call_operand.hbm [shape: f32[4,128], index: 0, kind: input, shape index: {}]   ;;  %s3001_s1 = inlined_call_operand.hbm [shape: f32[4,2176], index: 1, kind: output, shape index: {}]  }
   0x1   :  { %7 = vsyncpa [#allocation4], 0  ;;  %s1783_s6 = smov [#allocation2]   ;;  %s1735_s10 = scalar_lea.hbm %s3000_s0, 64 }
   0x2   :  { %s14_s7 = sshll.u32 %s1783_s6, 4  ;;  %p1736_p0 = scmp.ne.s32.totalorder %s3000_s0, %s1735_s10  ;;  %s15_s7 = int_to_ptr.vmem [resolvable:$true] %s14_s7 }
   0x3   :  { %p1739_p1 = scmp.lt.u32.totalorder %s1735_s10, %s3000_s0 }
   0x5   :  { %p1741_p2 = pnand %p1739_p1, %p1736_p0 }
   0x7   :  { %1744 = shalt.err (!%p1741_p2)
}
   0x8   :  { %s1745_s15 = scalar_lea.vmem %s15_s7, 64  ;;  %p1750_p4 = scmp.lt.s32.totalorder %s15_s7, %s15_s7 }
   0x9   :  { %p1746_p3 = scmp.ne.s32.totalorder %s15_s7, %s1745_s15  ;;  %p1751_p5 = scmp.lt.s32.totalorder %s1745_s15, %s1745_s15 }
   0xb   :  { %p1752_p6 = por %p1751_p5, %p1750_p4 }
   0xd   :  { %p1753_p7 = pnand %p1752_p6, %p1746_p3 }
   0xf   :  { %1756 = shalt.err (!%p1753_p7)
}
  0x10   :  { %17 = dma.hbm_to_vmem [thread:$0]  %s3000_s0, 64, %s15_s7, [#allocation3]  }
  0x11   :  { %1779 = dma.done.wait [#allocation3], 64  }
  0x12   :  { %1780 = vsyncadd [#allocation3], 4294967232  ;;  %v1828_v0 = vld [vmem:[#allocation2] sm:$0xf]  ;;  %s1784_s18 = smov 120   ;;  %s1785_s0 = smov 8  }
  0x13   :  { %561 = vrot.lane.b32.xlu1 %v1828_v0, %s1784_s18  ;;  %v1834_v1 = vmul.f32 %v1828_v0, %v1828_v0  ;;  %v1837_v2 = vadd.f32 -4.5, %v1828_v0  ;;  %v1840_v3 = vadd.f32 -1.5, %v1828_v0  ;;  %v450_v4 = vmul.f32 0.5, %v1828_v0  ;;  %s1786_s19 = smov 64   ;;  %s1787_s20 = smov 56  }
  0x14   :  { %v240_v5 = vand.u32 2147483647, %v1828_v0  ;;  %v243_v6 = vand.u32 2139095040, %v1828_v0  ;;  %v1858_v12 = vmul.f32 0.7853982, %v1828_v0  ;;  %s1788_s21 = smov 24  }
  0x15   :  { %463 = vrot.lane.b32.xlu0 %v1834_v1, %s1785_s0  ;;  %1720 = vtanh.f32 %v450_v4  ;;  %v458_v7 = vmul.f32 0.5, %v1837_v2  ;;  %v454_v8 = vmul.f32 0.5, %v1840_v3  ;;  %v1853_v10 = vmul.f32 %v1837_v2, %v1837_v2  ;;  %s1789_s22 = smov 16   ;;  %s1795_s23 = smov 32  }
  0x16   :  { %v244_v9 = vshrl.u32 %v243_v6, 23  ;;  %v247_v11 = vand.u32 8388607, %v240_v5  ;;  %v1864_v14 = vmul.f32 %v1840_v3, %v1840_v3  ;;  %v25_v15 = vand.u32 2147483647, %v1858_v12  ;;  %s1797_s24 = smov 48  }
  0x17   :  { %491 = vrot.lane.b32.xlu1 %v1837_v2, %s1786_s19  ;;  %1722 = vtanh.f32 %v458_v7  ;;  %v28_v16 = vand.u32 2139095040, %v1858_v12  ;;  %v1790_v31 = vmov 683565275   ;;  %v1791_v33 = vmov 2475754826   ;;  %s1798_s25 = smov 40  }
  0x18   :  { %1724 = vtanh.f32 %v454_v8  ;;  %v1681_v13 = vadd.s32 4294967169, %v244_v9  ;;  %v248_v18 = vor.u32 8388608, %v247_v11  ;;  %v1872_v20 = vand.u32 8388607, %v25_v15  ;;  %s1799_s26 = smov 112   ;;  %s1800_s27 = smov 104  }
  0x19   :  { %487 = vrot.lane.b32.xlu0 %v1840_v3, %s1787_s20  ;;  %v29_v19 = vshrl.u32 %v28_v16, 23  ;;  %v1792_v36 = vmov 2131351028   ;;  %v1793_v38 = vmov 2102212464   ;;  %vm242_vm14 = vcmp.lt.s32.totalorder %v1828_v0, 0 }
  0x1a   :  { %v250_v17 = vadd.s32 1, %v1681_v13  ;;  %v1880_v26 = vshll.u32 %v248_v18, 8  ;;  %v33_v27 = vor.u32 8388608, %v1872_v20  ;;  %v1794_v40 = vmov 920167782   ;;  %s1801_s28 = smov 80  }
  0x1b   :  { %471 = vrot.lane.b32.xlu1 %v1853_v10, %s1788_s21  ;;  %v1673_v22 = vadd.s32 4294967169, %v29_v19  ;;  %v1796_v53 = vmov 1326507024   ;;  %vm241_vm13 = vcmp.le.f32.partialorder %v240_v5, 0.7853982  ;;  %s1802_s29 = smov 72  }
  0x1c   :  { %vm251_vm0 = vcmp.gt.s32.totalorder %v250_v17, 0  ;;  %s1803_s30 = smov 96   ;;  %s1804_s2 = smov 88  }
  0x1d   :  { %467 = vrot.lane.b32.xlu0 %v1864_v14, %s1789_s22  ;;  %v252_v21 = vsel %vm251_vm0, %v250_v17, 0  ;;  %v35_v28 = vadd.s32 1, %v1673_v22  ;;  %vm2023_vm0 = vcmp.le.f32.partialorder %v25_v15, 0.7853982  ;;  %s1805_s3 = smov [#allocation5]  }
  0x1e   :  { %v1876_v23 = vshrl.u32 %v252_v21, 5  ;;  %v254_v24 = vand.u32 31, %v252_v21  ;;  %s1662_s4 = sshll.u32 %s1805_s3, 4  ;;  %s1663_s4 = int_to_ptr.vmem [resolvable:$true] %s1662_s4 }
  0x1f   :  { %v1721_v25 = vpop.eup %1720  ;;  %567 = vrot.lane.b32.xlu1 %v1853_v10, %s1789_s22  ;;  %vm36_vm5 = vcmp.gt.s32.totalorder %v35_v28, 0  ;;  %s1757_s5 = scalar_lea.vmem %s1663_s4, 1088  ;;  %p1762_p9 = scmp.lt.s32.totalorder %s1663_s4, %s1663_s4 }
  0x20   :  { %v452_v29 = vmul.f32 0.5, %v1721_v25  ;;  %v255_v30 = vsub.s32 32, %v254_v24  ;;  %v257_v32 = vshll.u32 %v1790_v31, %v254_v24  ;;  %v260_v34 = vshll.u32 %v1791_v33, %v254_v24  ;;  %p1758_p8 = scmp.ne.s32.totalorder %s1663_s4, %s1757_s5  ;;  %p1763_p10 = scmp.lt.s32.totalorder %s1757_s5, %s1757_s5 }
  0x21   :  { %v1723_v35 = vpop.eup %1722  ;;  %564 = vrot.lane.b32.xlu0 %v1864_v14, %s1785_s0  ;;  %v263_v37 = vshll.u32 %v1792_v36, %v254_v24  ;;  %v266_v39 = vshll.u32 %v1793_v38, %v254_v24  ;;  %v269_v41 = vshll.u32 %v1794_v40, %v254_v24  ;;  %vm272_vm1 = vcmp.lt.s32.totalorder %v1876_v23, 1 }
  0x22   :  { %v1725_v42 = vpop.eup %1724  ;;  %v1891_v43 = vadd.f32 0.5, %v452_v29  ;;  %v460_v44 = vmul.f32 0.5, %v1723_v35  ;;  %v256_v45 = vshrl.u32 %v1790_v31, %v255_v30  ;;  %v258_v46 = vshrl.u32 %v1791_v33, %v255_v30  ;;  %p1764_p11 = por %p1763_p10, %p1762_p9 }
  0x23   :  { %v456_v47 = vmul.f32 0.5, %v1725_v42  ;;  %v261_v48 = vshrl.u32 %v1792_v36, %v255_v30  ;;  %v264_v49 = vshrl.u32 %v1793_v38, %v255_v30  ;;  %v267_v50 = vshrl.u32 %v1794_v40, %v255_v30 }
  0x24   :  { %475 = vrot.lane.b32.xlu1 %v1891_v43, %s1795_s23  ;;  %v1900_v51 = vadd.f32 0.5, %v460_v44  ;;  %v259_v52 = vor.u32 %v258_v46, %v257_v32  ;;  %v270_v54 = vshrl.u32 %v1796_v53, %v255_v30  ;;  %vm273_vm2 = vcmp.lt.s32.totalorder %v1876_v23, 2  ;;  %p1765_p12 = pnand %p1764_p11, %p1758_p8 }
  0x25   :  { %570 = vrot.lane.b32.xlu0 %v1891_v43, %s1788_s21  ;;  %v1905_v55 = vadd.f32 0.5, %v456_v47  ;;  %v262_v56 = vor.u32 %v261_v48, %v260_v34  ;;  %v265_v57 = vor.u32 %v264_v49, %v263_v37  ;;  %v268_v58 = vor.u32 %v267_v50, %v266_v39 }
  0x26   :  { %v271_v59 = vor.u32 %v270_v54, %v269_v41  ;;  %vm274_vm3 = vcmp.lt.s32.totalorder %v1876_v23, 3  ;;  %vm275_vm4 = vcmp.lt.s32.totalorder %v1876_v23, 4  ;;  %v276_v60 = vsel %vm272_vm1, %v256_v45, %v259_v52 }
  0x27   :  { %v277_v61 = vsel %vm275_vm4, %v265_v57, 2102212464  ;;  %v280_v62 = vsel %vm272_vm1, %v259_v52, %v262_v56  ;;  %v281_v63 = vsel %vm275_vm4, %v268_v58, 920167782  ;;  %v284_v4 = vsel %vm272_vm1, %v262_v56, %v265_v57 }
  0x28   :  { %483 = vrot.lane.b32.xlu1 %v1900_v51, %s1797_s24  ;;  %v278_v6 = vsel %vm274_vm3, %v262_v56, %v277_v61  ;;  %v282_v7 = vsel %vm274_vm3, %v265_v57, %v281_v63  ;;  %v285_v8 = vsel %vm275_vm4, %v271_v59, 1326507024  ;;  %v37_v13 = vsel %vm36_vm5, %v35_v28, 0 }
  0x29   :  { %479 = vrot.lane.b32.xlu0 %v1905_v55, %s1798_s25  ;;  %v283_v9 = vsel %vm273_vm2, %v280_v62, %v282_v7  ;;  %v286_v11 = vsel %vm274_vm3, %v268_v58, %v285_v8  ;;  %v279_v16 = vsel %vm273_vm2, %v276_v60, %v278_v6  ;;  %v38_v24 = vshrl.u32 %v37_v13, 5 }
  0x2a   :  { %v287_v17 = vsel %vm273_vm2, %v284_v4, %v286_v11  ;;  %v1932_v18 = vmul.u32.u64.low %v1880_v26, %v283_v9  ;;  %v1933_v19 = vmul.u32.u64.high %v1880_v26, %v283_v9, %v1932_v18  ;;  %v39_v25 = vand.u32 31, %v37_v13 }
  0x2b   :  { %v1937_v21 = vmul.u32.u64.low %v1880_v26, %v287_v17  ;;  %v1938_v22 = vmul.u32.u64.high %v1880_v26, %v287_v17, %v1937_v21  ;;  %v1944_v28 = vshll.u32 %v33_v27, 8  ;;  %v295_v23 = vmul.u32 %v1880_v26, %v279_v16 }
  0x2c   :  { %573 = vrot.lane.b32.xlu1 %v1905_v55, %s1795_s23  ;;  %v40_v29 = vsub.s32 32, %v39_v25  ;;  %v42_v30 = vshll.u32 %v1790_v31, %v39_v25  ;;  %v45_v32 = vshll.u32 %v1791_v33, %v39_v25  ;;  %v298_v34 = vadd.s32 1, %v1933_v19 }
  0x2d   :  { %576 = vrot.lane.b32.xlu0 %v1900_v51, %s1798_s25  ;;  %v48_v35 = vshll.u32 %v1792_v36, %v39_v25  ;;  %v51_v37 = vshll.u32 %v1793_v38, %v39_v25  ;;  %v54_v20 = vshll.u32 %v1794_v40, %v39_v25  ;;  %vm297_vm6 = vc.u32 %v1938_v22, %v1932_v18 }
  0x2e   :  { %v41_v27 = vshrl.u32 %v1790_v31, %v40_v29  ;;  %v43_v26 = vshrl.u32 %v1791_v33, %v40_v29  ;;  %vm57_vm7 = vcmp.lt.s32.totalorder %v38_v24, 1  ;;  %v299_v39 = vsel %vm297_vm6, %v298_v34, %v1933_v19 }
  0x2f   :  { %v46_v41 = vshrl.u32 %v1792_v36, %v40_v29  ;;  %v49_v42 = vshrl.u32 %v1793_v38, %v40_v29  ;;  %v52_v44 = vshrl.u32 %v1794_v40, %v40_v29  ;;  %v300_v45 = vadd.s32 %v299_v39, %v295_v23 }
  0x30   :  { %579 = vrot.lane.b32.xlu1 %v1840_v3, %s1797_s24  ;;  %v44_v46 = vor.u32 %v43_v26, %v42_v30  ;;  %v55_v31 = vshrl.u32 %v1796_v53, %v40_v29  ;;  %vm58_vm8 = vcmp.lt.s32.totalorder %v38_v24, 2  ;;  %vm59_vm9 = vcmp.lt.s32.totalorder %v38_v24, 3 }
  0x31   :  { %582 = vrot.lane.b32.xlu0 %v1837_v2, %s1787_s20  ;;  %v47_v33 = vor.u32 %v46_v41, %v45_v32  ;;  %v50_v47 = vor.u32 %v49_v42, %v48_v35  ;;  %v53_v48 = vor.u32 %v52_v44, %v51_v37  ;;  %v301_v49 = vadd.s32 536870912, %v300_v45 }
  0x32   :  { %v56_v50 = vor.u32 %v55_v31, %v54_v20  ;;  %vm60_vm10 = vcmp.lt.s32.totalorder %v38_v24, 4  ;;  %v61_v36 = vsel %vm57_vm7, %v41_v27, %v44_v46  ;;  %v296_v23 = vadd.s32 %v1932_v18, %v1938_v22 }
  0x33   :  { %v62_v38 = vsel %vm60_vm10, %v50_v47, 2102212464  ;;  %v65_v40 = vsel %vm57_vm7, %v44_v46, %v47_v33  ;;  %v66_v52 = vsel %vm60_vm10, %v53_v48, 920167782  ;;  %v69_v54 = vsel %vm57_vm7, %v47_v33, %v50_v47 }
  0x34   :  { %637 = vrot.lane.b32.xlu1 %v1834_v1, %s1784_s18  ;;  %v302_v53 = vshrl.u32 %v301_v49, 30  ;;  %v63_v56 = vsel %vm59_vm9, %v47_v33, %v62_v38  ;;  %v67_v57 = vsel %vm59_vm9, %v50_v47, %v66_v52  ;;  %v70_v58 = vsel %vm60_vm10, %v56_v50, 1326507024 }
  0x35   :  { %634 = vrot.lane.b32.xlu0 %v1828_v0, %s1799_s26  ;;  %v68_v59 = vsel %vm58_vm8, %v65_v40, %v67_v57  ;;  %v71_v60 = vsel %vm59_vm9, %v53_v48, %v70_v58  ;;  %v64_v62 = vsel %vm58_vm8, %v61_v36, %v63_v56  ;;  %vm27_vm1 = vcmp.lt.s32.totalorder %v1858_v12, 0 }
  0x36   :  { %v303_v61 = vshll.u32 %v302_v53, 30  ;;  %v72_v63 = vsel %vm58_vm8, %v69_v54, %v71_v60  ;;  %v1987_v7 = vmul.u32.u64.low %v1944_v28, %v68_v59  ;;  %v1988_v8 = vmul.u32.u64.high %v1944_v28, %v68_v59, %v1987_v7 }
  0x37   :  { %v1983_v4 = vmul.u32.u64.low %v1944_v28, %v72_v63  ;;  %v1984_v6 = vmul.u32.u64.high %v1944_v28, %v72_v63, %v1983_v4  ;;  %v80_v13 = vmul.u32 %v1944_v28, %v64_v62  ;;  %v326_v46 = vsub.s32 4, %v302_v53 }
  0x38   :  { %643 = vrot.lane.b32.xlu1 %v1891_v43, %s1789_s22  ;;  %v304_v9 = vsub.s32 %v300_v45, %v303_v61  ;;  %v83_v16 = vadd.s32 1, %v1988_v8  ;;  %vm332_vm4 = vweird.f32 %v1828_v0 }
  0x39   :  { %640 = vrot.lane.b32.xlu0 %v1853_v10, %s1785_s0  ;;  %vm82_vm11 = vc.u32 %v1984_v6, %v1987_v7  ;;  %v327_v49 = vsel %vm242_vm14, %v326_v46, %v302_v53  ;;  %v81_v50 = vadd.s32 %v1987_v7, %v1984_v6 }
  0x3a   :  { %v306_v11 = vsub.s32 0, %v304_v9  ;;  %v84_v19 = vsel %vm82_vm11, %v83_v16, %v1988_v8  ;;  %v329_v57 = vsel %vm241_vm13, 0, %v327_v49 }
  0x3b   :  { %v85_v24 = vadd.s32 %v84_v19, %v80_v13  ;;  %v333_v5 = vadd.s32 3, %v329_v57  ;;  %v437_v63 = vand.u32 3, %v329_v57 }
  0x3c   :  { %649 = vrot.lane.b32.xlu1 %v1900_v51, %s1795_s23  ;;  %v1682_v17 = vmin.u32 %v306_v11, %v304_v9 }
  0x3d   :  { %646 = vrot.lane.b32.xlu0 %v1905_v55, %s1788_s21  ;;  %v86_v28 = vadd.s32 536870912, %v85_v24  ;;  %v334_v4 = vand.u32 3, %v333_v5  ;;  %vm442_vm2 = vcmp.eq.s32.totalorder %v437_v63, 2  ;;  %vm439_vm5 = vcmp.eq.s32.totalorder %v437_v63, 0 }
  0x3e   :  { %v308_v21 = vclz %v1682_v17  ;;  %vm438_vm7 = vcmp.lt.s32.totalorder %v437_v63, 2 }
  0x3f   :  { %v87_v29 = vshrl.u32 %v86_v28, 30  ;;  %vm339_vm3 = vcmp.eq.s32.totalorder %v334_v4, 2  ;;  %vm336_vm6 = vcmp.eq.s32.totalorder %v334_v4, 0  ;;  %vm335_vm8 = vcmp.lt.s32.totalorder %v334_v4, 2 }
  0x40   :  { %655 = vrot.lane.b32.xlu1 %v1837_v2, %s1797_s24  ;;  %v1683_v25 = vadd.s32 4294967294, %v308_v21 }
  0x41   :  { %652 = vrot.lane.b32.xlu0 %v1840_v3, %s1798_s25  ;;  %v88_v37 = vshll.u32 %v87_v29, 30  ;;  %v111_v7 = vsub.s32 4, %v87_v29 }
  0x42   :  { %vm1684_vm12 = vcmp.lt.s32.totalorder %v1683_v25, 0 }
  0x43   :  { %v311_v30 = vsel %vm1684_vm12, 0, %v1683_v25  ;;  %v89_v26 = vsub.s32 %v85_v24, %v88_v37  ;;  %v112_v16 = vsel %vm27_vm1, %v111_v7, %v87_v29 }
  0x44   :  { %707 = vrot.lane.b32.xlu1 %v1828_v0, %s1800_s27  ;;  %v312_v32 = vsub.s32 32, %v311_v30  ;;  %v313_v34 = vshll.u32 %v304_v9, %v311_v30  ;;  %v316_v35 = vsub.s32 4294967266, %v311_v30 }
  0x45   :  { %710 = vrot.lane.b32.xlu0 %v1834_v1, %s1799_s26  ;;  %v91_v39 = vsub.s32 0, %v89_v26 }
  0x46   :  { %v314_v20 = vshrl.u32 %v296_v23, %v312_v32  ;;  %v317_v27 = vadd.s32 127, %v316_v35  ;;  %v114_v23 = vsel %vm2023_vm0, 0, %v112_v16 }
  0x47   :  { %v1674_v44 = vmin.u32 %v91_v39, %v89_v26 }
  0x48   :  { %713 = vrot.lane.b32.xlu1 %v1864_v14, %s1784_s18  ;;  %v315_v18 = vor.u32 %v314_v20, %v313_v34  ;;  %v318_v22 = vshll.u32 %v317_v27, 23  ;;  %v118_v20 = vadd.s32 3, %v114_v23 }
  0x49   :  { %716 = vrot.lane.b32.xlu0 %v1891_v43, %s1785_s0  ;;  %v93_v31 = vclz %v1674_v44 }
  0x4a   :  { %v319_v41 = vor.u32 4788187, %v318_v22  ;;  %v322_v42 = vcvt.s32.f32 %v315_v18  ;;  %v119_v27 = vand.u32 3, %v118_v20 }
  0x4b   :  { %v1675_v47 = vadd.s32 4294967294, %v93_v31 }
  0x4c   :  { %719 = vrot.lane.b32.xlu1 %v1905_v55, %s1789_s22  ;;  %v320_v45 = vand.u32 2147483647, %v319_v41  ;;  %vm124_vm9 = vcmp.eq.s32.totalorder %v119_v27, 2  ;;  %vm121_vm11 = vcmp.eq.s32.totalorder %v119_v27, 0 }
  0x4d   :  { %vm1676_vm15 = vcmp.lt.s32.totalorder %v1675_v47, 0 }
  0x4e   :  { %v323_v33 = vmul.f32 %v322_v42, %v320_v45  ;;  %v96_v36 = vsel %vm1676_vm15, 0, %v1675_v47  ;;  %vm117_vm15 = vweird.f32 %v1858_v12 }
  0x4f   :  { %v97_v40 = vsub.s32 32, %v96_v36  ;;  %v98_v52 = vshll.u32 %v89_v26, %v96_v36  ;;  %v101_v54 = vsub.s32 4294967266, %v96_v36  ;;  %v222_v26 = vand.u32 3, %v114_v23 }
  0x50   :  { %v324_v48 = vxor.u32 2147483648, %v323_v33 }
  0x51   :  { %v99_v58 = vshrl.u32 %v81_v50, %v97_v40  ;;  %v102_v59 = vadd.s32 127, %v101_v54  ;;  %vm227_vm10 = vcmp.eq.s32.totalorder %v222_v26, 2  ;;  %vm224_vm12 = vcmp.eq.s32.totalorder %v222_v26, 0 }
  0x52   :  { %v325_v38 = vsel %vm242_vm14, %v324_v48, %v323_v33  ;;  %vm223_vm14 = vcmp.lt.s32.totalorder %v222_v26, 2 }
  0x53   :  { %v328_v56 = vsel %vm241_vm13, %v1828_v0, %v325_v38  ;;  %v100_v60 = vor.u32 %v99_v58, %v98_v52  ;;  %v103_v61 = vshll.u32 %v102_v59, 23  ;;  %vm120_vm13 = vcmp.lt.s32.totalorder %v119_v27, 2 }
  0x54   :  { %1726 = vcosq.f32 %v328_v56 }
  0x55   :  { %1728 = vsinq.f32 %v328_v56  ;;  %v104_v62 = vor.u32 4788187, %v103_v61  ;;  %v107_v53 = vcvt.s32.f32 %v100_v60 }
  0x57   :  { %v105_v6 = vand.u32 2147483647, %v104_v62 }
  0x59   :  { %v108_v8 = vmul.f32 %v107_v53, %v105_v6 }
  0x5b   :  { %v109_v13 = vxor.u32 2147483648, %v108_v8 }
  0x5d   :  { %v110_v15 = vsel %vm27_vm1, %v109_v13, %v108_v8  ;;  %vm524_vm1 = vcmask 130048  }
  0x5e   :  { %v1727_v11 = vpop.eup %1726  ;;  %v113_v28 = vsel %vm2023_vm0, %v1858_v12, %v110_v15  ;;  %vm3003_vm0 = vcmask 64512  }
  0x5f   :  { %v1729_v17 = vpop.eup %1728  ;;  %v340_v19 = vxor.u32 2147483648, %v1727_v11  ;;  %1730 = vcosq.f32 %v113_v28 }
  0x60   :  { %v337_v21 = vxor.u32 2147483648, %v1729_v17  ;;  %1732 = vsinq.f32 %v113_v28 }
  0x61   :  { %v444_v24 = vsel %vm442_vm2, %v340_v19, %v1729_v17  ;;  %v341_v25 = vsel %vm339_vm3, %v340_v19, %v1729_v17  ;;  %vm526_vm2 = vcmask 195584   ;;  %vm528_vm3 = vcmask 261120  }
  0x62   :  { %v441_v29 = vsel %vm439_vm5, %v1727_v11, %v337_v21  ;;  %v338_v30 = vsel %vm336_vm6, %v1727_v11, %v337_v21  ;;  %vm532_vm5 = vcmask 392192   ;;  %vm3002_vm6 = vcmask 457728  }
  0x63   :  { %v445_v32 = vsel %vm438_vm7, %v441_v29, %v444_v24  ;;  %v342_v34 = vsel %vm335_vm8, %v338_v30, %v341_v25  ;;  %vm536_vm7 = vcmask 523264   ;;  %vm538_vm8 = vcmask 588800  }
  0x64   :  { %v2036_v35 = vsel %vm332_vm4, nan, %v445_v32  ;;  %v2040_v37 = vsel %vm332_vm4, nan, %v342_v34  ;;  %vm530_vm4 = vcmask 326656  }
  0x65   :  { %499 = vrot.lane.b32.xlu1 %v2036_v35, %s1801_s28  ;;  %495 = vrot.lane.b32.xlu0 %v2040_v37, %s1802_s29 }
  0x69   :  { %585 = vrot.lane.b32.xlu1 %v2040_v37, %s1786_s19  ;;  %588 = vrot.lane.b32.xlu0 %v2036_v35, %s1802_s29  ;;  %v1731_v18 = vpop.eup %1730 }
  0x6a   :  { %v1733_v22 = vpop.eup %1732  ;;  %v125_v39 = vxor.u32 2147483648, %v1731_v18 }
  0x6b   :  { %v122_v41 = vxor.u32 2147483648, %v1733_v22 }
  0x6c   :  { %v126_v42 = vsel %vm124_vm9, %v125_v39, %v1733_v22  ;;  %v229_v44 = vsel %vm227_vm10, %v125_v39, %v1733_v22  ;;  %vm3009_vm9 = vcmask 654336   ;;  %vm3008_vm10 = vcmask 719872  }
  0x6d   :  { %661 = vrot.lane.b32.xlu1 %v2036_v35, %s1786_s19  ;;  %658 = vrot.lane.b32.xlu0 %v2040_v37, %s1787_s20  ;;  %v123_v45 = vsel %vm121_vm11, %v1731_v18, %v122_v41  ;;  %v226_v46 = vsel %vm224_vm12, %v1731_v18, %v122_v41  ;;  %vm3007_vm11 = vcmask 785408   ;;  %vm3006_vm12 = vcmask 850944  }
  0x6e   :  { %v127_v31 = vsel %vm120_vm13, %v123_v45, %v126_v42  ;;  %v230_v33 = vsel %vm223_vm14, %v226_v46, %v229_v44  ;;  %vm3005_vm13 = vcmask 916480   ;;  %vm3004_vm14 = vcmask 982016  }
  0x6f   :  { %v2055_v47 = vsel %vm117_vm15, nan, %v127_v31  ;;  %v2057_v48 = vsel %vm117_vm15, nan, %v230_v33  ;;  %vm556_vm15 = vcmask 1043456  }
  0x70   :  { %v232_v49 = vmul.f32 2.0, %v2055_v47 }
  0x71   :  { %515 = vrot.lane.b32.xlu1 %v2057_v48, %s1799_s26  ;;  %511 = vrot.lane.b32.xlu0 %v2055_v47, %s1800_s27 }
  0x72   :  { %v2069_v12 = vmul.f32 %v232_v49, %v2057_v48  ;;  %v234_v50 = vmul.f32 %v232_v49, %v2055_v47 }
  0x74   :  { %v2080_v36 = vsub.f32 1.0, %v234_v50  ;;  %v236_v38 = vmul.f32 2.0, %v2069_v12 }
  0x75   :  { %597 = vrot.lane.b32.xlu1 %v2055_v47, %s1803_s30  ;;  %600 = vrot.lane.b32.xlu0 %v2057_v48, %s1800_s27 }
  0x76   :  { %v2088_v40 = vmul.f32 %v236_v38, %v2080_v36  ;;  %v238_v52 = vmul.f32 %v236_v38, %v2069_v12 }
  0x78   :  { %v2097_v56 = vsub.f32 1.0, %v238_v52 }
  0x79   :  { %673 = vrot.lane.b32.xlu1 %v2057_v48, %s1803_s30  ;;  %670 = vrot.lane.b32.xlu0 %v2055_v47, %s1804_s2 }
  0x7d   :  { %603 = vrot.lane.b32.xlu1 %v2069_v12, %s1799_s26  ;;  %519 = vrot.lane.b32.xlu0 %v2069_v12, %s1784_s18 }
  0x81   :  { %694 = vrot.lane.b32.xlu1 %v2080_v36, %s1799_s26  ;;  %676 = vrot.lane.b32.xlu0 %v2069_v12, %s1800_s27 }
  0x85   :  { %v2091_v54 = vpop.permute.xlu1 %561  ;;  %591 = vrot.lane.b32.xlu1 %v2088_v40, %s1801_s28  ;;  %621 = vrot.lane.b32.xlu0 %v2080_v36, %s1784_s18 }
  0x86   :  { %v606_v49 = vsel %vm3003_vm0, %v2091_v54, %v1834_v1 }
  0x87   :  { %v2099_v57 = vpop.permute.xlu0 %463 }
  0x88   :  { %v523_v39 = vsel %vm3003_vm0, %v1828_v0, %v2099_v57 }
  0x89   :  { %v2101_v58 = vpop.permute.xlu1 %491  ;;  %503 = vrot.lane.b32.xlu0 %v2088_v40, %s1804_s2  ;;  %507 = vrot.lane.b32.xlu1 %v2097_v56, %s1803_s30 }
  0x8b   :  { %v2109_v5 = vpop.permute.xlu0 %487 }
  0x8d   :  { %v2107_v59 = vpop.permute.xlu1 %471  ;;  %664 = vrot.lane.b32.xlu0 %v2088_v40, %s1802_s29  ;;  %667 = vrot.lane.b32.xlu1 %v2097_v56, %s1801_s28 }
  0x8f   :  { %v2119_v61 = vpop.permute.xlu0 %467 }
  0x90   :  { %v525_v44 = vsel %vm524_vm1, %v523_v39, %v2119_v61 }
  0x91   :  { %v2115_v60 = vpop.permute.xlu1 %567  ;;  %594 = vrot.lane.b32.xlu0 %v2097_v56, %s1804_s2  ;;  %725 = vrot.lane.b32.xlu1 %v1840_v3, %s1795_s23  ;;  %v527_v33 = vsel %vm526_vm2, %v525_v44, %v2107_v59 }
  0x93   :  { %v2129_v53 = vpop.permute.xlu0 %564 }
  0x94   :  { %v607_v54 = vsel %vm524_vm1, %v606_v49, %v2129_v53 }
  0x95   :  { %722 = vrot.lane.b32.xlu0 %v1900_v51, %s1788_s21  ;;  %731 = vrot.lane.b32.xlu1 %v2040_v37, %s1797_s24 }
  0x96   :  { %v2127_v62 = vpop.permute.xlu1 %475 }
  0x97   :  { %v2139_v4 = vpop.permute.xlu0 %570  ;;  %v529_v38 = vsel %vm528_vm3, %v527_v33, %v2127_v62  ;;  %v608_v62 = vsel %vm526_vm2, %v607_v54, %v2115_v60 }
  0x99   :  { %728 = vrot.lane.b32.xlu0 %v1837_v2, %s1798_s25  ;;  %737 = vrot.lane.b32.xlu1 %v2088_v40, %s1786_s19 }
  0x9a   :  { %v2135_v63 = vpop.permute.xlu1 %483 }
  0x9b   :  { %v2149_v7 = vpop.permute.xlu0 %479 }
  0x9c   :  { %v531_v61 = vsel %vm530_vm4, %v529_v38, %v2149_v7 }
  0x9d   :  { %734 = vrot.lane.b32.xlu0 %v2036_v35, %s1787_s20  ;;  %743 = vrot.lane.b32.xlu1 %v2055_v47, %s1801_s28 }
  0x9e   :  { %v2145_v6 = vpop.permute.xlu1 %573 }
  0x9f   :  { %v2157_v9 = vpop.permute.xlu0 %576 }
  0xa1   :  { %740 = vrot.lane.b32.xlu0 %v2097_v56, %s1802_s29  ;;  %749 = vrot.lane.b32.xlu1 %v2069_v12, %s1803_s30 }
  0xa2   :  { %v2155_v8 = vpop.permute.xlu1 %579 }
  0xa3   :  { %v2167_v13 = vpop.permute.xlu0 %582 }
  0xa5   :  { %746 = vrot.lane.b32.xlu0 %v2057_v48, %s1804_s2  ;;  %783 = vrot.lane.b32.xlu1 %v1834_v1, %s1800_s27 }
  0xa6   :  { %v638_v11 = vpop.permute.xlu1 %637 }
  0xa7   :  { %v635_v17 = vpop.permute.xlu0 %634 }
  0xa8   :  { %v679_v45 = vsel %vm3003_vm0, %v635_v17, %v638_v11 }
  0xa9   :  { %767 = vrot.lane.b32.xlu0 %v2080_v36, %s1800_s27  ;;  %789 = vrot.lane.b32.xlu1 %v1853_v10, %s1784_s18  ;;  %v680_v50 = vsel %vm524_vm1, %v679_v45, %v1864_v14 }
  0xaa   :  { %v2173_v16 = vpop.permute.xlu1 %643 }
  0xab   :  { %v641_v21 = vpop.permute.xlu0 %640 }
  0xac   :  { %v681_v59 = vsel %vm526_vm2, %v680_v50, %v641_v21  ;;  %v533_v21 = vsel %vm532_vm5, %v531_v61, %v2135_v63 }
  0xad   :  { %780 = vrot.lane.b32.xlu0 %v1828_v0, %s1803_s30  ;;  %795 = vrot.lane.b32.xlu1 %v1900_v51, %s1789_s22  ;;  %v682_v11 = vsel %vm528_vm3, %v681_v59, %v2173_v16  ;;  %v535_v63 = vsel %vm3002_vm6, %v533_v21, %v2109_v5 }
  0xae   :  { %v2179_v19 = vpop.permute.xlu1 %649 }
  0xaf   :  { %v2191_v24 = vpop.permute.xlu0 %646 }
  0xb0   :  { %v683_v60 = vsel %vm530_vm4, %v682_v11, %v2191_v24 }
  0xb1   :  { %786 = vrot.lane.b32.xlu0 %v1864_v14, %s1799_s26  ;;  %801 = vrot.lane.b32.xlu1 %v1837_v2, %s1795_s23  ;;  %v684_v44 = vsel %vm532_vm5, %v683_v60, %v2179_v19 }
  0xb2   :  { %v2189_v15 = vpop.permute.xlu1 %655 }
  0xb3   :  { %v2201_v28 = vpop.permute.xlu0 %652 }
  0xb5   :  { %792 = vrot.lane.b32.xlu0 %v1905_v55, %s1785_s0  ;;  %807 = vrot.lane.b32.xlu1 %v2036_v35, %s1797_s24 }
  0xb6   :  { %v2197_v25 = vpop.permute.xlu1 %707 }
  0xb7   :  { %v2209_v23 = vpop.permute.xlu0 %710 }
  0xb9   :  { %798 = vrot.lane.b32.xlu0 %v1840_v3, %s1788_s21  ;;  %813 = vrot.lane.b32.xlu1 %v2097_v56, %s1786_s19 }
  0xba   :  { %v2211_v29 = vpop.permute.xlu1 %713 }
  0xbb   :  { %v2217_v30 = vpop.permute.xlu0 %716 }
  0xbd   :  { %804 = vrot.lane.b32.xlu0 %v2040_v37, %s1798_s25  ;;  %819 = vrot.lane.b32.xlu1 %v2057_v48, %s1801_s28 }
  0xbe   :  { %v2219_v32 = vpop.permute.xlu1 %719 }
  0xc1   :  { %810 = vrot.lane.b32.xlu0 %v2088_v40, %s1787_s20  ;;  %840 = vrot.lane.b32.xlu1 %v2080_v36, %s1803_s30 }
  0xc5   :  { %816 = vrot.lane.b32.xlu0 %v2055_v47, %s1802_s29  ;;  %853 = vrot.lane.b32.xlu1 %v1828_v0, %s1804_s2 }
  0xc9   :  { %822 = vrot.lane.b32.xlu0 %v2069_v12, %s1804_s2  ;;  %859 = vrot.lane.b32.xlu1 %v1864_v14, %s1800_s27 }
  0xcd   :  { %856 = vrot.lane.b32.xlu0 %v1834_v1, %s1803_s30  ;;  %865 = vrot.lane.b32.xlu1 %v1891_v43, %s1784_s18 }
  0xd1   :  { %862 = vrot.lane.b32.xlu0 %v1853_v10, %s1799_s26  ;;  %871 = vrot.lane.b32.xlu1 %v1840_v3, %s1789_s22 }
  0xd5   :  { %868 = vrot.lane.b32.xlu0 %v1900_v51, %s1785_s0  ;;  %877 = vrot.lane.b32.xlu1 %v2040_v37, %s1795_s23 }
  0xd7   :  { %v2227_v34 = vpop.permute.xlu1 %499  ;;  %v2229_v20 = vpop.permute.xlu0 %495 }
  0xd9   :  { %874 = vrot.lane.b32.xlu0 %v1837_v2, %s1788_s21  ;;  %883 = vrot.lane.b32.xlu1 %v2088_v40, %s1797_s24 }
  0xdb   :  { %v2235_v27 = vpop.permute.xlu1 %585  ;;  %v2237_v26 = vpop.permute.xlu0 %588 }
  0xdd   :  { %880 = vrot.lane.b32.xlu0 %v2036_v35, %s1798_s25  ;;  %889 = vrot.lane.b32.xlu1 %v2055_v47, %s1786_s19 }
  0xdf   :  { %v2243_v18 = vpop.permute.xlu1 %661  ;;  %v2245_v22 = vpop.permute.xlu0 %658 }
  0xe1   :  { %886 = vrot.lane.b32.xlu0 %v2097_v56, %s1787_s20  ;;  %895 = vrot.lane.b32.xlu1 %v2069_v12, %s1801_s28 }
  0xe3   :  { %v2256_v41 = vpop.permute.xlu1 %515  ;;  %v2258_v42 = vpop.permute.xlu0 %511 }
  0xe5   :  { %892 = vrot.lane.b32.xlu0 %v2057_v48, %s1802_s29  ;;  %929 = vrot.lane.b32.xlu1 %v1834_v1, %s1804_s2 }
  0xe7   :  { %v2267_v46 = vpop.permute.xlu1 %597  ;;  %v2269_v31 = vpop.permute.xlu0 %600 }
  0xe9   :  { %913 = vrot.lane.b32.xlu0 %v2080_v36, %s1804_s2  ;;  %935 = vrot.lane.b32.xlu1 %v1853_v10, %s1800_s27 }
  0xeb   :  { %v2284_v52 = vpop.permute.xlu1 %673  ;;  %v2286_v57 = vpop.permute.xlu0 %670 }
  0xed   :  { %926 = vrot.lane.b32.xlu0 %v1828_v0, %s1801_s28  ;;  %941 = vrot.lane.b32.xlu1 %v1905_v55, %s1784_s18  ;;  %v609_v0 = vsel %vm528_vm3, %v608_v62, %v2139_v4  ;;  %v537_v4 = vsel %vm536_vm7, %v535_v63, %v2101_v58 }
  0xee   :  { %v610_v39 = vsel %vm530_vm4, %v609_v0, %v2145_v6  ;;  %v685_v6 = vsel %vm3002_vm6, %v684_v44, %v2201_v28  ;;  %v539_v19 = vsel %vm538_vm8, %v537_v4, %v2229_v20  ;;  %v752_v28 = vsel %vm3003_vm0, %v2197_v25, %v2209_v23 }
  0xef   :  { %v2301_v17 = vpop.permute.xlu1 %603  ;;  %v520_v53 = vpop.permute.xlu0 %519  ;;  %v611_v5 = vsel %vm532_vm5, %v610_v39, %v2157_v9  ;;  %v686_v9 = vsel %vm536_vm7, %v685_v6, %v2189_v15  ;;  %v541_v20 = vsel %vm3009_vm9, %v539_v19, %v2227_v34  ;;  %v753_v25 = vsel %vm524_vm1, %v752_v28, %v2211_v29 }
  0xf0   :  { %v612_v58 = vsel %vm3002_vm6, %v611_v5, %v2155_v8  ;;  %v687_v50 = vsel %vm538_vm8, %v686_v9, %v2245_v22  ;;  %vm557_vm6 = vcmask 64516   ;;  %v754_v29 = vsel %vm526_vm2, %v753_v25, %v1853_v10 }
  0xf1   :  { %932 = vrot.lane.b32.xlu0 %v1864_v14, %s1803_s30  ;;  %947 = vrot.lane.b32.xlu1 %v1837_v2, %s1789_s22  ;;  %v613_v15 = vsel %vm536_vm7, %v612_v58, %v2167_v13  ;;  %v688_v54 = vsel %vm3009_vm9, %v687_v50, %v2243_v18  ;;  %vm558_vm0 = vmor %vm557_vm6, %vm556_vm15  ;;  %v755_v60 = vsel %vm528_vm3, %v754_v29, %v2217_v30  ;;  %vm3013_vm6 = vcmask 64512  }
  0xf2   :  { %v614_v34 = vsel %vm538_vm8, %v613_v15, %v2235_v27 }
  0xf3   :  { %v2313_v7 = vpop.permute.xlu1 %694  ;;  %v677_v16 = vpop.permute.xlu0 %676  ;;  %v615_v18 = vsel %vm3009_vm9, %v614_v34, %v2237_v26 }
  0xf5   :  { %938 = vrot.lane.b32.xlu0 %v1891_v43, %s1799_s26  ;;  %953 = vrot.lane.b32.xlu1 %v2036_v35, %s1795_s23 }
  0xf7   :  { %v592_v24 = vpop.permute.xlu1 %591  ;;  %v622_v45 = vpop.permute.xlu0 %621 }
  0xf8   :  { %v616_v11 = vsel %vm3008_vm10, %v615_v18, %v592_v24 }
  0xf9   :  { %944 = vrot.lane.b32.xlu0 %v1840_v3, %s1785_s0  ;;  %959 = vrot.lane.b32.xlu1 %v2097_v56, %s1797_s24 }
  0xfb   :  { %v504_v33 = vpop.permute.xlu0 %503  ;;  %v508_v49 = vpop.permute.xlu1 %507 }
  0xfc   :  { %v543_v38 = vsel %vm3008_vm10, %v541_v20, %v504_v33 }
  0xfd   :  { %v545_v8 = vsel %vm3007_vm11, %v543_v38, %v508_v49  ;;  %950 = vrot.lane.b32.xlu0 %v2040_v37, %s1788_s21 }
  0xfe   :  { %v547_v23 = vsel %vm3006_vm12, %v545_v8, %v2258_v42 }
  0xff   :  { %v549_v22 = vsel %vm3005_vm13, %v547_v23, %v2256_v41  ;;  %v665_v59 = vpop.permute.xlu0 %664  ;;  %v668_v61 = vpop.permute.xlu1 %667 }
 0x100   :  { %v551_v62 = vsel %vm3004_vm14, %v549_v22, %v520_v53  ;;  %v689_v13 = vsel %vm3008_vm10, %v688_v54, %v665_v59 }
 0x101   :  { %v554_v42 = vcombine.low %v551_v62, %v2080_v36  ;;  %v690_v27 = vsel %vm3007_vm11, %v689_v13, %v668_v61  ;;  %956 = vrot.lane.b32.xlu0 %v2088_v40, %s1798_s25 }
 0x102   :  { %v691_v41 = vsel %vm3006_vm12, %v690_v27, %v2286_v57 }
 0x103   :  { %v692_v53 = vsel %vm3005_vm13, %v691_v41, %v2284_v52  ;;  %v595_v21 = vpop.permute.xlu0 %594  ;;  %v726_v0 = vpop.permute.xlu1 %725  ;;  %559 = vst.msk [vmem:[#allocation5] sm:$0xff] %vm558_vm0, %v554_v42  ;;  %v756_v52 = vsel %vm530_vm4, %v755_v60, %v2219_v32  ;;  %vm3012_vm0 = vcmask 457728  }
 0x104   :  { %v617_v63 = vsel %vm3007_vm11, %v616_v11, %v595_v21  ;;  %v693_v39 = vsel %vm3004_vm14, %v692_v53, %v677_v16  ;;  %vm3014_vm15 = vmmov %vm3012_vm0 }
 0x105   :  { %v618_v26 = vsel %vm3006_vm12, %v617_v63, %v2267_v46  ;;  %v697_v57 = vcombine.low %v693_v39, %v2313_v7 }
 0x106   :  { %v619_v44 = vsel %vm3005_vm13, %v618_v26, %v2269_v31 }
 0x107   :  { %698 = vrot.lane.b32.xlu0 %v697_v57, %s1789_s22  ;;  %v723_v4 = vpop.permute.xlu0 %722  ;;  %v620_v30 = vsel %vm3004_vm14, %v619_v44, %v2301_v17  ;;  %v732_v24 = vpop.permute.xlu1 %731 }
 0x108   :  { %v757_v16 = vsel %vm532_vm5, %v756_v52, %v723_v4  ;;  %v624_v5 = vcombine.low %v620_v30, %v622_v45 }
 0x109   :  { %v758_v46 = vsel %vm3012_vm0, %v757_v16, %v726_v0  ;;  %vm3015_vm0 = vmmov %vm3013_vm6 }
 0x10a   :  { %625 = vrot.lane.b32.xlu1 %v624_v5, %s1785_s0 }
 0x10b   :  { %v729_v7 = vpop.permute.xlu0 %728  ;;  %v738_v6 = vpop.permute.xlu1 %737 }
 0x10c   :  { %v759_v31 = vsel %vm536_vm7, %v758_v46, %v729_v7 }
 0x10d   :  { %v760_v32 = vsel %vm538_vm8, %v759_v31, %v732_v24 }
 0x10f   :  { %v735_v19 = vpop.permute.xlu0 %734  ;;  %v744_v58 = vpop.permute.xlu1 %743 }
 0x110   :  { %v761_v9 = vsel %vm3009_vm9, %v760_v32, %v735_v19 }
 0x111   :  { %v762_v17 = vsel %vm3008_vm10, %v761_v9, %v738_v6 }
 0x113   :  { %v741_v28 = vpop.permute.xlu0 %740  ;;  %v750_v20 = vpop.permute.xlu1 %749 }
 0x114   :  { %v763_v45 = vsel %vm3007_vm11, %v762_v17, %v741_v28 }
 0x115   :  { %v764_v33 = vsel %vm3006_vm12, %v763_v45, %v744_v58 }
 0x117   :  { %v747_v49 = vpop.permute.xlu0 %746  ;;  %v784_v50 = vpop.permute.xlu1 %783 }
 0x118   :  { %v765_v38 = vsel %vm3005_vm13, %v764_v33, %v747_v49 }
 0x119   :  { %v766_v8 = vsel %vm3004_vm14, %v765_v38, %v750_v20 }
 0x11b   :  { %v768_v15 = vpop.permute.xlu0 %767  ;;  %v790_v25 = vpop.permute.xlu1 %789 }
 0x11c   :  { %v770_v23 = vcombine.low %v766_v8, %v768_v15 }
 0x11e   :  { %771 = vrot.lane.b32.xlu1 %v770_v23, %s1788_s21 }
 0x11f   :  { %v781_v34 = vpop.permute.xlu0 %780  ;;  %v796_v22 = vpop.permute.xlu1 %795 }
 0x120   :  { %v825_v54 = vsel %vm3013_vm6, %v781_v34, %v784_v50  ;;  %vm3016_vm6 = vmmov %vm3014_vm15 }
 0x123   :  { %v787_v59 = vpop.permute.xlu0 %786  ;;  %v802_v61 = vpop.permute.xlu1 %801 }
 0x124   :  { %v826_v62 = vsel %vm524_vm1, %v825_v54, %v787_v59 }
 0x125   :  { %v827_v13 = vsel %vm526_vm2, %v826_v62, %v790_v25 }
 0x126   :  { %v828_v29 = vsel %vm528_vm3, %v827_v13, %v1891_v43 }
 0x127   :  { %v793_v42 = vpop.permute.xlu0 %792  ;;  %v808_v27 = vpop.permute.xlu1 %807 }
 0x128   :  { %v829_v18 = vsel %vm530_vm4, %v828_v29, %v793_v42 }
 0x129   :  { %v830_v41 = vsel %vm532_vm5, %v829_v18, %v796_v22 }
 0x12b   :  { %v799_v11 = vpop.permute.xlu0 %798  ;;  %v814_v53 = vpop.permute.xlu1 %813 }
 0x12c   :  { %v831_v21 = vsel %vm3014_vm15, %v830_v41, %v799_v11  ;;  %vm630_vm15 = vcmask 1043520  }
 0x12d   :  { %v832_v0 = vsel %vm536_vm7, %v831_v21, %v802_v61 }
 0x12f   :  { %v805_v60 = vpop.permute.xlu0 %804  ;;  %v820_v63 = vpop.permute.xlu1 %819 }
 0x130   :  { %v833_v39 = vsel %vm538_vm8, %v832_v0, %v805_v60 }
 0x131   :  { %v834_v26 = vsel %vm3009_vm9, %v833_v39, %v808_v27 }
 0x133   :  { %v811_v57 = vpop.permute.xlu0 %810  ;;  %v841_v44 = vpop.permute.xlu1 %840 }
 0x134   :  { %v835_v52 = vsel %vm3008_vm10, %v834_v26, %v811_v57 }
 0x135   :  { %v836_v4 = vsel %vm3007_vm11, %v835_v52, %v814_v53 }
 0x137   :  { %v817_v30 = vpop.permute.xlu0 %816  ;;  %v854_v24 = vpop.permute.xlu1 %853 }
 0x138   :  { %v837_v16 = vsel %vm3006_vm12, %v836_v4, %v817_v30 }
 0x139   :  { %v838_v5 = vsel %vm3005_vm13, %v837_v16, %v820_v63 }
 0x13b   :  { %v823_v46 = vpop.permute.xlu0 %822  ;;  %v860_v7 = vpop.permute.xlu1 %859 }
 0x13c   :  { %v839_v6 = vsel %vm3004_vm14, %v838_v5, %v823_v46 }
 0x13d   :  { %v843_v31 = vcombine.low %v839_v6, %v841_v44  ;;  %v2447_v44 = vld [vmem:[#allocation2] sm:$0xf] }
 0x13f   :  { %844 = vrot.lane.b32.xlu0 %v843_v31, %s1795_s23  ;;  %v857_v32 = vpop.permute.xlu0 %856  ;;  %v866_v19 = vpop.permute.xlu1 %865 }
 0x140   :  { %v898_v58 = vsel %vm3015_vm0, %v854_v24, %v857_v32  ;;  %vm631_vm0 = vcmask 130052  }
 0x141   :  { %v899_v9 = vsel %vm524_vm1, %v898_v58, %v860_v7 }
 0x143   :  { %v863_v17 = vpop.permute.xlu0 %862  ;;  %v872_v28 = vpop.permute.xlu1 %871  ;;  %962 = vrot.lane.b32.xlu0 %v2055_v47, %s1787_s20 }
 0x144   :  { %v900_v20 = vsel %vm526_vm2, %v899_v9, %v863_v17 }
 0x145   :  { %v901_v45 = vsel %vm528_vm3, %v900_v20, %v866_v19 }
 0x146   :  { %v902_v33 = vsel %vm530_vm4, %v901_v45, %v1905_v55 }
 0x147   :  { %v869_v49 = vpop.permute.xlu0 %868  ;;  %v878_v50 = vpop.permute.xlu1 %877  ;;  %968 = vrot.lane.b32.xlu0 %v2069_v12, %s1802_s29 }
 0x148   :  { %v903_v38 = vsel %vm532_vm5, %v902_v33, %v869_v49 }
 0x149   :  { %v904_v8 = vsel %vm3016_vm6, %v903_v38, %v872_v28  ;;  %vm703_vm6 = vcmask 1043584  }
 0x14b   :  { %v875_v15 = vpop.permute.xlu0 %874  ;;  %v884_v25 = vpop.permute.xlu1 %883 }
 0x14c   :  { %v905_v23 = vsel %vm536_vm7, %v904_v8, %v875_v15 }
 0x14d   :  { %v906_v34 = vsel %vm538_vm8, %v905_v23, %v878_v50 }
 0x14f   :  { %v881_v22 = vpop.permute.xlu0 %880  ;;  %v890_v54 = vpop.permute.xlu1 %889 }
 0x150   :  { %v907_v59 = vsel %vm3009_vm9, %v906_v34, %v881_v22  ;;  %vm777_vm9 = vcmask 261124  }
 0x151   :  { %v908_v61 = vsel %vm3008_vm10, %v907_v59, %v884_v25  ;;  %vm776_vm10 = vcmask 1043648  }
 0x153   :  { %v887_v62 = vpop.permute.xlu0 %886  ;;  %v896_v29 = vpop.permute.xlu1 %895 }
 0x154   :  { %v909_v13 = vsel %vm3007_vm11, %v908_v61, %v887_v62  ;;  %vm3017_vm11 = vcmask 64512  }
 0x155   :  { %v910_v42 = vsel %vm3006_vm12, %v909_v13, %v890_v54 }
 0x157   :  { %v893_v27 = vpop.permute.xlu0 %892  ;;  %v930_v41 = vpop.permute.xlu1 %929 }
 0x158   :  { %v911_v18 = vsel %vm3005_vm13, %v910_v42, %v893_v27  ;;  %vm632_vm13 = vmor %vm631_vm0, %vm630_vm15  ;;  %vm3018_vm0 = vcmask 64512  }
 0x159   :  { %v912_v11 = vsel %vm3004_vm14, %v911_v18, %v896_v29  ;;  %vm704_vm14 = vcmask 195588   ;;  %vm778_vm15 = vmor %vm777_vm9, %vm776_vm10  ;;  %vm3019_vm9 = vcmask 457728   ;;  %vm3020_vm10 = vcmask 654336  }
 0x15a   :  { %vm705_vm12 = vmor %vm704_vm14, %vm703_vm6  ;;  %vm849_vm14 = vcmask 1043712   ;;  %vm922_vm6 = vcmask 1043776  }
 0x15b   :  { %v914_v53 = vpop.permute.xlu0 %913  ;;  %v936_v0 = vpop.permute.xlu1 %935 }
 0x15c   :  { %v916_v21 = vcombine.low %v912_v11, %v914_v53 }
 0x15e   :  { %917 = vrot.lane.b32.xlu1 %v916_v21, %s1798_s25 }
 0x15f   :  { %v927_v60 = vpop.permute.xlu0 %926  ;;  %v942_v39 = vpop.permute.xlu1 %941 }
 0x160   :  { %v971_v17 = vsel %vm3018_vm0, %v927_v60, %v930_v41  ;;  %vm3023_vm0 = vcmask 850944  }
 0x162   :  { %965 = vrot.lane.b32.xlu1 %v2057_v48, %s1786_s19 }
 0x163   :  { %v933_v63 = vpop.permute.xlu0 %932  ;;  %v948_v57 = vpop.permute.xlu1 %947 }
 0x164   :  { %v972_v45 = vsel %vm524_vm1, %v971_v17, %v933_v63 }
 0x165   :  { %v973_v49 = vsel %vm526_vm2, %v972_v45, %v936_v0 }
 0x166   :  { %986 = vrot.lane.b32.xlu1 %v2080_v36, %s1801_s28 }
 0x167   :  { %v939_v26 = vpop.permute.xlu0 %938  ;;  %v954_v30 = vpop.permute.xlu1 %953 }
 0x168   :  { %v974_v50 = vsel %vm528_vm3, %v973_v49, %v939_v26 }
 0x169   :  { %v975_v38 = vsel %vm530_vm4, %v974_v50, %v942_v39 }
 0x16a   :  { %999 = vrot.lane.b32.xlu1 %v2447_v44, %s1802_s29  ;;  %v976_v8 = vsel %vm532_vm5, %v975_v38, %v1900_v51 }
 0x16b   :  { %v945_v52 = vpop.permute.xlu0 %944  ;;  %v960_v16 = vpop.permute.xlu1 %959 }
 0x16c   :  { %v977_v15 = vsel %vm3019_vm9, %v976_v8, %v945_v52  ;;  %vm3025_vm9 = vcmask 982016  }
 0x16d   :  { %v978_v25 = vsel %vm536_vm7, %v977_v15, %v948_v57 }
 0x16e   :  { %1005 = vrot.lane.b32.xlu1 %v1864_v14, %s1804_s2 }
 0x16f   :  { %v951_v4 = vpop.permute.xlu0 %950 }
 0x170   :  { %v979_v23 = vsel %vm538_vm8, %v978_v25, %v951_v4 }
 0x171   :  { %v980_v34 = vsel %vm3020_vm10, %v979_v23, %v954_v30  ;;  %vm995_vm10 = vcmask 1043840  }
 0x172   :  { %1011 = vrot.lane.b32.xlu1 %v1891_v43, %s1800_s27 }
 0x173   :  { %v957_v24 = vpop.permute.xlu0 %956 }
 0x176   :  { %1017 = vrot.lane.b32.xlu1 %v1900_v51, %s1784_s18 }
 0x179   :  { %v699_v5 = vpop.permute.xlu0 %698 }
 0x17a   :  { %1023 = vrot.lane.b32.xlu1 %v2040_v37, %s1789_s22  ;;  %v700_v46 = vrot.slane %v699_v5, 4 }
 0x17c   :  { %v626_v7 = vpop.permute.xlu1 %625  ;;  %v701_v32 = vsel %vm524_vm1, %v700_v46, %v699_v5 }
 0x17d   :  { %v627_v6 = vrot.slane %v626_v7, 4 }
 0x17e   :  { %1029 = vrot.lane.b32.xlu1 %v2088_v40, %s1795_s23 }
 0x17f   :  { %v628_v31 = vsel %vm3017_vm11, %v627_v6, %v626_v7  ;;  %vm850_vm11 = vcmask 326660  }
 0x180   :  { %633 = vst.msk [vmem:[#allocation5 + $0x4] sm:$0xff] %vm632_vm13, %v628_v31  ;;  %vm3021_vm13 = vcmask 719872  }
 0x181   :  { %706 = vst.msk [vmem:[#allocation5 + $0x8] sm:$0xff] %vm705_vm12, %v701_v32  ;;  %vm851_vm12 = vmor %vm850_vm11, %vm849_vm14  ;;  %v981_v22 = vsel %vm3021_vm13, %v980_v34, %v957_v24  ;;  %vm3022_vm14 = vcmask 785408   ;;  %vm996_vm13 = vcmask 457732  }
 0x182   :  { %1035 = vrot.lane.b32.xlu1 %v2055_v47, %s1797_s24  ;;  %v982_v59 = vsel %vm3022_vm14, %v981_v22, %v960_v16  ;;  %vm3027_vm14 = vcmask 457728  }
 0x186   :  { %1041 = vrot.lane.b32.xlu1 %v2069_v12, %s1786_s19 }
 0x190   :  { %v772_v19 = vpop.permute.xlu1 %771 }
 0x191   :  { %v773_v58 = vrot.slane %v772_v19, 4 }
 0x193   :  { %v774_v9 = vsel %vm526_vm2, %v773_v58, %v772_v19 }
 0x194   :  { %779 = vst.msk [vmem:[#allocation5 + $0xc] sm:$0xff] %vm778_vm15, %v774_v9  ;;  %vm923_vm15 = vcmask 392196  }
 0x195   :  { %vm924_vm11 = vmor %vm923_vm15, %vm922_vm6  ;;  %vm3026_vm15 = vcmask 64512  }
 0x196   :  { %vm997_vm6 = vmor %vm996_vm13, %vm995_vm10  ;;  %vm3032_vm10 = vcmask 916480   ;;  %vm3033_vm13 = vcmask 982016  }
 0x1b1   :  { %v845_v28 = vpop.permute.xlu0 %844 }
 0x1b2   :  { %v846_v20 = vrot.slane %v845_v28, 4 }
 0x1b4   :  { %v847_v33 = vsel %vm528_vm3, %v846_v20, %v845_v28 }
 0x1b5   :  { %852 = vst.msk [vmem:[#allocation5 + $0x10] sm:$0xff] %vm851_vm12, %v847_v33  ;;  %v963_v61 = vpop.permute.xlu0 %962  ;;  %vm3024_vm12 = vcmask 916480  }
 0x1b6   :  { %v983_v29 = vsel %vm3023_vm0, %v982_v59, %v963_v61  ;;  %vm3029_vm0 = vcmask 719872  }
 0x1b9   :  { %v969_v18 = vpop.permute.xlu0 %968 }
 0x1d0   :  { %v918_v54 = vpop.permute.xlu1 %917 }
 0x1d1   :  { %v919_v62 = vrot.slane %v918_v54, 4 }
 0x1d3   :  { %v920_v13 = vsel %vm530_vm4, %v919_v62, %v918_v54 }
 0x1d4   :  { %925 = vst.msk [vmem:[#allocation5 + $0x14] sm:$0xff] %vm924_vm11, %v920_v13  ;;  %v966_v42 = vpop.permute.xlu1 %965  ;;  %vm3028_vm11 = vcmask 654336  }
 0x1d5   :  { %v984_v27 = vsel %vm3024_vm12, %v983_v29, %v966_v42  ;;  %vm3030_vm12 = vcmask 785408  }
 0x1d6   :  { %v985_v41 = vsel %vm3025_vm9, %v984_v27, %v969_v18  ;;  %vm3031_vm9 = vcmask 850944  }
 0x1d8   :  { %v987_v11 = vpop.permute.xlu1 %986 }
 0x1d9   :  { %v989_v53 = vcombine.low %v985_v41, %v987_v11 }
 0x1db   :  { %990 = vrot.lane.b32.xlu0 %v989_v53, %s1797_s24 }
 0x1dc   :  { %v1000_v21 = vpop.permute.xlu1 %999 }
 0x1df   :  { %1002 = vrot.lane.b32.xlu0 %v1834_v1, %s1801_s28 }
 0x1e0   :  { %v1006_v0 = vpop.permute.xlu1 %1005 }
 0x1e3   :  { %1008 = vrot.lane.b32.xlu0 %v1853_v10, %s1803_s30 }
 0x1e4   :  { %v1012_v60 = vpop.permute.xlu1 %1011 }
 0x1e7   :  { %1014 = vrot.lane.b32.xlu0 %v1905_v55, %s1799_s26 }
 0x1e8   :  { %v1018_v4 = vpop.permute.xlu1 %1017 }
 0x1eb   :  { %1020 = vrot.lane.b32.xlu0 %v1837_v2, %s1785_s0 }
 0x1ec   :  { %v1024_v5 = vpop.permute.xlu1 %1023 }
 0x1ef   :  { %1026 = vrot.lane.b32.xlu0 %v2036_v35, %s1788_s21 }
 0x1f0   :  { %v1030_v9 = vpop.permute.xlu1 %1029 }
 0x1f3   :  { %1032 = vrot.lane.b32.xlu0 %v2097_v56, %s1798_s25 }
 0x1f4   :  { %v1036_v45 = vpop.permute.xlu1 %1035 }
 0x1f7   :  { %1038 = vrot.lane.b32.xlu0 %v2057_v48, %s1787_s20 }
 0x1f8   :  { %v1042_v25 = vpop.permute.xlu1 %1041 }
 0x1fb   :  { %1059 = vrot.lane.b32.xlu0 %v2080_v36, %s1802_s29 }
 0x1ff   :  { %1072 = vrot.lane.b32.xlu0 %v2447_v44, %s1786_s19 }
 0x203   :  { %1078 = vrot.lane.b32.xlu0 %v1864_v14, %s1801_s28 }
 0x207   :  { %1084 = vrot.lane.b32.xlu0 %v1891_v43, %s1803_s30 }
 0x20b   :  { %1090 = vrot.lane.b32.xlu0 %v1900_v51, %s1799_s26 }
 0x20f   :  { %1096 = vrot.lane.b32.xlu0 %v2040_v37, %s1785_s0 }
 0x213   :  { %1102 = vrot.lane.b32.xlu0 %v2088_v40, %s1788_s21 }
 0x217   :  { %1108 = vrot.lane.b32.xlu0 %v2055_v47, %s1798_s25 }
 0x21b   :  { %1114 = vrot.lane.b32.xlu0 %v2069_v12, %s1787_s20 }
 0x24d   :  { %v991_v63 = vpop.permute.xlu0 %990 }
 0x24e   :  { %v992_v39 = vrot.slane %v991_v63, 4 }
 0x250   :  { %v993_v26 = vsel %vm532_vm5, %v992_v39, %v991_v63 }
 0x251   :  { %998 = vst.msk [vmem:[#allocation5 + $0x18] sm:$0xff] %vm997_vm6, %v993_v26  ;;  %v1003_v57 = vpop.permute.xlu0 %1002  ;;  %vm1068_vm6 = vcmask 1043904  }
 0x252   :  { %v1044_v52 = vsel %vm3026_vm15, %v1000_v21, %v1003_v57  ;;  %vm1069_vm15 = vcmask 523268  }
 0x253   :  { %v1045_v30 = vsel %vm524_vm1, %v1044_v52, %v1006_v0 }
 0x255   :  { %v1009_v24 = vpop.permute.xlu0 %1008 }
 0x256   :  { %v1046_v16 = vsel %vm526_vm2, %v1045_v30, %v1009_v24 }
 0x257   :  { %v1047_v46 = vsel %vm528_vm3, %v1046_v16, %v1012_v60 }
 0x259   :  { %v1015_v7 = vpop.permute.xlu0 %1014 }
 0x25a   :  { %v1048_v6 = vsel %vm530_vm4, %v1047_v46, %v1015_v7 }
 0x25b   :  { %v1049_v31 = vsel %vm532_vm5, %v1048_v6, %v1018_v4 }
 0x25c   :  { %v1050_v32 = vsel %vm3027_vm14, %v1049_v31, %v1840_v3  ;;  %vm1070_vm14 = vmor %vm1069_vm15, %vm1068_vm6  ;;  %vm3040_vm6 = vcmask 850944   ;;  %vm3041_vm15 = vcmask 916480  }
 0x25d   :  { %v1021_v19 = vpop.permute.xlu0 %1020 }
 0x25e   :  { %v1051_v58 = vsel %vm536_vm7, %v1050_v32, %v1021_v19 }
 0x25f   :  { %v1052_v17 = vsel %vm538_vm8, %v1051_v58, %v1024_v5 }
 0x261   :  { %v1027_v28 = vpop.permute.xlu0 %1026 }
 0x262   :  { %v1053_v20 = vsel %vm3028_vm11, %v1052_v17, %v1027_v28  ;;  %vm3034_vm11 = vcmask 457728  }
 0x263   :  { %v1054_v33 = vsel %vm3029_vm0, %v1053_v20, %v1030_v9  ;;  %vm3035_vm0 = vcmask 64512  }
 0x265   :  { %v1033_v49 = vpop.permute.xlu0 %1032 }
 0x266   :  { %v1055_v50 = vsel %vm3030_vm12, %v1054_v33, %v1033_v49  ;;  %vm3036_vm12 = vmmov %vm3034_vm11 }
 0x267   :  { %v1056_v38 = vsel %vm3031_vm9, %v1055_v50, %v1036_v45  ;;  %vm3037_vm9 = vcmask 654336  }
 0x269   :  { %v1039_v8 = vpop.permute.xlu0 %1038 }
 0x26a   :  { %v1057_v15 = vsel %vm3032_vm10, %v1056_v38, %v1039_v8  ;;  %vm3038_vm10 = vcmask 719872  }
 0x26b   :  { %v1058_v23 = vsel %vm3033_vm13, %v1057_v15, %v1042_v25  ;;  %vm3039_vm13 = vcmask 785408  }
 0x26d   :  { %v1060_v34 = vpop.permute.xlu0 %1059 }
 0x26e   :  { %v1062_v22 = vcombine.low %v1058_v23, %v1060_v34 }
 0x270   :  { %1063 = vrot.lane.b32.xlu1 %v1062_v22, %s1787_s20 }
 0x271   :  { %v1073_v54 = vpop.permute.xlu0 %1072 }
 0x274   :  { %1075 = vrot.lane.b32.xlu1 %v1834_v1, %s1802_s29 }
 0x275   :  { %v1079_v59 = vpop.permute.xlu0 %1078 }
 0x278   :  { %1081 = vrot.lane.b32.xlu1 %v1853_v10, %s1804_s2 }
 0x279   :  { %v1085_v61 = vpop.permute.xlu0 %1084 }
 0x27c   :  { %1087 = vrot.lane.b32.xlu1 %v1905_v55, %s1800_s27 }
 0x27d   :  { %v1091_v18 = vpop.permute.xlu0 %1090 }
 0x280   :  { %1093 = vrot.lane.b32.xlu1 %v1840_v3, %s1784_s18 }
 0x281   :  { %v1097_v21 = vpop.permute.xlu0 %1096 }
 0x284   :  { %1099 = vrot.lane.b32.xlu1 %v2036_v35, %s1789_s22 }
 0x285   :  { %v1103_v52 = vpop.permute.xlu0 %1102 }
 0x288   :  { %1105 = vrot.lane.b32.xlu1 %v2097_v56, %s1795_s23 }
 0x289   :  { %v1109_v5 = vpop.permute.xlu0 %1108 }
 0x28c   :  { %1111 = vrot.lane.b32.xlu1 %v2057_v48, %s1797_s24 }
 0x28d   :  { %v1115_v58 = vpop.permute.xlu0 %1114 }
 0x290   :  { %1132 = vrot.lane.b32.xlu1 %v2080_v36, %s1786_s19 }
 0x294   :  { %1145 = vrot.lane.b32.xlu1 %v2447_v44, %s1787_s20 }
 0x298   :  { %1151 = vrot.lane.b32.xlu1 %v1864_v14, %s1802_s29 }
 0x29c   :  { %1157 = vrot.lane.b32.xlu1 %v1891_v43, %s1804_s2 }
 0x2a0   :  { %1163 = vrot.lane.b32.xlu1 %v1900_v51, %s1800_s27 }
 0x2a4   :  { %1169 = vrot.lane.b32.xlu1 %v1837_v2, %s1784_s18 }
 0x2a8   :  { %1175 = vrot.lane.b32.xlu1 %v2088_v40, %s1789_s22 }
 0x2ac   :  { %1181 = vrot.lane.b32.xlu1 %v2055_v47, %s1795_s23 }
 0x2b0   :  { %1187 = vrot.lane.b32.xlu1 %v2069_v12, %s1797_s24 }
 0x2e2   :  { %v1064_v62 = vpop.permute.xlu1 %1063 }
 0x2e3   :  { %v1065_v13 = vrot.slane %v1064_v62, 4 }
 0x2e5   :  { %v1066_v29 = vsel %vm3034_vm11, %v1065_v13, %v1064_v62  ;;  %vm1141_vm11 = vcmask 1043968  }
 0x2e6   :  { %1071 = vst.msk [vmem:[#allocation5 + $0x1c] sm:$0xff] %vm1070_vm14, %v1066_v29  ;;  %v1076_v42 = vpop.permute.xlu1 %1075  ;;  %vm3042_vm14 = vcmask 982016  }
 0x2e7   :  { %v1117_v27 = vsel %vm3035_vm0, %v1073_v54, %v1076_v42  ;;  %vm1142_vm0 = vcmask 588804  }
 0x2e8   :  { %v1118_v41 = vsel %vm524_vm1, %v1117_v27, %v1079_v59 }
 0x2ea   :  { %v1082_v11 = vpop.permute.xlu1 %1081 }
 0x2eb   :  { %v1119_v53 = vsel %vm526_vm2, %v1118_v41, %v1082_v11 }
 0x2ec   :  { %v1120_v0 = vsel %vm528_vm3, %v1119_v53, %v1085_v61 }
 0x2ee   :  { %v1088_v60 = vpop.permute.xlu1 %1087 }
 0x2ef   :  { %v1121_v63 = vsel %vm530_vm4, %v1120_v0, %v1088_v60 }
 0x2f0   :  { %v1122_v39 = vsel %vm532_vm5, %v1121_v63, %v1091_v18 }
 0x2f2   :  { %v1094_v26 = vpop.permute.xlu1 %1093 }
 0x2f3   :  { %v1123_v57 = vsel %vm3036_vm12, %v1122_v39, %v1094_v26  ;;  %vm1143_vm12 = vmor %vm1142_vm0, %vm1141_vm11  ;;  %vm3049_vm11 = vcmask 916480   ;;  %vm3050_vm0 = vcmask 982016  }
 0x2f4   :  { %v1124_v4 = vsel %vm536_vm7, %v1123_v57, %v1837_v2 }
 0x2f5   :  { %v1125_v30 = vsel %vm538_vm8, %v1124_v4, %v1097_v21 }
 0x2f6   :  { %v1100_v24 = vpop.permute.xlu1 %1099 }
 0x2f7   :  { %v1126_v16 = vsel %vm3037_vm9, %v1125_v30, %v1100_v24  ;;  %vm3043_vm9 = vcmask 64512  }
 0x2f8   :  { %v1127_v46 = vsel %vm3038_vm10, %v1126_v16, %v1103_v52  ;;  %vm3044_vm10 = vcmask 457728  }
 0x2fa   :  { %v1106_v7 = vpop.permute.xlu1 %1105 }
 0x2fb   :  { %v1128_v6 = vsel %vm3039_vm13, %v1127_v46, %v1106_v7  ;;  %vm3045_vm13 = vcmask 654336  }
 0x2fc   :  { %v1129_v31 = vsel %vm3040_vm6, %v1128_v6, %v1109_v5  ;;  %vm3046_vm6 = vcmask 719872  }
 0x2fe   :  { %v1112_v32 = vpop.permute.xlu1 %1111 }
 0x2ff   :  { %v1130_v19 = vsel %vm3041_vm15, %v1129_v31, %v1112_v32  ;;  %vm3047_vm15 = vcmask 785408  }
 0x300   :  { %v1131_v9 = vsel %vm3042_vm14, %v1130_v19, %v1115_v58  ;;  %vm3048_vm14 = vcmask 850944  }
 0x302   :  { %v1133_v17 = vpop.permute.xlu1 %1132 }
 0x303   :  { %v1135_v28 = vcombine.low %v1131_v9, %v1133_v17 }
 0x305   :  { %1136 = vrot.lane.b32.xlu0 %v1135_v28, %s1786_s19 }
 0x306   :  { %v1146_v20 = vpop.permute.xlu1 %1145 }
 0x309   :  { %1148 = vrot.lane.b32.xlu0 %v1834_v1, %s1786_s19 }
 0x30a   :  { %v1152_v45 = vpop.permute.xlu1 %1151 }
 0x30d   :  { %1154 = vrot.lane.b32.xlu0 %v1853_v10, %s1801_s28 }
 0x30e   :  { %v1158_v33 = vpop.permute.xlu1 %1157 }
 0x311   :  { %1160 = vrot.lane.b32.xlu0 %v1905_v55, %s1803_s30 }
 0x312   :  { %v1164_v25 = vpop.permute.xlu1 %1163 }
 0x315   :  { %1166 = vrot.lane.b32.xlu0 %v1840_v3, %s1799_s26 }
 0x316   :  { %v1170_v54 = vpop.permute.xlu1 %1169 }
 0x319   :  { %1172 = vrot.lane.b32.xlu0 %v2036_v35, %s1785_s0 }
 0x31a   :  { %v1176_v27 = vpop.permute.xlu1 %1175 }
 0x31d   :  { %1178 = vrot.lane.b32.xlu0 %v2097_v56, %s1788_s21 }
 0x31e   :  { %v1182_v21 = vpop.permute.xlu1 %1181 }
 0x321   :  { %1184 = vrot.lane.b32.xlu0 %v2057_v48, %s1798_s25 }
 0x322   :  { %v1188_v52 = vpop.permute.xlu1 %1187 }
 0x325   :  { %1205 = vrot.lane.b32.xlu0 %v2080_v36, %s1787_s20 }
 0x329   :  { %1218 = vrot.lane.b32.xlu0 %v2447_v44, %s1797_s24 }
 0x32d   :  { %1224 = vrot.lane.b32.xlu0 %v1864_v14, %s1786_s19 }
 0x331   :  { %1230 = vrot.lane.b32.xlu0 %v1891_v43, %s1801_s28 }
 0x335   :  { %1236 = vrot.lane.b32.xlu0 %v1900_v51, %s1803_s30 }
 0x339   :  { %1242 = vrot.lane.b32.xlu0 %v1837_v2, %s1799_s26 }
 0x33d   :  { %1248 = vrot.lane.b32.xlu0 %v2088_v40, %s1785_s0 }
 0x341   :  { %1254 = vrot.lane.b32.xlu0 %v2055_v47, %s1788_s21 }
 0x345   :  { %1260 = vrot.lane.b32.xlu0 %v2069_v12, %s1798_s25 }
 0x377   :  { %v1137_v49 = vpop.permute.xlu0 %1136 }
 0x378   :  { %v1138_v50 = vrot.slane %v1137_v49, 4 }
 0x37a   :  { %v1139_v38 = vsel %vm536_vm7, %v1138_v50, %v1137_v49 }
 0x37b   :  { %1144 = vst.msk [vmem:[#allocation5 + $0x20] sm:$0xff] %vm1143_vm12, %v1139_v38  ;;  %v1149_v8 = vpop.permute.xlu0 %1148  ;;  %vm1214_vm12 = vcmask 1044032  }
 0x37c   :  { %v1190_v15 = vsel %vm3043_vm9, %v1146_v20, %v1149_v8  ;;  %vm1215_vm9 = vcmask 654340  }
 0x37d   :  { %v1191_v23 = vsel %vm524_vm1, %v1190_v15, %v1152_v45 }
 0x37f   :  { %v1155_v34 = vpop.permute.xlu0 %1154 }
 0x380   :  { %v1192_v22 = vsel %vm526_vm2, %v1191_v23, %v1155_v34 }
 0x381   :  { %v1193_v59 = vsel %vm528_vm3, %v1192_v22, %v1158_v33 }
 0x383   :  { %v1161_v61 = vpop.permute.xlu0 %1160 }
 0x384   :  { %v1194_v62 = vsel %vm530_vm4, %v1193_v59, %v1161_v61 }
 0x385   :  { %v1195_v13 = vsel %vm532_vm5, %v1194_v62, %v1164_v25 }
 0x387   :  { %v1167_v29 = vpop.permute.xlu0 %1166 }
 0x388   :  { %v1196_v42 = vsel %vm3044_vm10, %v1195_v13, %v1167_v29  ;;  %vm1216_vm10 = vmor %vm1215_vm9, %vm1214_vm12  ;;  %vm3057_vm12 = vcmask 916480   ;;  %vm3058_vm9 = vcmask 982016  }
 0x389   :  { %v1197_v18 = vsel %vm536_vm7, %v1196_v42, %v1170_v54 }
 0x38a   :  { %v1198_v41 = vsel %vm538_vm8, %v1197_v18, %v2040_v37 }
 0x38b   :  { %v1173_v11 = vpop.permute.xlu0 %1172 }
 0x38c   :  { %v1199_v53 = vsel %vm3045_vm13, %v1198_v41, %v1173_v11  ;;  %vm3051_vm13 = vcmask 64512  }
 0x38d   :  { %v1200_v0 = vsel %vm3046_vm6, %v1199_v53, %v1176_v27  ;;  %vm3052_vm6 = vcmask 457728  }
 0x38f   :  { %v1179_v60 = vpop.permute.xlu0 %1178 }
 0x390   :  { %v1201_v63 = vsel %vm3047_vm15, %v1200_v0, %v1179_v60  ;;  %vm3053_vm15 = vcmask 654336  }
 0x391   :  { %v1202_v39 = vsel %vm3048_vm14, %v1201_v63, %v1182_v21  ;;  %vm3054_vm14 = vcmask 719872  }
 0x393   :  { %v1185_v26 = vpop.permute.xlu0 %1184 }
 0x394   :  { %v1203_v57 = vsel %vm3049_vm11, %v1202_v39, %v1185_v26  ;;  %vm3055_vm11 = vcmask 785408  }
 0x395   :  { %v1204_v4 = vsel %vm3050_vm0, %v1203_v57, %v1188_v52  ;;  %vm3056_vm0 = vcmask 850944  }
 0x397   :  { %v1206_v30 = vpop.permute.xlu0 %1205 }
 0x398   :  { %v1208_v24 = vcombine.low %v1204_v4, %v1206_v30 }
 0x39a   :  { %1209 = vrot.lane.b32.xlu1 %v1208_v24, %s1802_s29 }
 0x39b   :  { %v1219_v16 = vpop.permute.xlu0 %1218 }
 0x39e   :  { %1221 = vrot.lane.b32.xlu1 %v1834_v1, %s1787_s20 }
 0x39f   :  { %v1225_v5 = vpop.permute.xlu0 %1224 }
 0x3a2   :  { %1227 = vrot.lane.b32.xlu1 %v1853_v10, %s1802_s29 }
 0x3a3   :  { %v1231_v46 = vpop.permute.xlu0 %1230 }
 0x3a6   :  { %1233 = vrot.lane.b32.xlu1 %v1905_v55, %s1804_s2 }
 0x3a7   :  { %v1237_v58 = vpop.permute.xlu0 %1236 }
 0x3aa   :  { %1239 = vrot.lane.b32.xlu1 %v1840_v3, %s1800_s27 }
 0x3ab   :  { %v1243_v20 = vpop.permute.xlu0 %1242 }
 0x3ae   :  { %1245 = vrot.lane.b32.xlu1 %v2040_v37, %s1784_s18 }
 0x3af   :  { %v1249_v15 = vpop.permute.xlu0 %1248 }
 0x3b2   :  { %1251 = vrot.lane.b32.xlu1 %v2097_v56, %s1789_s22 }
 0x3b3   :  { %v1255_v59 = vpop.permute.xlu0 %1254 }
 0x3b6   :  { %1257 = vrot.lane.b32.xlu1 %v2057_v48, %s1795_s23 }
 0x3b7   :  { %v1261_v27 = vpop.permute.xlu0 %1260 }
 0x3ba   :  { %1278 = vrot.lane.b32.xlu1 %v2080_v36, %s1797_s24 }
 0x3be   :  { %1291 = vrot.lane.b32.xlu1 %v2447_v44, %s1798_s25 }
 0x3c2   :  { %1297 = vrot.lane.b32.xlu1 %v1864_v14, %s1787_s20 }
 0x3c6   :  { %1303 = vrot.lane.b32.xlu1 %v1891_v43, %s1802_s29 }
 0x3ca   :  { %1309 = vrot.lane.b32.xlu1 %v1900_v51, %s1804_s2 }
 0x3ce   :  { %1315 = vrot.lane.b32.xlu1 %v1837_v2, %s1800_s27 }
 0x3d2   :  { %1321 = vrot.lane.b32.xlu1 %v2036_v35, %s1784_s18 }
 0x3d6   :  { %1327 = vrot.lane.b32.xlu1 %v2055_v47, %s1789_s22 }
 0x3da   :  { %1333 = vrot.lane.b32.xlu1 %v2069_v12, %s1795_s23 }
 0x3de   :  { %1367 = vrot.lane.b32.xlu1 %v1834_v1, %s1798_s25 }
 0x3e2   :  { %1437 = vrot.lane.b32.xlu1 %v2447_v44, %s1788_s21 }
 0x3e6   :  { %1373 = vrot.lane.b32.xlu1 %v1853_v10, %s1787_s20 }
 0x3ea   :  { %1510 = vrot.lane.b32.xlu1 %v2447_v44, %s1789_s22 }
 0x3ee   :  { %1376 = vrot.lane.b32.xlu1 %v1891_v43, %s1786_s19 }
 0x3f2   :  { %1516 = vrot.lane.b32.xlu1 %v1864_v14, %s1795_s23 }
 0x3f6   :  { %1586 = vrot.lane.b32.xlu1 %v1834_v1, %s1789_s22 }
 0x3fa   :  { %1449 = vrot.lane.b32.xlu1 %v1891_v43, %s1787_s20 }
 0x3fe   :  { %1589 = vrot.lane.b32.xlu1 %v1864_v14, %s1788_s21 }
 0x402   :  { %1452 = vrot.lane.b32.xlu1 %v1905_v55, %s1786_s19 }
 0x406   :  { %1592 = vrot.lane.b32.xlu1 %v1853_v10, %s1795_s23 }
 0x40a   :  { %1455 = vrot.lane.b32.xlu1 %v1900_v51, %s1802_s29 }
 0x40c   :  { %v1210_v7 = vpop.permute.xlu1 %1209 }
 0x40d   :  { %v1211_v6 = vrot.slane %v1210_v7, 4 }
 0x40e   :  { %1595 = vrot.lane.b32.xlu1 %v1891_v43, %s1798_s25 }
 0x40f   :  { %v1212_v31 = vsel %vm538_vm8, %v1211_v6, %v1210_v7 }
 0x410   :  { %1217 = vst.msk [vmem:[#allocation5 + $0x24] sm:$0xff] %vm1216_vm10, %v1212_v31  ;;  %v1222_v32 = vpop.permute.xlu1 %1221  ;;  %vm1287_vm10 = vcmask 1044096  }
 0x411   :  { %v1263_v19 = vsel %vm3051_vm13, %v1219_v16, %v1222_v32  ;;  %vm1288_vm13 = vcmask 719876  }
 0x412   :  { %1458 = vrot.lane.b32.xlu1 %v1840_v3, %s1801_s28  ;;  %v1264_v9 = vsel %vm524_vm1, %v1263_v19, %v1225_v5 }
 0x414   :  { %v1228_v17 = vpop.permute.xlu1 %1227 }
 0x415   :  { %v1265_v28 = vsel %vm526_vm2, %v1264_v9, %v1228_v17 }
 0x416   :  { %1598 = vrot.lane.b32.xlu1 %v1905_v55, %s1797_s24  ;;  %v1266_v45 = vsel %vm528_vm3, %v1265_v28, %v1231_v46 }
 0x418   :  { %v1234_v33 = vpop.permute.xlu1 %1233 }
 0x419   :  { %v1267_v49 = vsel %vm530_vm4, %v1266_v45, %v1234_v33 }
 0x41a   :  { %1461 = vrot.lane.b32.xlu1 %v1837_v2, %s1804_s2  ;;  %v1268_v50 = vsel %vm532_vm5, %v1267_v49, %v1237_v58 }
 0x41c   :  { %v1240_v38 = vpop.permute.xlu1 %1239 }
 0x41d   :  { %v1269_v8 = vsel %vm3052_vm6, %v1268_v50, %v1240_v38  ;;  %vm1289_vm6 = vmor %vm1288_vm13, %vm1287_vm10  ;;  %vm3064_vm10 = vcmask 850944   ;;  %vm3065_vm13 = vcmask 916480  }
 0x41e   :  { %1601 = vrot.lane.b32.xlu1 %v1900_v51, %s1787_s20  ;;  %v1270_v25 = vsel %vm536_vm7, %v1269_v8, %v1243_v20 }
 0x420   :  { %v1246_v23 = vpop.permute.xlu1 %1245 }
 0x421   :  { %v1271_v34 = vsel %vm538_vm8, %v1270_v25, %v1246_v23 }
 0x422   :  { %v1272_v22 = vsel %vm3053_vm15, %v1271_v34, %v2036_v35  ;;  %1464 = vrot.lane.b32.xlu1 %v2040_v37, %s1803_s30 }
 0x423   :  { %v1273_v54 = vsel %vm3054_vm14, %v1272_v22, %v1249_v15  ;;  %vm3059_vm14 = vcmask 64512  }
 0x424   :  { %v1252_v61 = vpop.permute.xlu1 %1251 }
 0x425   :  { %v1274_v62 = vsel %vm3055_vm11, %v1273_v54, %v1252_v61  ;;  %vm3060_vm11 = vcmask 457728  }
 0x426   :  { %1604 = vrot.lane.b32.xlu1 %v1840_v3, %s1786_s19  ;;  %v1275_v13 = vsel %vm3056_vm0, %v1274_v62, %v1255_v59  ;;  %vm3061_vm0 = vmmov %vm3053_vm15 }
 0x428   :  { %v1258_v29 = vpop.permute.xlu1 %1257 }
 0x429   :  { %v1276_v42 = vsel %vm3057_vm12, %v1275_v13, %v1258_v29  ;;  %vm3062_vm12 = vcmask 719872  }
 0x42a   :  { %1467 = vrot.lane.b32.xlu1 %v2036_v35, %s1800_s27  ;;  %v1277_v41 = vsel %vm3058_vm9, %v1276_v42, %v1261_v27  ;;  %vm3063_vm9 = vcmask 785408  }
 0x42c   :  { %v1279_v18 = vpop.permute.xlu1 %1278 }
 0x42d   :  { %v1281_v11 = vcombine.low %v1277_v41, %v1279_v18 }
 0x42e   :  { %1607 = vrot.lane.b32.xlu1 %v1837_v2, %s1802_s29 }
 0x42f   :  { %1282 = vrot.lane.b32.xlu0 %v1281_v11, %s1801_s28 }
 0x430   :  { %v2733_v53 = vpop.permute.xlu1 %1291 }
 0x432   :  { %1540 = vrot.lane.b32.xlu1 %v2036_v35, %s1803_s30 }
 0x433   :  { %1294 = vrot.lane.b32.xlu0 %v1834_v1, %s1797_s24 }
 0x434   :  { %v2743_v21 = vpop.permute.xlu1 %1297 }
 0x436   :  { %1400 = vrot.lane.b32.xlu1 %v2055_v47, %s1785_s0 }
 0x437   :  { %1300 = vrot.lane.b32.xlu0 %v1853_v10, %s1786_s19 }
 0x438   :  { %v2749_v0 = vpop.permute.xlu1 %1303 }
 0x43a   :  { %1543 = vrot.lane.b32.xlu1 %v2088_v40, %s1800_s27 }
 0x43b   :  { %1306 = vrot.lane.b32.xlu0 %v1905_v55, %s1801_s28 }
 0x43c   :  { %v2759_v60 = vpop.permute.xlu1 %1309 }
 0x43e   :  { %1403 = vrot.lane.b32.xlu1 %v2057_v48, %s1789_s22 }
 0x43f   :  { %1312 = vrot.lane.b32.xlu0 %v1840_v3, %s1803_s30 }
 0x440   :  { %v2765_v63 = vpop.permute.xlu1 %1315 }
 0x442   :  { %1616 = vrot.lane.b32.xlu1 %v2088_v40, %s1803_s30 }
 0x443   :  { %1318 = vrot.lane.b32.xlu0 %v2040_v37, %s1799_s26 }
 0x444   :  { %v2775_v39 = vpop.permute.xlu1 %1321 }
 0x446   :  { %1406 = vrot.lane.b32.xlu1 %v2069_v12, %s1788_s21 }
 0x447   :  { %1324 = vrot.lane.b32.xlu0 %v2097_v56, %s1785_s0 }
 0x448   :  { %v2781_v26 = vpop.permute.xlu1 %1327 }
 0x44a   :  { %1549 = vrot.lane.b32.xlu1 %v2055_v47, %s1784_s18 }
 0x44b   :  { %1330 = vrot.lane.b32.xlu0 %v2057_v48, %s1788_s21 }
 0x44c   :  { %v2789_v57 = vpop.permute.xlu1 %1333 }
 0x44e   :  { %1424 = vrot.lane.b32.xlu1 %v2080_v36, %s1795_s23 }
 0x44f   :  { %1364 = vrot.lane.b32.xlu0 %v2447_v44, %s1795_s23 }
 0x450   :  { %v2793_v52 = vpop.permute.xlu1 %1367 }
 0x452   :  { %1622 = vrot.lane.b32.xlu1 %v2055_v47, %s1799_s26 }
 0x453   :  { %1370 = vrot.lane.b32.xlu0 %v1864_v14, %s1797_s24 }
 0x454   :  { %v2799_v4 = vpop.permute.xlu1 %1437 }
 0x456   :  { %1552 = vrot.lane.b32.xlu1 %v2069_v12, %s1785_s0 }
 0x457   :  { %1440 = vrot.lane.b32.xlu0 %v1834_v1, %s1795_s23 }
 0x45a   :  { %1570 = vrot.lane.b32.xlu1 %v2080_v36, %s1789_s22 }
 0x45b   :  { %1443 = vrot.lane.b32.xlu0 %v1864_v14, %s1798_s25  ;;  %v2803_v14 = vpop.permute.xlu1 %1373 }
 0x45f   :  { %1513 = vrot.lane.b32.xlu0 %v1834_v1, %s1788_s21  ;;  %v2809_v1 = vpop.permute.xlu1 %1510 }
 0x463   :  { %1446 = vrot.lane.b32.xlu0 %v1853_v10, %s1797_s24 }
 0x467   :  { %1583 = vrot.lane.b32.xlu0 %v2447_v44, %s1785_s0  ;;  %v2813_v44 = vpop.permute.xlu1 %1376 }
 0x46b   :  { %1379 = vrot.lane.b32.xlu0 %v1905_v55, %s1802_s29 }
 0x46f   :  { %1519 = vrot.lane.b32.xlu0 %v1853_v10, %s1798_s25  ;;  %v2819_v10 = vpop.permute.xlu1 %1516 }
 0x473   :  { %1382 = vrot.lane.b32.xlu0 %v1900_v51, %s1801_s28  ;;  %v2823_v30 = vpop.permute.xlu1 %1586 }
 0x477   :  { %1522 = vrot.lane.b32.xlu0 %v1891_v43, %s1797_s24  ;;  %v2829_v43 = vpop.permute.xlu1 %1449 }
 0x47b   :  { %1385 = vrot.lane.b32.xlu0 %v1840_v3, %s1804_s2 }
 0x47f   :  { %1525 = vrot.lane.b32.xlu0 %v1905_v55, %s1787_s20  ;;  %v2833_v55 = vpop.permute.xlu1 %1589 }
 0x483   :  { %1388 = vrot.lane.b32.xlu0 %v1837_v2, %s1803_s30 }
 0x487   :  { %1528 = vrot.lane.b32.xlu0 %v1900_v51, %s1786_s19  ;;  %v1453_v51 = vpop.permute.xlu1 %1452 }
 0x48b   :  { %1391 = vrot.lane.b32.xlu0 %v2040_v37, %s1800_s27  ;;  %v2841_v16 = vpop.permute.xlu1 %1592 }
 0x48f   :  { %1531 = vrot.lane.b32.xlu0 %v1840_v3, %s1802_s29  ;;  %v1456_v7 = vpop.permute.xlu1 %1455 }
 0x493   :  { %1394 = vrot.lane.b32.xlu0 %v2036_v35, %s1799_s26  ;;  %v1596_v17 = vpop.permute.xlu1 %1595 }
 0x497   :  { %1534 = vrot.lane.b32.xlu0 %v1837_v2, %s1801_s28  ;;  %v1459_v45 = vpop.permute.xlu1 %1458 }
 0x49b   :  { %1397 = vrot.lane.b32.xlu0 %v2088_v40, %s1784_s18  ;;  %v1599_v25 = vpop.permute.xlu1 %1598 }
 0x49f   :  { %1537 = vrot.lane.b32.xlu0 %v2040_v37, %s1804_s2  ;;  %v1462_v54 = vpop.permute.xlu1 %1461 }
 0x4a1   :  { %v1283_v3 = vpop.permute.xlu0 %1282 }
 0x4a2   :  { %v1284_v24 = vrot.slane %v1283_v3, 4 }
 0x4a3   :  { %1470 = vrot.lane.b32.xlu0 %v2088_v40, %s1799_s26  ;;  %v1602_v61 = vpop.permute.xlu1 %1601 }
 0x4a4   :  { %v1285_v5 = vsel %vm3053_vm15, %v1284_v24, %v1283_v3 }
 0x4a5   :  { %1290 = vst.msk [vmem:[#allocation5 + $0x28] sm:$0xff] %vm1289_vm6, %v1285_v5  ;;  %v1295_v2 = vpop.permute.xlu0 %1294  ;;  %vm3066_vm6 = vmmov %vm3059_vm14 }
 0x4a6   :  { %v1336_v46 = vsel %vm3059_vm14, %v2733_v53, %v1295_v2  ;;  %vm3067_vm15 = vmmov %vm3066_vm6 }
 0x4a7   :  { %1610 = vrot.lane.b32.xlu0 %v2040_v37, %s1801_s28  ;;  %v1337_v6 = vsel %vm524_vm1, %v1336_v46, %v2743_v21  ;;  %v1465_v13 = vpop.permute.xlu1 %1464  ;;  %vm3068_vm14 = vmmov %vm3060_vm11 }
 0x4a9   :  { %v1301_v31 = vpop.permute.xlu0 %1300 }
 0x4aa   :  { %v1338_v32 = vsel %vm526_vm2, %v1337_v6, %v1301_v31 }
 0x4ab   :  { %1473 = vrot.lane.b32.xlu0 %v2097_v56, %s1784_s18  ;;  %v1339_v19 = vsel %vm528_vm3, %v1338_v32, %v2749_v0  ;;  %v1605_v41 = vpop.permute.xlu1 %1604 }
 0x4ad   :  { %v1307_v58 = vpop.permute.xlu0 %1306 }
 0x4ae   :  { %v1340_v9 = vsel %vm530_vm4, %v1339_v19, %v1307_v58 }
 0x4af   :  { %1613 = vrot.lane.b32.xlu0 %v2036_v35, %s1804_s2  ;;  %v1341_v37 = vsel %vm532_vm5, %v1340_v9, %v2759_v60  ;;  %v1468_v60 = vpop.permute.xlu1 %1467 }
 0x4b1   :  { %v1313_v28 = vpop.permute.xlu0 %1312 }
 0x4b2   :  { %v1342_v20 = vsel %vm3060_vm11, %v1341_v37, %v1313_v28  ;;  %vm3069_vm11 = vmmov %vm3061_vm0 }
 0x4b3   :  { %1546 = vrot.lane.b32.xlu0 %v2097_v56, %s1799_s26  ;;  %v1343_v33 = vsel %vm536_vm7, %v1342_v20, %v2765_v63  ;;  %v1608_v46 = vpop.permute.xlu1 %1607 }
 0x4b5   :  { %v1319_v49 = vpop.permute.xlu0 %1318 }
 0x4b6   :  { %v1344_v50 = vsel %vm538_vm8, %v1343_v33, %v1319_v49 }
 0x4b7   :  { %v1345_v38 = vsel %vm3061_vm0, %v1344_v50, %v2775_v39  ;;  %1351 = vrot.lane.b32.xlu0 %v2080_v36, %s1798_s25  ;;  %vm3070_vm0 = vmmov %vm3068_vm14  ;;  %v1541_v32 = vpop.permute.xlu1 %1540 }
 0x4b8   :  { %v1346_v35 = vsel %vm3062_vm12, %v1345_v38, %v2088_v40  ;;  %vm3071_vm12 = vmmov %vm3066_vm6 }
 0x4b9   :  { %v1325_v8 = vpop.permute.xlu0 %1324 }
 0x4ba   :  { %v1347_v15 = vsel %vm3063_vm9, %v1346_v35, %v1325_v8  ;;  %vm3072_vm9 = vmmov %vm3070_vm0 }
 0x4bb   :  { %1476 = vrot.lane.b32.xlu0 %v2057_v48, %s1785_s0  ;;  %v1348_v23 = vsel %vm3064_vm10, %v1347_v15, %v2781_v26  ;;  %v1401_v58 = vpop.permute.xlu1 %1400  ;;  %vm3073_vm10 = vmmov %vm3069_vm11 }
 0x4bd   :  { %v1331_v34 = vpop.permute.xlu0 %1330 }
 0x4be   :  { %v2880_v22 = vsel %vm3065_vm13, %v1348_v23, %v1331_v34  ;;  %vm3074_vm13 = vcmask 719872  }
 0x4bf   :  { %1619 = vrot.lane.b32.xlu0 %v2097_v56, %s1800_s27  ;;  %v1544_v37 = vpop.permute.xlu1 %1543 }
 0x4c1   :  { %v1365_v59 = vpop.permute.xlu0 %1364 }
 0x4c2   :  { %v1409_v50 = vsel %vm3071_vm12, %v1365_v59, %v2793_v52 }
 0x4c3   :  { %1479 = vrot.lane.b32.xlu0 %v2069_v12, %s1789_s22  ;;  %v1404_v20 = vpop.permute.xlu1 %1403 }
 0x4c5   :  { %v1371_v40 = vpop.permute.xlu0 %1370 }
 0x4c6   :  { %v1410_v38 = vsel %vm524_vm1, %v1409_v50, %v1371_v40 }
 0x4c7   :  { %1497 = vrot.lane.b32.xlu0 %v2080_v36, %s1788_s21  ;;  %v2919_v49 = vpop.permute.xlu1 %1616  ;;  %v1411_v8 = vsel %vm526_vm2, %v1410_v38, %v2803_v14 }
 0x4c8   :  { %v1412_v23 = vsel %vm528_vm3, %v1411_v8, %v2813_v44 }
 0x4c9   :  { %v1441_v62 = vpop.permute.xlu0 %1440 }
 0x4ca   :  { %v1482_v29 = vsel %vm3066_vm6, %v2799_v4, %v1441_v62  ;;  %vm3075_vm6 = vcmask 785408  }
 0x4cb   :  { %1625 = vrot.lane.b32.xlu0 %v2057_v48, %s1784_s18  ;;  %v1407_v15 = vpop.permute.xlu1 %1406 }
 0x4cd   :  { %v1444_v42 = vpop.permute.xlu0 %1443 }
 0x4ce   :  { %v1483_v27 = vsel %vm524_vm1, %v1482_v29, %v1444_v42 }
 0x4cf   :  { %1643 = vrot.lane.b32.xlu0 %v2080_v36, %s1785_s0 }
 0x4d1   :  { %v1514_v18 = vpop.permute.xlu0 %1513 }
 0x4d5   :  { %v1447_v11 = vpop.permute.xlu0 %1446 }
 0x4d6   :  { %v1484_v53 = vsel %vm526_vm2, %v1483_v27, %v1447_v11 }
 0x4d7   :  { %v1485_v21 = vsel %vm528_vm3, %v1484_v53, %v2829_v43 }
 0x4d8   :  { %v1486_v0 = vsel %vm530_vm4, %v1485_v21, %v1453_v51 }
 0x4d9   :  { %v1487_v63 = vsel %vm532_vm5, %v1486_v0, %v1456_v7  ;;  %v1584_v39 = vpop.permute.xlu0 %1583 }
 0x4da   :  { %v1628_v26 = vsel %vm3067_vm15, %v1584_v39, %v2823_v30  ;;  %v1488_v4 = vsel %vm3068_vm14, %v1487_v63, %v1459_v45  ;;  %vm3076_vm15 = vcmask 850944   ;;  %vm3077_vm14 = vcmask 916480  }
 0x4db   :  { %v1629_v36 = vsel %vm524_vm1, %v1628_v26, %v2833_v55  ;;  %v1489_v3 = vsel %vm536_vm7, %v1488_v4, %v1462_v54 }
 0x4dc   :  { %v1630_v24 = vsel %vm526_vm2, %v1629_v36, %v2841_v16  ;;  %v1490_v43 = vsel %vm538_vm8, %v1489_v3, %v1465_v13  ;;  %v1550_v13 = vpop.permute.xlu1 %1549 }
 0x4dd   :  { %v1631_v51 = vsel %vm528_vm3, %v1630_v24, %v1596_v17  ;;  %v2911_v5 = vsel %vm3069_vm11, %v1490_v43, %v1468_v60  ;;  %v1380_v2 = vpop.permute.xlu0 %1379  ;;  %vm3078_vm11 = vcmask 982016  }
 0x4de   :  { %v1632_v30 = vsel %vm530_vm4, %v1631_v51, %v1599_v25  ;;  %v1413_v34 = vsel %vm530_vm4, %v1412_v23, %v1380_v2 }
 0x4df   :  { %v1633_v7 = vsel %vm532_vm5, %v1632_v30, %v1602_v61 }
 0x4e0   :  { %v1634_v55 = vsel %vm3070_vm0, %v1633_v7, %v1605_v41  ;;  %v1425_v42 = vpop.permute.xlu1 %1424  ;;  %vm3079_vm0 = vmmov %vm3071_vm12 }
 0x4e1   :  { %v2917_v6 = vsel %vm536_vm7, %v1634_v55, %v1608_v46  ;;  %v1520_v31 = vpop.permute.xlu0 %1519  ;;  %v1555_v0 = vsel %vm3079_vm0, %v2809_v1, %v1514_v18  ;;  %vm3080_vm12 = vmmov %vm3072_vm9 }
 0x4e2   :  { %v1556_v63 = vsel %vm524_vm1, %v1555_v0, %v2819_v10  ;;  %vm3081_vm1 = vmmov %vm3073_vm10 }
 0x4e4   :  { %v1623_v36 = vpop.permute.xlu1 %1622 }
 0x4e5   :  { %v1383_v16 = vpop.permute.xlu0 %1382 }
 0x4e6   :  { %v1414_v54 = vsel %vm532_vm5, %v1413_v34, %v1383_v16 }
 0x4e8   :  { %v1553_v2 = vpop.permute.xlu1 %1552 }
 0x4e9   :  { %v1523_v19 = vpop.permute.xlu0 %1522 }
 0x4ed   :  { %v1386_v9 = vpop.permute.xlu0 %1385 }
 0x4ee   :  { %v1415_v62 = vsel %vm3072_vm9, %v1414_v54, %v1386_v9  ;;  %vm3086_vm9 = vmmov %vm3078_vm11 }
 0x4f1   :  { %v1526_v17 = vpop.permute.xlu0 %1525 }
 0x4f5   :  { %v1389_v28 = vpop.permute.xlu0 %1388 }
 0x4f6   :  { %v1416_v52 = vsel %vm536_vm7, %v1415_v62, %v1389_v28 }
 0x4f9   :  { %v1529_v45 = vpop.permute.xlu0 %1528 }
 0x4fd   :  { %v1392_v33 = vpop.permute.xlu0 %1391 }
 0x4fe   :  { %v1417_v59 = vsel %vm538_vm8, %v1416_v52, %v1392_v33 }
 0x501   :  { %v1532_v35 = vpop.permute.xlu0 %1531 }
 0x505   :  { %v1395_v25 = vpop.permute.xlu0 %1394 }
 0x506   :  { %v1418_v40 = vsel %vm3073_vm10, %v1417_v59, %v1395_v25 }
 0x509   :  { %v1535_v61 = vpop.permute.xlu0 %1534 }
 0x50d   :  { %v1398_v14 = vpop.permute.xlu0 %1397 }
 0x50e   :  { %v1419_v29 = vsel %vm3074_vm13, %v1418_v40, %v1398_v14 }
 0x50f   :  { %v1420_v44 = vsel %vm3075_vm6, %v1419_v29, %v2097_v56  ;;  %v1557_v56 = vsel %vm526_vm2, %v1556_v63, %v1520_v31  ;;  %vm3082_vm2 = vmmov %vm3074_vm13  ;;  %v1571_v31 = vpop.permute.xlu1 %1570 }
 0x510   :  { %v1421_v27 = vsel %vm3076_vm15, %v1420_v44, %v1401_v58  ;;  %v1558_v26 = vsel %vm528_vm3, %v1557_v56, %v1523_v19  ;;  %vm3083_vm3 = vmmov %vm3075_vm6 }
 0x511   :  { %v1538_v41 = vpop.permute.xlu0 %1537  ;;  %v1422_v11 = vsel %vm3077_vm14, %v1421_v27, %v1404_v20  ;;  %v1559_v4 = vsel %vm530_vm4, %v1558_v26, %v1526_v17  ;;  %vm3084_vm4 = vmmov %vm3076_vm15 }
 0x512   :  { %v1423_v53 = vsel %vm3078_vm11, %v1422_v11, %v1407_v15  ;;  %v1560_v3 = vsel %vm532_vm5, %v1559_v4, %v1529_v45  ;;  %vm3085_vm5 = vmmov %vm3077_vm14 }
 0x513   :  { %v1427_v21 = vcombine.low %v1423_v53, %v1425_v42  ;;  %v1561_v24 = vsel %vm3080_vm12, %v1560_v3, %v1532_v35  ;;  %vm3088_vm10 = vmmov %vm3082_vm2 }
 0x514   :  { %v1562_v1 = vsel %vm536_vm7, %v1561_v24, %v1535_v61  ;;  %vm3087_vm7 = vmmov %vm3086_vm9 }
 0x515   :  { %1428 = vrot.lane.b32.xlu0 %v1427_v21, %s1803_s30  ;;  %v1471_v60 = vpop.permute.xlu0 %1470  ;;  %v1563_v18 = vsel %vm538_vm8, %v1562_v1, %v1538_v41  ;;  %v1350_v58 = vsel %vm3087_vm7, %v2880_v22, %v2789_v57  ;;  %vm3089_vm13 = vmmov %vm3083_vm3 }
 0x516   :  { %v1564_v10 = vsel %vm3081_vm1, %v1563_v18, %v1541_v32  ;;  %v1492_v20 = vsel %vm3088_vm10, %v2911_v5, %v1471_v60  ;;  %vm3090_vm6 = vmmov %vm3081_vm1 }
 0x517   :  { %v1565_v46 = vsel %vm3082_vm2, %v1564_v10, %v1544_v37  ;;  %vm3091_vm15 = vmmov %vm3084_vm4 }
 0x518   :  { %vm3092_vm14 = vmmov %vm3085_vm5 }
 0x519   :  { %v1611_v39 = vpop.permute.xlu0 %1610  ;;  %vm3093_vm11 = vmmov %vm3082_vm2 }
 0x51a   :  { %v1636_v45 = vsel %vm538_vm8, %v2917_v6, %v1611_v39  ;;  %vm3094_vm0 = vmmov %vm3087_vm7 }
 0x51b   :  { %vm3095_vm12 = vmmov %vm3083_vm3 }
 0x51c   :  { %vm3096_vm8 = vmmov %vm3084_vm4 }
 0x51d   :  { %v1474_v43 = vpop.permute.xlu0 %1473  ;;  %vm3097_vm1 = vmmov %vm3085_vm5 }
 0x51e   :  { %vm3098_vm2 = vmmov %vm3094_vm0 }
 0x521   :  { %v1614_v51 = vpop.permute.xlu0 %1613 }
 0x522   :  { %v1637_v57 = vsel %vm3090_vm6, %v1636_v45, %v1614_v51  ;;  %vm3100_vm6 = vmmov %vm3095_vm12 }
 0x523   :  { %v1638_v38 = vsel %vm3093_vm11, %v1637_v57, %v2919_v49 }
 0x525   :  { %v1547_v30 = vpop.permute.xlu0 %1546 }
 0x526   :  { %v1566_v7 = vsel %vm3083_vm3, %v1565_v46, %v1547_v30  ;;  %vm1360_vm3 = vcmask 1044160  }
 0x527   :  { %v1567_v55 = vsel %vm3084_vm4, %v1566_v7, %v1550_v13  ;;  %vm1361_vm4 = vcmask 785412  }
 0x528   :  { %v1568_v16 = vsel %vm3085_vm5, %v1567_v55, %v2057_v48  ;;  %v1493_v48 = vsel %vm3089_vm13, %v1492_v20, %v1474_v43  ;;  %vm1433_vm5 = vcmask 1044224   ;;  %vm1362_vm7 = vmor %vm1361_vm4, %vm1360_vm3  ;;  %vm1652_vm3 = vcmask 1044416  }
 0x529   :  { %v1569_v19 = vsel %vm3086_vm9, %v1568_v16, %v1553_v2  ;;  %v1352_v9 = vpop.permute.xlu0 %1351  ;;  %v1494_v22 = vsel %vm3091_vm15, %v1493_v48, %v2055_v47  ;;  %vm1434_vm9 = vcmask 850948   ;;  %vm3099_vm13 = vmmov %vm3093_vm11  ;;  %vm1506_vm15 = vcmask 1044288  }
 0x52a   :  { %v1573_v17 = vcombine.low %v1569_v19, %v1571_v31  ;;  %v1354_v32 = vcombine.low %v1350_v58, %v1352_v9  ;;  %vm1435_vm10 = vmor %vm1434_vm9, %vm1433_vm5  ;;  %vm1579_vm11 = vcmask 1044352   ;;  %vm1653_vm4 = vcmask 1047556  }
 0x52b   :  { %vm1654_vm5 = vmor %vm1653_vm4, %vm1652_vm3  ;;  %vm3103_vm9 = vcmask 982016  }
 0x52c   :  { %1574 = vrot.lane.b32.xlu0 %v1573_v17, %s1799_s26  ;;  %1355 = vrot.lane.b32.xlu1 %v1354_v32, %s1804_s2 }
 0x52d   :  { %v1477_v37 = vpop.permute.xlu0 %1476 }
 0x52e   :  { %v1495_v50 = vsel %vm3092_vm14, %v1494_v22, %v1477_v37  ;;  %vm1507_vm14 = vcmask 916484  }
 0x531   :  { %v1620_v28 = vpop.permute.xlu0 %1619 }
 0x532   :  { %v1639_v5 = vsel %vm3095_vm12, %v1638_v38, %v1620_v28  ;;  %vm1508_vm12 = vmor %vm1507_vm14, %vm1506_vm15 }
 0x533   :  { %v1640_v6 = vsel %vm3096_vm8, %v1639_v5, %v1623_v36 }
 0x535   :  { %v1480_v33 = vpop.permute.xlu0 %1479 }
 0x536   :  { %v1496_v35 = vsel %vm3094_vm0, %v1495_v50, %v1480_v33  ;;  %vm1580_vm0 = vcmask 982020  }
 0x537   :  { %vm1581_vm8 = vmor %vm1580_vm0, %vm1579_vm11 }
 0x539   :  { %v1498_v8 = vpop.permute.xlu0 %1497 }
 0x53a   :  { %v1500_v15 = vcombine.low %v1496_v35, %v1498_v8 }
 0x53c   :  { %1501 = vrot.lane.b32.xlu1 %v1500_v15, %s1800_s27 }
 0x53d   :  { %v1626_v25 = vpop.permute.xlu0 %1625 }
 0x53e   :  { %v1641_v23 = vsel %vm3097_vm1, %v1640_v6, %v1626_v25  ;;  %vm3101_vm1 = vcmask 850944  }
 0x53f   :  { %v1642_v47 = vsel %vm3098_vm2, %v1641_v23, %v2069_v12  ;;  %vm3102_vm2 = vcmask 916480  }
 0x541   :  { %v1644_v34 = vpop.permute.xlu0 %1643 }
 0x542   :  { %v1646_v54 = vcombine.low %v1642_v47, %v1644_v34 }
 0x544   :  { %1647 = vrot.lane.b32.xlu1 %v1646_v54, %s1784_s18 }
 0x587   :  { %v1429_v49 = vpop.permute.xlu0 %1428 }
 0x588   :  { %v1430_v61 = vrot.slane %v1429_v49, 4 }
 0x58a   :  { %v1431_v59 = vsel %vm3100_vm6, %v1430_v61, %v1429_v49 }
 0x59e   :  { %v1356_v62 = vpop.permute.xlu1 %1355  ;;  %v1575_v12 = vpop.permute.xlu0 %1574 }
 0x59f   :  { %v1357_v13 = vrot.slane %v1356_v62, 4  ;;  %v1576_v40 = vrot.slane %v1575_v12, 4 }
 0x5a1   :  { %v1358_v52 = vsel %vm3099_vm13, %v1357_v13, %v1356_v62  ;;  %v1577_v42 = vsel %vm3102_vm2, %v1576_v40, %v1575_v12 }
 0x5a2   :  { %1363 = vst.msk [vmem:[#allocation5 + $0x2c] sm:$0xff] %vm1362_vm7, %v1358_v52 }
 0x5a3   :  { %1436 = vst.msk [vmem:[#allocation5 + $0x30] sm:$0xff] %vm1435_vm10, %v1431_v59 }
 0x5ae   :  { %v1502_v14 = vpop.permute.xlu1 %1501 }
 0x5af   :  { %v1503_v29 = vrot.slane %v1502_v14, 4 }
 0x5b1   :  { %v1504_v44 = vsel %vm3101_vm1, %v1503_v29, %v1502_v14 }
 0x5b2   :  { %1509 = vst.msk [vmem:[#allocation5 + $0x34] sm:$0xff] %vm1508_vm12, %v1504_v44 }
 0x5b3   :  { %1582 = vst.msk [vmem:[#allocation5 + $0x38] sm:$0xff] %vm1581_vm8, %v1577_v42 }
 0x5b6   :  { %v1648_v27 = vpop.permute.xlu1 %1647 }
 0x5b7   :  { %v1649_v41 = vrot.slane %v1648_v27, 4 }
 0x5b9   :  { %v1650_v11 = vsel %vm3103_vm9, %v1649_v41, %v1648_v27 }
 0x5ba   :  { %1655 = vst.msk [vmem:[#allocation5 + $0x3c] sm:$0xff] %vm1654_vm5, %v1650_v11 }
 0x5bb   :  { %1768 = shalt.err (!%p1765_p12)
}
 0x5bc   :  { %s1769_s8 = scalar_lea.hbm %s3001_s1, 1088 }
 0x5bd   :  { %p1770_p13 = scmp.ne.s32.totalorder %s3001_s1, %s1769_s8  ;;  %p1773_p0 = scmp.lt.u32.totalorder %s1769_s8, %s3001_s1 }
 0x5bf   :  { %p1775_p1 = pnand %p1773_p0, %p1770_p13 }
 0x5c1   :  { %1778 = shalt.err (!%p1775_p1)
}
 0x5c2   :  { %1665 = dma.vmem_to_hbm [thread:$0]  %s1663_s4, 1088, %s3001_s1, [#allocation4]  }
 0x5c3   :  { %1781 = dma.done.wait [#allocation4], 1088  }
 0x5c4   :  { %1782 = vsyncadd [#allocation4], 4294966208 }
 0x5c5   :  { %1669 = vsyncpa [#allocation3], 1 }
 0x5c6   :  { %1670 = vsyncpa [#allocation4], 1 }

</bundles_post_ra>
